<compile_context>
chip_gen: v7x
topology: tpu7x:2x2x1
jax: 0.10.0
libtpu: 0.0.40
codegen_flags: <defaults>
</compile_context>

<pallas_src>
import jax
import jax.numpy as jnp
import numpy as np
from jax import lax
from jax.experimental import pallas as pl
from jax.experimental.pallas import tpu as pltpu


def _round_up(a, b):
    return (a + b - 1) // b * b


def downsample_block(x, weight, bias, scale_factor, *, out_dtype=None,
                     target_payload_bytes=3 * 512 * 1024, max_unroll=32):
    """Forward of nn.Conv2d(Cin, Cout, kernel_size=s, stride=s) on NCHW input.

    x:      (N, Cin, H, W) float32 (other dtypes are cast to f32)
    weight: (Cout, Cin, s, s)
    bias:   (Cout,)
    Returns (N, Cout, H//s, W//s) in `out_dtype` (default: x.dtype).
    """
    s = int(scale_factor)
    N, Cin, H, W = x.shape
    Cout = weight.shape[0]
    Ho, Wo = H // s, W // s
    Hs, Ws = Ho * s, Wo * s
    P = Ho * Wo
    if out_dtype is None:
        out_dtype = x.dtype

    # PyTorch semantics: trailing rows/cols not covered by a full stride drop.
    if (H, W) != (Hs, Ws):
        x = x[:, :, :Hs, :Ws]
    if x.dtype != jnp.float32:
        x = x.astype(jnp.float32)   # exact f32 numerics; memory-bound either way

    # Stage-1 weights: w1[kh, kw*Cout + co, ci] = weight[co, ci, kh, kw]
    w1 = jnp.transpose(weight.astype(jnp.float32), (2, 3, 0, 1)).reshape(s, s * Cout, Cin)
    b2 = bias.astype(jnp.float32).reshape(Cout, 1)

    # Stage-2 selection matrices (constant 0/1): sel[kw, w, wo] = (w == wo*s + kw)
    sel_np = np.zeros((s, Ws, Wo), np.float32)
    wo_idx = np.arange(Wo)
    for kw in range(s):
        sel_np[kw, wo_idx * s + kw, wo_idx] = 1.0
    sel = jnp.asarray(sel_np)

    # ---- tile-size selection -------------------------------------------------
    o_bytes = jnp.dtype(out_dtype).itemsize

    def th_valid(t):
        # x block sublane dim (t*s) and output lane width (t*Wo) must be aligned,
        # or cover the full extent.
        if t == Ho:
            return True
        return (t * s) % 8 == 0 and (t * Wo) % 128 == 0

    th_cands = [t for t in range(1, Ho + 1) if Ho % t == 0 and th_valid(t)]
    th = th_cands[0]
    Nb = 1

    def payload(nb, t):        # HBM bytes moved per grid step
        return nb * (Cin * t * s * Ws * 4 + Cout * t * Wo * o_bytes)

    def vmem_use(nb, t):       # VMEM footprint incl. sublane/lane padding, 2x buffers
        x_blk = nb * Cin * _round_up(t * s, 8) * Ws * 4
        o_blk = nb * _round_up(Cout, 8) * _round_up(t * Wo, 128) * o_bytes
        w_blk = s * _round_up(s * Cout, 8) * _round_up(Cin, 128) * 4
        s_blk = s * _round_up(Ws, 8) * _round_up(Wo, 128) * 4
        b_blk = _round_up(Cout, 8) * 128 * 4
        return 2 * (x_blk + o_blk + w_blk + s_blk + b_blk)

    try:   # generation-aware budget: 64 MiB on v5e/v6e (128 MiB phys), 32 MiB on v7x
        vmem_phys = int(pltpu.get_tpu_info().vmem_capacity_bytes)
    except Exception:
        vmem_phys = 64 * 1024 * 1024
    vmem_limit = max(32 * 1024 * 1024, vmem_phys // 2)
    budget = int(vmem_limit * 0.85)

    def steps(nb, t):
        return (N // nb) * (Ho // t)

    nat_steps = steps(1, th)
    min_steps = min(4, nat_steps) if nat_steps >= 2 else 1

    grew = True
    while grew and payload(Nb, th) < target_payload_bytes:
        grew = False
        larger = [t for t in th_cands if t > th]
        if larger:
            t2 = larger[0]
            if (Nb * t2 <= max_unroll and vmem_use(Nb, t2) <= budget
                    and steps(Nb, t2) >= min_steps):
                th = t2
                grew = True
                continue
        nb2 = next((d for d in range(Nb + 1, N + 1) if N % d == 0), None)
        if nb2 is not None:
            if (nb2 * th <= max_unroll and vmem_use(nb2, th) <= budget
                    and steps(nb2, th) >= min_steps):
                Nb = nb2
                grew = True

    need = vmem_use(Nb, th)
    if need > budget:          # forced-minimum tile bigger than the default budget
        vmem_limit = min(int(vmem_phys * 0.9), need + (8 << 20))

    grid = (N // Nb, Ho // th)

    # ---- kernel ---------------------------------------------------------------
    hp = lax.Precision.HIGHEST   # MXU has huge slack here; exact f32 passes are free

    def kernel(w_ref, s_ref, b_ref, x_ref, o_ref):
        bias_col = b_ref[...]                                  # (Cout, 1)
        for n in range(Nb):                                    # static unroll
            for t in range(th):                                # static unroll
                # Stage 1: contract Cin for all (kh, kw) at once over the full
                # interleaved width: acc[kw*Cout + co, w].
                acc = None
                for kh in range(s):
                    xrow = x_ref[n, :, t * s + kh, :]          # (Cin, Ws)
                    part = jnp.dot(w_ref[kh], xrow,
                                   preferred_element_type=jnp.float32,
                                   precision=hp)               # (s*Cout, Ws)
                    acc = part if acc is None else acc + part
                # Stage 2: kw de-interleave + sum via constant 0/1 selection matmul.
                y = None
                for kw in range(s):
                    blk = acc[kw * Cout:(kw + 1) * Cout, :]    # (Cout, Ws)
                    ysel = jnp.dot(blk, s_ref[kw],
                                   preferred_element_type=jnp.float32,
                                   precision=hp)               # (Cout, Wo)
                    y = ysel if y is None else y + ysel
                o_ref[n, :, t * Wo:(t + 1) * Wo] = (y + bias_col).astype(o_ref.dtype)

    out3 = pl.pallas_call(
        kernel,
        out_shape=jax.ShapeDtypeStruct((N, Cout, P), out_dtype),
        grid=grid,
        in_specs=[
            pl.BlockSpec((s, s * Cout, Cin), lambda b, i: (0, 0, 0)),        # weights
            pl.BlockSpec((s, Ws, Wo), lambda b, i: (0, 0, 0)),               # selection
            pl.BlockSpec((Cout, 1), lambda b, i: (0, 0)),                    # bias
            pl.BlockSpec((Nb, Cin, th * s, Ws), lambda b, i: (b, 0, i, 0)),  # x (native NCHW)
        ],
        out_specs=pl.BlockSpec((Nb, Cout, th * Wo), lambda b, i: (b, 0, i)),
        compiler_params=pltpu.CompilerParams(
            dimension_semantics=("parallel", "parallel"),
            vmem_limit_bytes=int(vmem_limit),
        ),
    )(w1, sel, b2, x)

    # (N, Cout, Ho*Wo) -> (N, Cout, Ho, Wo): pure row-major reshape, free.
    return out3.reshape(N, Cout, Ho, Wo)


if __name__ == "__main__":
    # Small shapes consistent with the module's forward.
    N, Cin, H, W = 2, 4, 16, 16
    Cout, s = 8, 2

    key = jax.random.PRNGKey(0)
    k_x, k_w, k_b = jax.random.split(key, 3)

    x = jax.random.normal(k_x, (N, Cin, H, W), dtype=jnp.float32)
    # PyTorch-like init: U(-1/sqrt(fan_in), 1/sqrt(fan_in))
    fan_in = Cin * s * s
    bound = 1.0 / np.sqrt(fan_in)
    weight = jax.random.uniform(k_w, (Cout, Cin, s, s), jnp.float32, -bound, bound)
    bias = jax.random.uniform(k_b, (Cout,), jnp.float32, -bound, bound)

    out = downsample_block(x, weight, bias, s)
    out = jax.block_until_ready(out)
    assert out.shape == (N, Cout, H // s, W // s)

    # Reference: f32 XLA conv at highest precision.
    ref = jax.lax.conv_general_dilated(
        x, weight, window_strides=(s, s), padding="VALID",
        dimension_numbers=("NCHW", "OIHW", "NCHW"),
        precision=lax.Precision.HIGHEST,
        preferred_element_type=jnp.float32,
    ) + bias.reshape(1, Cout, 1, 1)

    np.testing.assert_allclose(np.asarray(out), np.asarray(ref),
                               rtol=5e-3, atol=5e-3)
    print("KERNEL_OK")
</pallas_src>

<mosaic_0001>
module attributes {stable_mosaic.version = 11 : i64} {
  func.func @kernel(%arg0: i32, %arg1: i32, %arg2: memref<2x16x4xf32, #tpu.memory_space<vmem>>, %arg3: memref<2x16x8xf32, #tpu.memory_space<vmem>>, %arg4: memref<8x1xf32, #tpu.memory_space<vmem>>, %arg5: memref<1x4x16x16xf32, #tpu.memory_space<vmem>>, %arg6: memref<1x8x64xf32, #tpu.memory_space<vmem>>) attributes {dimension_semantics = [#tpu.dimension_semantics<parallel>, #tpu.dimension_semantics<parallel>], iteration_bounds = array<i64: 2, 1>, scalar_prefetch = 0 : i64, scratch_operands = 0 : i64, tpu.core_type = #tpu.core_type<tc>, window_params = [{pipeline_mode = #tpu.pipeline_mode<synchronous>, transform_indices = @transform_0, window_bounds = array<i64: 2, 16, 4>}, {pipeline_mode = #tpu.pipeline_mode<synchronous>, transform_indices = @transform_1, window_bounds = array<i64: 2, 16, 8>}, {pipeline_mode = #tpu.pipeline_mode<synchronous>, transform_indices = @transform_2, window_bounds = array<i64: 8, 1>}, {transform_indices = @transform_3, window_bounds = array<i64: 1, 4, 16, 16>}, {transform_indices = @transform_4, window_bounds = array<i64: 1, 8, 64>}]} {
    %c0 = arith.constant 0 : index
    %c0_0 = arith.constant 0 : index
    %0 = vector.load %arg4[%c0, %c0_0] : memref<8x1xf32, #tpu.memory_space<vmem>>, vector<8x1xf32>
    %c0_1 = arith.constant 0 : index
    %c0_2 = arith.constant 0 : index
    %c0_3 = arith.constant 0 : index
    %c0_4 = arith.constant 0 : index
    %1 = vector.load %arg5[%c0_1, %c0_2, %c0_3, %c0_4] : memref<1x4x16x16xf32, #tpu.memory_space<vmem>>, vector<1x4x1x16xf32>
    %2 = vector.shape_cast %1 : vector<1x4x1x16xf32> to vector<4x16xf32>
    %c0_5 = arith.constant 0 : index
    %c0_6 = arith.constant 0 : index
    %c0_7 = arith.constant 0 : index
    %3 = vector.load %arg2[%c0_5, %c0_6, %c0_7] : memref<2x16x4xf32, #tpu.memory_space<vmem>>, vector<1x16x4xf32>
    %4 = vector.shape_cast %3 : vector<1x16x4xf32> to vector<16x4xf32>
    %cst = arith.constant dense<0.000000e+00> : vector<16x16xf32>
    %5 = tpu.matmul %4, %2, %cst {dimension_numbers = #tpu.dot_dimension_numbers<[1], [0], [0], [1], [0, 0, 1, 1], [], []>, precision = #tpu.contract_precision<fp32>} : vector<16x4xf32>, vector<4x16xf32>, vector<16x16xf32> -> vector<16x16xf32>
    %c0_8 = arith.constant 0 : index
    %c0_9 = arith.constant 0 : index
    %c1 = arith.constant 1 : index
    %c0_10 = arith.constant 0 : index
    %6 = vector.load %arg5[%c0_8, %c0_9, %c1, %c0_10] : memref<1x4x16x16xf32, #tpu.memory_space<vmem>>, vector<1x4x1x16xf32>
    %7 = vector.shape_cast %6 : vector<1x4x1x16xf32> to vector<4x16xf32>
    %c1_11 = arith.constant 1 : index
    %c0_12 = arith.constant 0 : index
    %c0_13 = arith.constant 0 : index
    %8 = vector.load %arg2[%c1_11, %c0_12, %c0_13] : memref<2x16x4xf32, #tpu.memory_space<vmem>>, vector<1x16x4xf32>
    %9 = vector.shape_cast %8 : vector<1x16x4xf32> to vector<16x4xf32>
    %cst_14 = arith.constant dense<0.000000e+00> : vector<16x16xf32>
    %10 = tpu.matmul %9, %7, %cst_14 {dimension_numbers = #tpu.dot_dimension_numbers<[1], [0], [0], [1], [0, 0, 1, 1], [], []>, precision = #tpu.contract_precision<fp32>} : vector<16x4xf32>, vector<4x16xf32>, vector<16x16xf32> -> vector<16x16xf32>
    %11 = arith.addf %5, %10 : vector<16x16xf32>
    %12 = vector.extract_strided_slice %11 {offsets = [0, 0], sizes = [8, 16], strides = [1, 1]} : vector<16x16xf32> to vector<8x16xf32>
    %c0_15 = arith.constant 0 : index
    %c0_16 = arith.constant 0 : index
    %c0_17 = arith.constant 0 : index
    %13 = vector.load %arg3[%c0_15, %c0_16, %c0_17] : memref<2x16x8xf32, #tpu.memory_space<vmem>>, vector<1x16x8xf32>
    %14 = vector.shape_cast %13 : vector<1x16x8xf32> to vector<16x8xf32>
    %cst_18 = arith.constant dense<0.000000e+00> : vector<8x8xf32>
    %15 = tpu.matmul %12, %14, %cst_18 {dimension_numbers = #tpu.dot_dimension_numbers<[1], [0], [0], [1], [0, 0, 1, 1], [], []>, precision = #tpu.contract_precision<fp32>} : vector<8x16xf32>, vector<16x8xf32>, vector<8x8xf32> -> vector<8x8xf32>
    %16 = vector.extract_strided_slice %11 {offsets = [8, 0], sizes = [8, 16], strides = [1, 1]} : vector<16x16xf32> to vector<8x16xf32>
    %c1_19 = arith.constant 1 : index
    %c0_20 = arith.constant 0 : index
    %c0_21 = arith.constant 0 : index
    %17 = vector.load %arg3[%c1_19, %c0_20, %c0_21] : memref<2x16x8xf32, #tpu.memory_space<vmem>>, vector<1x16x8xf32>
    %18 = vector.shape_cast %17 : vector<1x16x8xf32> to vector<16x8xf32>
    %cst_22 = arith.constant dense<0.000000e+00> : vector<8x8xf32>
    %19 = tpu.matmul %16, %18, %cst_22 {dimension_numbers = #tpu.dot_dimension_numbers<[1], [0], [0], [1], [0, 0, 1, 1], [], []>, precision = #tpu.contract_precision<fp32>} : vector<8x16xf32>, vector<16x8xf32>, vector<8x8xf32> -> vector<8x8xf32>
    %20 = arith.addf %15, %19 : vector<8x8xf32>
    %21 = vector.broadcast %0 : vector<8x1xf32> to vector<8x8xf32>
    %22 = arith.addf %20, %21 : vector<8x8xf32>
    %c0_23 = arith.constant 0 : index
    %c0_24 = arith.constant 0 : index
    %c0_25 = arith.constant 0 : index
    %23 = vector.load %arg6[%c0_23, %c0_24, %c0_25] : memref<1x8x64xf32, #tpu.memory_space<vmem>>, vector<1x8x8xf32>
    %24 = vector.shape_cast %23 : vector<1x8x8xf32> to vector<8x8xf32>
    %25 = vector.shape_cast %22 : vector<8x8xf32> to vector<1x8x8xf32>
    tpu.vector_store %arg6[%c0_23, %c0_24, %c0_25], %25 {strides = array<i32>} : memref<1x8x64xf32, #tpu.memory_space<vmem>>, vector<1x8x8xf32>,
    %c0_26 = arith.constant 0 : index
    %c0_27 = arith.constant 0 : index
    %c2 = arith.constant 2 : index
    %c0_28 = arith.constant 0 : index
    %26 = vector.load %arg5[%c0_26, %c0_27, %c2, %c0_28] : memref<1x4x16x16xf32, #tpu.memory_space<vmem>>, vector<1x4x1x16xf32>
    %27 = vector.shape_cast %26 : vector<1x4x1x16xf32> to vector<4x16xf32>
    %c0_29 = arith.constant 0 : index
    %c0_30 = arith.constant 0 : index
    %c0_31 = arith.constant 0 : index
    %28 = vector.load %arg2[%c0_29, %c0_30, %c0_31] : memref<2x16x4xf32, #tpu.memory_space<vmem>>, vector<1x16x4xf32>
    %29 = vector.shape_cast %28 : vector<1x16x4xf32> to vector<16x4xf32>
    %cst_32 = arith.constant dense<0.000000e+00> : vector<16x16xf32>
    %30 = tpu.matmul %29, %27, %cst_32 {dimension_numbers = #tpu.dot_dimension_numbers<[1], [0], [0], [1], [0, 0, 1, 1], [], []>, precision = #tpu.contract_precision<fp32>} : vector<16x4xf32>, vector<4x16xf32>, vector<16x16xf32> -> vector<16x16xf32>
    %c0_33 = arith.constant 0 : index
    %c0_34 = arith.constant 0 : index
    %c3 = arith.constant 3 : index
    %c0_35 = arith.constant 0 : index
    %31 = vector.load %arg5[%c0_33, %c0_34, %c3, %c0_35] : memref<1x4x16x16xf32, #tpu.memory_space<vmem>>, vector<1x4x1x16xf32>
    %32 = vector.shape_cast %31 : vector<1x4x1x16xf32> to vector<4x16xf32>
    %c1_36 = arith.constant 1 : index
    %c0_37 = arith.constant 0 : index
    %c0_38 = arith.constant 0 : index
    %33 = vector.load %arg2[%c1_36, %c0_37, %c0_38] : memref<2x16x4xf32, #tpu.memory_space<vmem>>, vector<1x16x4xf32>
    %34 = vector.shape_cast %33 : vector<1x16x4xf32> to vector<16x4xf32>
    %cst_39 = arith.constant dense<0.000000e+00> : vector<16x16xf32>
    %35 = tpu.matmul %34, %32, %cst_39 {dimension_numbers = #tpu.dot_dimension_numbers<[1], [0], [0], [1], [0, 0, 1, 1], [], []>, precision = #tpu.contract_precision<fp32>} : vector<16x4xf32>, vector<4x16xf32>, vector<16x16xf32> -> vector<16x16xf32>
    %36 = arith.addf %30, %35 : vector<16x16xf32>
    %37 = vector.extract_strided_slice %36 {offsets = [0, 0], sizes = [8, 16], strides = [1, 1]} : vector<16x16xf32> to vector<8x16xf32>
    %c0_40 = arith.constant 0 : index
    %c0_41 = arith.constant 0 : index
    %c0_42 = arith.constant 0 : index
    %38 = vector.load %arg3[%c0_40, %c0_41, %c0_42] : memref<2x16x8xf32, #tpu.memory_space<vmem>>, vector<1x16x8xf32>
    %39 = vector.shape_cast %38 : vector<1x16x8xf32> to vector<16x8xf32>
    %cst_43 = arith.constant dense<0.000000e+00> : vector<8x8xf32>
    %40 = tpu.matmul %37, %39, %cst_43 {dimension_numbers = #tpu.dot_dimension_numbers<[1], [0], [0], [1], [0, 0, 1, 1], [], []>, precision = #tpu.contract_precision<fp32>} : vector<8x16xf32>, vector<16x8xf32>, vector<8x8xf32> -> vector<8x8xf32>
    %41 = vector.extract_strided_slice %36 {offsets = [8, 0], sizes = [8, 16], strides = [1, 1]} : vector<16x16xf32> to vector<8x16xf32>
    %c1_44 = arith.constant 1 : index
    %c0_45 = arith.constant 0 : index
    %c0_46 = arith.constant 0 : index
    %42 = vector.load %arg3[%c1_44, %c0_45, %c0_46] : memref<2x16x8xf32, #tpu.memory_space<vmem>>, vector<1x16x8xf32>
    %43 = vector.shape_cast %42 : vector<1x16x8xf32> to vector<16x8xf32>
    %cst_47 = arith.constant dense<0.000000e+00> : vector<8x8xf32>
    %44 = tpu.matmul %41, %43, %cst_47 {dimension_numbers = #tpu.dot_dimension_numbers<[1], [0], [0], [1], [0, 0, 1, 1], [], []>, precision = #tpu.contract_precision<fp32>} : vector<8x16xf32>, vector<16x8xf32>, vector<8x8xf32> -> vector<8x8xf32>
    %45 = arith.addf %40, %44 : vector<8x8xf32>
    %46 = vector.broadcast %0 : vector<8x1xf32> to vector<8x8xf32>
    %47 = arith.addf %45, %46 : vector<8x8xf32>
    %c0_48 = arith.constant 0 : index
    %c0_49 = arith.constant 0 : index
    %c8 = arith.constant 8 : index
    %48 = vector.load %arg6[%c0_48, %c0_49, %c8] : memref<1x8x64xf32, #tpu.memory_space<vmem>>, vector<1x8x8xf32>
    %49 = vector.shape_cast %48 : vector<1x8x8xf32> to vector<8x8xf32>
    %50 = vector.shape_cast %47 : vector<8x8xf32> to vector<1x8x8xf32>
    tpu.vector_store %arg6[%c0_48, %c0_49, %c8], %50 {strides = array<i32>} : memref<1x8x64xf32, #tpu.memory_space<vmem>>, vector<1x8x8xf32>,
    %c0_50 = arith.constant 0 : index
    %c0_51 = arith.constant 0 : index
    %c4 = arith.constant 4 : index
    %c0_52 = arith.constant 0 : index
    %51 = vector.load %arg5[%c0_50, %c0_51, %c4, %c0_52] : memref<1x4x16x16xf32, #tpu.memory_space<vmem>>, vector<1x4x1x16xf32>
    %52 = vector.shape_cast %51 : vector<1x4x1x16xf32> to vector<4x16xf32>
    %c0_53 = arith.constant 0 : index
    %c0_54 = arith.constant 0 : index
    %c0_55 = arith.constant 0 : index
    %53 = vector.load %arg2[%c0_53, %c0_54, %c0_55] : memref<2x16x4xf32, #tpu.memory_space<vmem>>, vector<1x16x4xf32>
    %54 = vector.shape_cast %53 : vector<1x16x4xf32> to vector<16x4xf32>
    %cst_56 = arith.constant dense<0.000000e+00> : vector<16x16xf32>
    %55 = tpu.matmul %54, %52, %cst_56 {dimension_numbers = #tpu.dot_dimension_numbers<[1], [0], [0], [1], [0, 0, 1, 1], [], []>, precision = #tpu.contract_precision<fp32>} : vector<16x4xf32>, vector<4x16xf32>, vector<16x16xf32> -> vector<16x16xf32>
    %c0_57 = arith.constant 0 : index
    %c0_58 = arith.constant 0 : index
    %c5 = arith.constant 5 : index
    %c0_59 = arith.constant 0 : index
    %56 = vector.load %arg5[%c0_57, %c0_58, %c5, %c0_59] : memref<1x4x16x16xf32, #tpu.memory_space<vmem>>, vector<1x4x1x16xf32>
    %57 = vector.shape_cast %56 : vector<1x4x1x16xf32> to vector<4x16xf32>
    %c1_60 = arith.constant 1 : index
    %c0_61 = arith.constant 0 : index
    %c0_62 = arith.constant 0 : index
    %58 = vector.load %arg2[%c1_60, %c0_61, %c0_62] : memref<2x16x4xf32, #tpu.memory_space<vmem>>, vector<1x16x4xf32>
    %59 = vector.shape_cast %58 : vector<1x16x4xf32> to vector<16x4xf32>
    %cst_63 = arith.constant dense<0.000000e+00> : vector<16x16xf32>
    %60 = tpu.matmul %59, %57, %cst_63 {dimension_numbers = #tpu.dot_dimension_numbers<[1], [0], [0], [1], [0, 0, 1, 1], [], []>, precision = #tpu.contract_precision<fp32>} : vector<16x4xf32>, vector<4x16xf32>, vector<16x16xf32> -> vector<16x16xf32>
    %61 = arith.addf %55, %60 : vector<16x16xf32>
    %62 = vector.extract_strided_slice %61 {offsets = [0, 0], sizes = [8, 16], strides = [1, 1]} : vector<16x16xf32> to vector<8x16xf32>
    %c0_64 = arith.constant 0 : index
    %c0_65 = arith.constant 0 : index
    %c0_66 = arith.constant 0 : index
    %63 = vector.load %arg3[%c0_64, %c0_65, %c0_66] : memref<2x16x8xf32, #tpu.memory_space<vmem>>, vector<1x16x8xf32>
    %64 = vector.shape_cast %63 : vector<1x16x8xf32> to vector<16x8xf32>
    %cst_67 = arith.constant dense<0.000000e+00> : vector<8x8xf32>
    %65 = tpu.matmul %62, %64, %cst_67 {dimension_numbers = #tpu.dot_dimension_numbers<[1], [0], [0], [1], [0, 0, 1, 1], [], []>, precision = #tpu.contract_precision<fp32>} : vector<8x16xf32>, vector<16x8xf32>, vector<8x8xf32> -> vector<8x8xf32>
    %66 = vector.extract_strided_slice %61 {offsets = [8, 0], sizes = [8, 16], strides = [1, 1]} : vector<16x16xf32> to vector<8x16xf32>
    %c1_68 = arith.constant 1 : index
    %c0_69 = arith.constant 0 : index
    %c0_70 = arith.constant 0 : index
    %67 = vector.load %arg3[%c1_68, %c0_69, %c0_70] : memref<2x16x8xf32, #tpu.memory_space<vmem>>, vector<1x16x8xf32>
    %68 = vector.shape_cast %67 : vector<1x16x8xf32> to vector<16x8xf32>
    %cst_71 = arith.constant dense<0.000000e+00> : vector<8x8xf32>
    %69 = tpu.matmul %66, %68, %cst_71 {dimension_numbers = #tpu.dot_dimension_numbers<[1], [0], [0], [1], [0, 0, 1, 1], [], []>, precision = #tpu.contract_precision<fp32>} : vector<8x16xf32>, vector<16x8xf32>, vector<8x8xf32> -> vector<8x8xf32>
    %70 = arith.addf %65, %69 : vector<8x8xf32>
    %71 = vector.broadcast %0 : vector<8x1xf32> to vector<8x8xf32>
    %72 = arith.addf %70, %71 : vector<8x8xf32>
    %c0_72 = arith.constant 0 : index
    %c0_73 = arith.constant 0 : index
    %c16 = arith.constant 16 : index
    %73 = vector.load %arg6[%c0_72, %c0_73, %c16] : memref<1x8x64xf32, #tpu.memory_space<vmem>>, vector<1x8x8xf32>
    %74 = vector.shape_cast %73 : vector<1x8x8xf32> to vector<8x8xf32>
    %75 = vector.shape_cast %72 : vector<8x8xf32> to vector<1x8x8xf32>
    tpu.vector_store %arg6[%c0_72, %c0_73, %c16], %75 {strides = array<i32>} : memref<1x8x64xf32, #tpu.memory_space<vmem>>, vector<1x8x8xf32>,
    %c0_74 = arith.constant 0 : index
    %c0_75 = arith.constant 0 : index
    %c6 = arith.constant 6 : index
    %c0_76 = arith.constant 0 : index
    %76 = vector.load %arg5[%c0_74, %c0_75, %c6, %c0_76] : memref<1x4x16x16xf32, #tpu.memory_space<vmem>>, vector<1x4x1x16xf32>
    %77 = vector.shape_cast %76 : vector<1x4x1x16xf32> to vector<4x16xf32>
    %c0_77 = arith.constant 0 : index
    %c0_78 = arith.constant 0 : index
    %c0_79 = arith.constant 0 : index
    %78 = vector.load %arg2[%c0_77, %c0_78, %c0_79] : memref<2x16x4xf32, #tpu.memory_space<vmem>>, vector<1x16x4xf32>
    %79 = vector.shape_cast %78 : vector<1x16x4xf32> to vector<16x4xf32>
    %cst_80 = arith.constant dense<0.000000e+00> : vector<16x16xf32>
    %80 = tpu.matmul %79, %77, %cst_80 {dimension_numbers = #tpu.dot_dimension_numbers<[1], [0], [0], [1], [0, 0, 1, 1], [], []>, precision = #tpu.contract_precision<fp32>} : vector<16x4xf32>, vector<4x16xf32>, vector<16x16xf32> -> vector<16x16xf32>
    %c0_81 = arith.constant 0 : index
    %c0_82 = arith.constant 0 : index
    %c7 = arith.constant 7 : index
    %c0_83 = arith.constant 0 : index
    %81 = vector.load %arg5[%c0_81, %c0_82, %c7, %c0_83] : memref<1x4x16x16xf32, #tpu.memory_space<vmem>>, vector<1x4x1x16xf32>
    %82 = vector.shape_cast %81 : vector<1x4x1x16xf32> to vector<4x16xf32>
    %c1_84 = arith.constant 1 : index
    %c0_85 = arith.constant 0 : index
    %c0_86 = arith.constant 0 : index
    %83 = vector.load %arg2[%c1_84, %c0_85, %c0_86] : memref<2x16x4xf32, #tpu.memory_space<vmem>>, vector<1x16x4xf32>
    %84 = vector.shape_cast %83 : vector<1x16x4xf32> to vector<16x4xf32>
    %cst_87 = arith.constant dense<0.000000e+00> : vector<16x16xf32>
    %85 = tpu.matmul %84, %82, %cst_87 {dimension_numbers = #tpu.dot_dimension_numbers<[1], [0], [0], [1], [0, 0, 1, 1], [], []>, precision = #tpu.contract_precision<fp32>} : vector<16x4xf32>, vector<4x16xf32>, vector<16x16xf32> -> vector<16x16xf32>
    %86 = arith.addf %80, %85 : vector<16x16xf32>
    %87 = vector.extract_strided_slice %86 {offsets = [0, 0], sizes = [8, 16], strides = [1, 1]} : vector<16x16xf32> to vector<8x16xf32>
    %c0_88 = arith.constant 0 : index
    %c0_89 = arith.constant 0 : index
    %c0_90 = arith.constant 0 : index
    %88 = vector.load %arg3[%c0_88, %c0_89, %c0_90] : memref<2x16x8xf32, #tpu.memory_space<vmem>>, vector<1x16x8xf32>
    %89 = vector.shape_cast %88 : vector<1x16x8xf32> to vector<16x8xf32>
    %cst_91 = arith.constant dense<0.000000e+00> : vector<8x8xf32>
    %90 = tpu.matmul %87, %89, %cst_91 {dimension_numbers = #tpu.dot_dimension_numbers<[1], [0], [0], [1], [0, 0, 1, 1], [], []>, precision = #tpu.contract_precision<fp32>} : vector<8x16xf32>, vector<16x8xf32>, vector<8x8xf32> -> vector<8x8xf32>
    %91 = vector.extract_strided_slice %86 {offsets = [8, 0], sizes = [8, 16], strides = [1, 1]} : vector<16x16xf32> to vector<8x16xf32>
    %c1_92 = arith.constant 1 : index
    %c0_93 = arith.constant 0 : index
    %c0_94 = arith.constant 0 : index
    %92 = vector.load %arg3[%c1_92, %c0_93, %c0_94] : memref<2x16x8xf32, #tpu.memory_space<vmem>>, vector<1x16x8xf32>
    %93 = vector.shape_cast %92 : vector<1x16x8xf32> to vector<16x8xf32>
    %cst_95 = arith.constant dense<0.000000e+00> : vector<8x8xf32>
    %94 = tpu.matmul %91, %93, %cst_95 {dimension_numbers = #tpu.dot_dimension_numbers<[1], [0], [0], [1], [0, 0, 1, 1], [], []>, precision = #tpu.contract_precision<fp32>} : vector<8x16xf32>, vector<16x8xf32>, vector<8x8xf32> -> vector<8x8xf32>
    %95 = arith.addf %90, %94 : vector<8x8xf32>
    %96 = vector.broadcast %0 : vector<8x1xf32> to vector<8x8xf32>
    %97 = arith.addf %95, %96 : vector<8x8xf32>
    %c0_96 = arith.constant 0 : index
    %c0_97 = arith.constant 0 : index
    %c24 = arith.constant 24 : index
    %98 = vector.load %arg6[%c0_96, %c0_97, %c24] : memref<1x8x64xf32, #tpu.memory_space<vmem>>, vector<1x8x8xf32>
    %99 = vector.shape_cast %98 : vector<1x8x8xf32> to vector<8x8xf32>
    %100 = vector.shape_cast %97 : vector<8x8xf32> to vector<1x8x8xf32>
    tpu.vector_store %arg6[%c0_96, %c0_97, %c24], %100 {strides = array<i32>} : memref<1x8x64xf32, #tpu.memory_space<vmem>>, vector<1x8x8xf32>,
    %c0_98 = arith.constant 0 : index
    %c0_99 = arith.constant 0 : index
    %c8_100 = arith.constant 8 : index
    %c0_101 = arith.constant 0 : index
    %101 = vector.load %arg5[%c0_98, %c0_99, %c8_100, %c0_101] : memref<1x4x16x16xf32, #tpu.memory_space<vmem>>, vector<1x4x1x16xf32>
    %102 = vector.shape_cast %101 : vector<1x4x1x16xf32> to vector<4x16xf32>
    %c0_102 = arith.constant 0 : index
    %c0_103 = arith.constant 0 : index
    %c0_104 = arith.constant 0 : index
    %103 = vector.load %arg2[%c0_102, %c0_103, %c0_104] : memref<2x16x4xf32, #tpu.memory_space<vmem>>, vector<1x16x4xf32>
    %104 = vector.shape_cast %103 : vector<1x16x4xf32> to vector<16x4xf32>
    %cst_105 = arith.constant dense<0.000000e+00> : vector<16x16xf32>
    %105 = tpu.matmul %104, %102, %cst_105 {dimension_numbers = #tpu.dot_dimension_numbers<[1], [0], [0], [1], [0, 0, 1, 1], [], []>, precision = #tpu.contract_precision<fp32>} : vector<16x4xf32>, vector<4x16xf32>, vector<16x16xf32> -> vector<16x16xf32>
    %c0_106 = arith.constant 0 : index
    %c0_107 = arith.constant 0 : index
    %c9 = arith.constant 9 : index
    %c0_108 = arith.constant 0 : index
    %106 = vector.load %arg5[%c0_106, %c0_107, %c9, %c0_108] : memref<1x4x16x16xf32, #tpu.memory_space<vmem>>, vector<1x4x1x16xf32>
    %107 = vector.shape_cast %106 : vector<1x4x1x16xf32> to vector<4x16xf32>
    %c1_109 = arith.constant 1 : index
    %c0_110 = arith.constant 0 : index
    %c0_111 = arith.constant 0 : index
    %108 = vector.load %arg2[%c1_109, %c0_110, %c0_111] : memref<2x16x4xf32, #tpu.memory_space<vmem>>, vector<1x16x4xf32>
    %109 = vector.shape_cast %108 : vector<1x16x4xf32> to vector<16x4xf32>
    %cst_112 = arith.constant dense<0.000000e+00> : vector<16x16xf32>
    %110 = tpu.matmul %109, %107, %cst_112 {dimension_numbers = #tpu.dot_dimension_numbers<[1], [0], [0], [1], [0, 0, 1, 1], [], []>, precision = #tpu.contract_precision<fp32>} : vector<16x4xf32>, vector<4x16xf32>, vector<16x16xf32> -> vector<16x16xf32>
    %111 = arith.addf %105, %110 : vector<16x16xf32>
    %112 = vector.extract_strided_slice %111 {offsets = [0, 0], sizes = [8, 16], strides = [1, 1]} : vector<16x16xf32> to vector<8x16xf32>
    %c0_113 = arith.constant 0 : index
    %c0_114 = arith.constant 0 : index
    %c0_115 = arith.constant 0 : index
    %113 = vector.load %arg3[%c0_113, %c0_114, %c0_115] : memref<2x16x8xf32, #tpu.memory_space<vmem>>, vector<1x16x8xf32>
    %114 = vector.shape_cast %113 : vector<1x16x8xf32> to vector<16x8xf32>
    %cst_116 = arith.constant dense<0.000000e+00> : vector<8x8xf32>
    %115 = tpu.matmul %112, %114, %cst_116 {dimension_numbers = #tpu.dot_dimension_numbers<[1], [0], [0], [1], [0, 0, 1, 1], [], []>, precision = #tpu.contract_precision<fp32>} : vector<8x16xf32>, vector<16x8xf32>, vector<8x8xf32> -> vector<8x8xf32>
    %116 = vector.extract_strided_slice %111 {offsets = [8, 0], sizes = [8, 16], strides = [1, 1]} : vector<16x16xf32> to vector<8x16xf32>
    %c1_117 = arith.constant 1 : index
    %c0_118 = arith.constant 0 : index
    %c0_119 = arith.constant 0 : index
    %117 = vector.load %arg3[%c1_117, %c0_118, %c0_119] : memref<2x16x8xf32, #tpu.memory_space<vmem>>, vector<1x16x8xf32>
    %118 = vector.shape_cast %117 : vector<1x16x8xf32> to vector<16x8xf32>
    %cst_120 = arith.constant dense<0.000000e+00> : vector<8x8xf32>
    %119 = tpu.matmul %116, %118, %cst_120 {dimension_numbers = #tpu.dot_dimension_numbers<[1], [0], [0], [1], [0, 0, 1, 1], [], []>, precision = #tpu.contract_precision<fp32>} : vector<8x16xf32>, vector<16x8xf32>, vector<8x8xf32> -> vector<8x8xf32>
    %120 = arith.addf %115, %119 : vector<8x8xf32>
    %121 = vector.broadcast %0 : vector<8x1xf32> to vector<8x8xf32>
    %122 = arith.addf %120, %121 : vector<8x8xf32>
    %c0_121 = arith.constant 0 : index
    %c0_122 = arith.constant 0 : index
    %c32 = arith.constant 32 : index
    %123 = vector.load %arg6[%c0_121, %c0_122, %c32] : memref<1x8x64xf32, #tpu.memory_space<vmem>>, vector<1x8x8xf32>
    %124 = vector.shape_cast %123 : vector<1x8x8xf32> to vector<8x8xf32>
    %125 = vector.shape_cast %122 : vector<8x8xf32> to vector<1x8x8xf32>
    tpu.vector_store %arg6[%c0_121, %c0_122, %c32], %125 {strides = array<i32>} : memref<1x8x64xf32, #tpu.memory_space<vmem>>, vector<1x8x8xf32>,
    %c0_123 = arith.constant 0 : index
    %c0_124 = arith.constant 0 : index
    %c10 = arith.constant 10 : index
    %c0_125 = arith.constant 0 : index
    %126 = vector.load %arg5[%c0_123, %c0_124, %c10, %c0_125] : memref<1x4x16x16xf32, #tpu.memory_space<vmem>>, vector<1x4x1x16xf32>
    %127 = vector.shape_cast %126 : vector<1x4x1x16xf32> to vector<4x16xf32>
    %c0_126 = arith.constant 0 : index
    %c0_127 = arith.constant 0 : index
    %c0_128 = arith.constant 0 : index
    %128 = vector.load %arg2[%c0_126, %c0_127, %c0_128] : memref<2x16x4xf32, #tpu.memory_space<vmem>>, vector<1x16x4xf32>
    %129 = vector.shape_cast %128 : vector<1x16x4xf32> to vector<16x4xf32>
    %cst_129 = arith.constant dense<0.000000e+00> : vector<16x16xf32>
    %130 = tpu.matmul %129, %127, %cst_129 {dimension_numbers = #tpu.dot_dimension_numbers<[1], [0], [0], [1], [0, 0, 1, 1], [], []>, precision = #tpu.contract_precision<fp32>} : vector<16x4xf32>, vector<4x16xf32>, vector<16x16xf32> -> vector<16x16xf32>
    %c0_130 = arith.constant 0 : index
    %c0_131 = arith.constant 0 : index
    %c11 = arith.constant 11 : index
    %c0_132 = arith.constant 0 : index
    %131 = vector.load %arg5[%c0_130, %c0_131, %c11, %c0_132] : memref<1x4x16x16xf32, #tpu.memory_space<vmem>>, vector<1x4x1x16xf32>
    %132 = vector.shape_cast %131 : vector<1x4x1x16xf32> to vector<4x16xf32>
    %c1_133 = arith.constant 1 : index
    %c0_134 = arith.constant 0 : index
    %c0_135 = arith.constant 0 : index
    %133 = vector.load %arg2[%c1_133, %c0_134, %c0_135] : memref<2x16x4xf32, #tpu.memory_space<vmem>>, vector<1x16x4xf32>
    %134 = vector.shape_cast %133 : vector<1x16x4xf32> to vector<16x4xf32>
    %cst_136 = arith.constant dense<0.000000e+00> : vector<16x16xf32>
    %135 = tpu.matmul %134, %132, %cst_136 {dimension_numbers = #tpu.dot_dimension_numbers<[1], [0], [0], [1], [0, 0, 1, 1], [], []>, precision = #tpu.contract_precision<fp32>} : vector<16x4xf32>, vector<4x16xf32>, vector<16x16xf32> -> vector<16x16xf32>
    %136 = arith.addf %130, %135 : vector<16x16xf32>
    %137 = vector.extract_strided_slice %136 {offsets = [0, 0], sizes = [8, 16], strides = [1, 1]} : vector<16x16xf32> to vector<8x16xf32>
    %c0_137 = arith.constant 0 : index
    %c0_138 = arith.constant 0 : index
    %c0_139 = arith.constant 0 : index
    %138 = vector.load %arg3[%c0_137, %c0_138, %c0_139] : memref<2x16x8xf32, #tpu.memory_space<vmem>>, vector<1x16x8xf32>
    %139 = vector.shape_cast %138 : vector<1x16x8xf32> to vector<16x8xf32>
    %cst_140 = arith.constant dense<0.000000e+00> : vector<8x8xf32>
    %140 = tpu.matmul %137, %139, %cst_140 {dimension_numbers = #tpu.dot_dimension_numbers<[1], [0], [0], [1], [0, 0, 1, 1], [], []>, precision = #tpu.contract_precision<fp32>} : vector<8x16xf32>, vector<16x8xf32>, vector<8x8xf32> -> vector<8x8xf32>
    %141 = vector.extract_strided_slice %136 {offsets = [8, 0], sizes = [8, 16], strides = [1, 1]} : vector<16x16xf32> to vector<8x16xf32>
    %c1_141 = arith.constant 1 : index
    %c0_142 = arith.constant 0 : index
    %c0_143 = arith.constant 0 : index
    %142 = vector.load %arg3[%c1_141, %c0_142, %c0_143] : memref<2x16x8xf32, #tpu.memory_space<vmem>>, vector<1x16x8xf32>
    %143 = vector.shape_cast %142 : vector<1x16x8xf32> to vector<16x8xf32>
    %cst_144 = arith.constant dense<0.000000e+00> : vector<8x8xf32>
    %144 = tpu.matmul %141, %143, %cst_144 {dimension_numbers = #tpu.dot_dimension_numbers<[1], [0], [0], [1], [0, 0, 1, 1], [], []>, precision = #tpu.contract_precision<fp32>} : vector<8x16xf32>, vector<16x8xf32>, vector<8x8xf32> -> vector<8x8xf32>
    %145 = arith.addf %140, %144 : vector<8x8xf32>
    %146 = vector.broadcast %0 : vector<8x1xf32> to vector<8x8xf32>
    %147 = arith.addf %145, %146 : vector<8x8xf32>
    %c0_145 = arith.constant 0 : index
    %c0_146 = arith.constant 0 : index
    %c40 = arith.constant 40 : index
    %148 = vector.load %arg6[%c0_145, %c0_146, %c40] : memref<1x8x64xf32, #tpu.memory_space<vmem>>, vector<1x8x8xf32>
    %149 = vector.shape_cast %148 : vector<1x8x8xf32> to vector<8x8xf32>
    %150 = vector.shape_cast %147 : vector<8x8xf32> to vector<1x8x8xf32>
    tpu.vector_store %arg6[%c0_145, %c0_146, %c40], %150 {strides = array<i32>} : memref<1x8x64xf32, #tpu.memory_space<vmem>>, vector<1x8x8xf32>,
    %c0_147 = arith.constant 0 : index
    %c0_148 = arith.constant 0 : index
    %c12 = arith.constant 12 : index
    %c0_149 = arith.constant 0 : index
    %151 = vector.load %arg5[%c0_147, %c0_148, %c12, %c0_149] : memref<1x4x16x16xf32, #tpu.memory_space<vmem>>, vector<1x4x1x16xf32>
    %152 = vector.shape_cast %151 : vector<1x4x1x16xf32> to vector<4x16xf32>
    %c0_150 = arith.constant 0 : index
    %c0_151 = arith.constant 0 : index
    %c0_152 = arith.constant 0 : index
    %153 = vector.load %arg2[%c0_150, %c0_151, %c0_152] : memref<2x16x4xf32, #tpu.memory_space<vmem>>, vector<1x16x4xf32>
    %154 = vector.shape_cast %153 : vector<1x16x4xf32> to vector<16x4xf32>
    %cst_153 = arith.constant dense<0.000000e+00> : vector<16x16xf32>
    %155 = tpu.matmul %154, %152, %cst_153 {dimension_numbers = #tpu.dot_dimension_numbers<[1], [0], [0], [1], [0, 0, 1, 1], [], []>, precision = #tpu.contract_precision<fp32>} : vector<16x4xf32>, vector<4x16xf32>, vector<16x16xf32> -> vector<16x16xf32>
    %c0_154 = arith.constant 0 : index
    %c0_155 = arith.constant 0 : index
    %c13 = arith.constant 13 : index
    %c0_156 = arith.constant 0 : index
    %156 = vector.load %arg5[%c0_154, %c0_155, %c13, %c0_156] : memref<1x4x16x16xf32, #tpu.memory_space<vmem>>, vector<1x4x1x16xf32>
    %157 = vector.shape_cast %156 : vector<1x4x1x16xf32> to vector<4x16xf32>
    %c1_157 = arith.constant 1 : index
    %c0_158 = arith.constant 0 : index
    %c0_159 = arith.constant 0 : index
    %158 = vector.load %arg2[%c1_157, %c0_158, %c0_159] : memref<2x16x4xf32, #tpu.memory_space<vmem>>, vector<1x16x4xf32>
    %159 = vector.shape_cast %158 : vector<1x16x4xf32> to vector<16x4xf32>
    %cst_160 = arith.constant dense<0.000000e+00> : vector<16x16xf32>
    %160 = tpu.matmul %159, %157, %cst_160 {dimension_numbers = #tpu.dot_dimension_numbers<[1], [0], [0], [1], [0, 0, 1, 1], [], []>, precision = #tpu.contract_precision<fp32>} : vector<16x4xf32>, vector<4x16xf32>, vector<16x16xf32> -> vector<16x16xf32>
    %161 = arith.addf %155, %160 : vector<16x16xf32>
    %162 = vector.extract_strided_slice %161 {offsets = [0, 0], sizes = [8, 16], strides = [1, 1]} : vector<16x16xf32> to vector<8x16xf32>
    %c0_161 = arith.constant 0 : index
    %c0_162 = arith.constant 0 : index
    %c0_163 = arith.constant 0 : index
    %163 = vector.load %arg3[%c0_161, %c0_162, %c0_163] : memref<2x16x8xf32, #tpu.memory_space<vmem>>, vector<1x16x8xf32>
    %164 = vector.shape_cast %163 : vector<1x16x8xf32> to vector<16x8xf32>
    %cst_164 = arith.constant dense<0.000000e+00> : vector<8x8xf32>
    %165 = tpu.matmul %162, %164, %cst_164 {dimension_numbers = #tpu.dot_dimension_numbers<[1], [0], [0], [1], [0, 0, 1, 1], [], []>, precision = #tpu.contract_precision<fp32>} : vector<8x16xf32>, vector<16x8xf32>, vector<8x8xf32> -> vector<8x8xf32>
    %166 = vector.extract_strided_slice %161 {offsets = [8, 0], sizes = [8, 16], strides = [1, 1]} : vector<16x16xf32> to vector<8x16xf32>
    %c1_165 = arith.constant 1 : index
    %c0_166 = arith.constant 0 : index
    %c0_167 = arith.constant 0 : index
    %167 = vector.load %arg3[%c1_165, %c0_166, %c0_167] : memref<2x16x8xf32, #tpu.memory_space<vmem>>, vector<1x16x8xf32>
    %168 = vector.shape_cast %167 : vector<1x16x8xf32> to vector<16x8xf32>
    %cst_168 = arith.constant dense<0.000000e+00> : vector<8x8xf32>
    %169 = tpu.matmul %166, %168, %cst_168 {dimension_numbers = #tpu.dot_dimension_numbers<[1], [0], [0], [1], [0, 0, 1, 1], [], []>, precision = #tpu.contract_precision<fp32>} : vector<8x16xf32>, vector<16x8xf32>, vector<8x8xf32> -> vector<8x8xf32>
    %170 = arith.addf %165, %169 : vector<8x8xf32>
    %171 = vector.broadcast %0 : vector<8x1xf32> to vector<8x8xf32>
    %172 = arith.addf %170, %171 : vector<8x8xf32>
    %c0_169 = arith.constant 0 : index
    %c0_170 = arith.constant 0 : index
    %c48 = arith.constant 48 : index
    %173 = vector.load %arg6[%c0_169, %c0_170, %c48] : memref<1x8x64xf32, #tpu.memory_space<vmem>>, vector<1x8x8xf32>
    %174 = vector.shape_cast %173 : vector<1x8x8xf32> to vector<8x8xf32>
    %175 = vector.shape_cast %172 : vector<8x8xf32> to vector<1x8x8xf32>
    tpu.vector_store %arg6[%c0_169, %c0_170, %c48], %175 {strides = array<i32>} : memref<1x8x64xf32, #tpu.memory_space<vmem>>, vector<1x8x8xf32>,
    %c0_171 = arith.constant 0 : index
    %c0_172 = arith.constant 0 : index
    %c14 = arith.constant 14 : index
    %c0_173 = arith.constant 0 : index
    %176 = vector.load %arg5[%c0_171, %c0_172, %c14, %c0_173] : memref<1x4x16x16xf32, #tpu.memory_space<vmem>>, vector<1x4x1x16xf32>
    %177 = vector.shape_cast %176 : vector<1x4x1x16xf32> to vector<4x16xf32>
    %c0_174 = arith.constant 0 : index
    %c0_175 = arith.constant 0 : index
    %c0_176 = arith.constant 0 : index
    %178 = vector.load %arg2[%c0_174, %c0_175, %c0_176] : memref<2x16x4xf32, #tpu.memory_space<vmem>>, vector<1x16x4xf32>
    %179 = vector.shape_cast %178 : vector<1x16x4xf32> to vector<16x4xf32>
    %cst_177 = arith.constant dense<0.000000e+00> : vector<16x16xf32>
    %180 = tpu.matmul %179, %177, %cst_177 {dimension_numbers = #tpu.dot_dimension_numbers<[1], [0], [0], [1], [0, 0, 1, 1], [], []>, precision = #tpu.contract_precision<fp32>} : vector<16x4xf32>, vector<4x16xf32>, vector<16x16xf32> -> vector<16x16xf32>
    %c0_178 = arith.constant 0 : index
    %c0_179 = arith.constant 0 : index
    %c15 = arith.constant 15 : index
    %c0_180 = arith.constant 0 : index
    %181 = vector.load %arg5[%c0_178, %c0_179, %c15, %c0_180] : memref<1x4x16x16xf32, #tpu.memory_space<vmem>>, vector<1x4x1x16xf32>
    %182 = vector.shape_cast %181 : vector<1x4x1x16xf32> to vector<4x16xf32>
    %c1_181 = arith.constant 1 : index
    %c0_182 = arith.constant 0 : index
    %c0_183 = arith.constant 0 : index
    %183 = vector.load %arg2[%c1_181, %c0_182, %c0_183] : memref<2x16x4xf32, #tpu.memory_space<vmem>>, vector<1x16x4xf32>
    %184 = vector.shape_cast %183 : vector<1x16x4xf32> to vector<16x4xf32>
    %cst_184 = arith.constant dense<0.000000e+00> : vector<16x16xf32>
    %185 = tpu.matmul %184, %182, %cst_184 {dimension_numbers = #tpu.dot_dimension_numbers<[1], [0], [0], [1], [0, 0, 1, 1], [], []>, precision = #tpu.contract_precision<fp32>} : vector<16x4xf32>, vector<4x16xf32>, vector<16x16xf32> -> vector<16x16xf32>
    %186 = arith.addf %180, %185 : vector<16x16xf32>
    %187 = vector.extract_strided_slice %186 {offsets = [0, 0], sizes = [8, 16], strides = [1, 1]} : vector<16x16xf32> to vector<8x16xf32>
    %c0_185 = arith.constant 0 : index
    %c0_186 = arith.constant 0 : index
    %c0_187 = arith.constant 0 : index
    %188 = vector.load %arg3[%c0_185, %c0_186, %c0_187] : memref<2x16x8xf32, #tpu.memory_space<vmem>>, vector<1x16x8xf32>
    %189 = vector.shape_cast %188 : vector<1x16x8xf32> to vector<16x8xf32>
    %cst_188 = arith.constant dense<0.000000e+00> : vector<8x8xf32>
    %190 = tpu.matmul %187, %189, %cst_188 {dimension_numbers = #tpu.dot_dimension_numbers<[1], [0], [0], [1], [0, 0, 1, 1], [], []>, precision = #tpu.contract_precision<fp32>} : vector<8x16xf32>, vector<16x8xf32>, vector<8x8xf32> -> vector<8x8xf32>
    %191 = vector.extract_strided_slice %186 {offsets = [8, 0], sizes = [8, 16], strides = [1, 1]} : vector<16x16xf32> to vector<8x16xf32>
    %c1_189 = arith.constant 1 : index
    %c0_190 = arith.constant 0 : index
    %c0_191 = arith.constant 0 : index
    %192 = vector.load %arg3[%c1_189, %c0_190, %c0_191] : memref<2x16x8xf32, #tpu.memory_space<vmem>>, vector<1x16x8xf32>
    %193 = vector.shape_cast %192 : vector<1x16x8xf32> to vector<16x8xf32>
    %cst_192 = arith.constant dense<0.000000e+00> : vector<8x8xf32>
    %194 = tpu.matmul %191, %193, %cst_192 {dimension_numbers = #tpu.dot_dimension_numbers<[1], [0], [0], [1], [0, 0, 1, 1], [], []>, precision = #tpu.contract_precision<fp32>} : vector<8x16xf32>, vector<16x8xf32>, vector<8x8xf32> -> vector<8x8xf32>
    %195 = arith.addf %190, %194 : vector<8x8xf32>
    %196 = vector.broadcast %0 : vector<8x1xf32> to vector<8x8xf32>
    %197 = arith.addf %195, %196 : vector<8x8xf32>
    %c0_193 = arith.constant 0 : index
    %c0_194 = arith.constant 0 : index
    %c56 = arith.constant 56 : index
    %198 = vector.load %arg6[%c0_193, %c0_194, %c56] : memref<1x8x64xf32, #tpu.memory_space<vmem>>, vector<1x8x8xf32>
    %199 = vector.shape_cast %198 : vector<1x8x8xf32> to vector<8x8xf32>
    %200 = vector.shape_cast %197 : vector<8x8xf32> to vector<1x8x8xf32>
    tpu.vector_store %arg6[%c0_193, %c0_194, %c56], %200 {strides = array<i32>} : memref<1x8x64xf32, #tpu.memory_space<vmem>>, vector<1x8x8xf32>,
    return
  }
  func.func @transform_0(%arg0: i32, %arg1: i32) -> (i32, i32, i32) {
    %c0_i32 = arith.constant 0 : i32
    %c0_i32_0 = arith.constant 0 : i32
    %c0_i32_1 = arith.constant 0 : i32
    %c0_i32_2 = arith.constant 0 : i32
    return %c0_i32, %c0_i32_0, %c0_i32_1 : i32, i32, i32
  }
  func.func @transform_1(%arg0: i32, %arg1: i32) -> (i32, i32, i32) {
    %c0_i32 = arith.constant 0 : i32
    %c0_i32_0 = arith.constant 0 : i32
    %c0_i32_1 = arith.constant 0 : i32
    %c0_i32_2 = arith.constant 0 : i32
    return %c0_i32, %c0_i32_0, %c0_i32_1 : i32, i32, i32
  }
  func.func @transform_2(%arg0: i32, %arg1: i32) -> (i32, i32) {
    %c0_i32 = arith.constant 0 : i32
    %c0_i32_0 = arith.constant 0 : i32
    %c0_i32_1 = arith.constant 0 : i32
    return %c0_i32, %c0_i32_0 : i32, i32
  }
  func.func @transform_3(%arg0: i32, %arg1: i32) -> (i32, i32, i32, i32) {
    %c0_i32 = arith.constant 0 : i32
    %c0_i32_0 = arith.constant 0 : i32
    %c0_i32_1 = arith.constant 0 : i32
    return %arg0, %c0_i32, %arg1, %c0_i32_0 : i32, i32, i32, i32
  }
  func.func @transform_4(%arg0: i32, %arg1: i32) -> (i32, i32, i32) {
    %c0_i32 = arith.constant 0 : i32
    %c0_i32_0 = arith.constant 0 : i32
    return %arg0, %c0_i32, %arg1 : i32, i32, i32
  }
}

</mosaic_0001>

<bundles_post_ra>
// kernel: tpu_custom_call.1
= control target key start
LH: loop header
LB: loop body
LE: loop exit
PB: predicated region body
PF: predicated region fallthrough
CT: control target
= control target key end

     0   :  { %9 = vsyncpa [#allocation3], 0  ;;  %s19946_s0 = inlined_call_operand.vmem [shape: f32[2,16,4], index: 0, kind: input, shape index: {}]   ;;  %s19947_s1 = inlined_call_operand.vmem [shape: f32[2,16,8], index: 1, kind: input, shape index: {}]   ;;  %s19948_s2 = inlined_call_operand.vmem [shape: f32[8,1], index: 2, kind: input, shape index: {}]   ;;  %s19949_s3 = inlined_call_operand.hbm [shape: f32[2,4,16,16], index: 3, kind: input, shape index: {}]   ;;  %s19950_s4 = inlined_call_operand.hbm [shape: f32[2,8,64], index: 4, kind: output, shape index: {}]  }
   0x1   :  { %11 = vsyncpa [#allocation3 + $0x1], 0 }
   0x2   :  { %12 = vsyncpa [#allocation4], 0 }
   0x3   :  { %14 = vsyncpa [#allocation4 + $0x1], 0  ;;  %s18499_s15 = smov 0   ;;  %s18501_s16 = smov 0  }
   0x4   :  { %s18503_s17 = smov 0   ;;  %s18505_s18 = smov 0  }
   0x5   :  { %s18507_s19 = smov 0   ;;  %s18509_s20 = smov 0  }
   0x6 LB: > { %s16030_s21 = sadd.s32 4294967295, %s18457_s20   ;;  %s16031_s22 = sadd.s32 4294967294, %s18457_s20   ;;  %s18457_s20 = sphi %s18509_s20, %s20_s20   ;;  %s18453_s19 = sphi %s18507_s19, %s19965_s19   ;;  %s18449_s18 = sphi %s18505_s18, %s19964_s18   ;;  %s18445_s17 = sphi %s18503_s17, %s19963_s17   ;;  %s18441_s16 = sphi %s18501_s16, %s19962_s16   ;;  %s18437_s15 = sphi %s18499_s15, %s19961_s15  }
   0x7   : > { %s32_s23 = sadd.s32 1, %s18453_s19  ;;  %s104_s24 = sadd.s32 1, %s18445_s17 }
   0x8   : > { %p34_p0 = scmp.ge.s32.totalorder %s32_s23, 2  ;;  %p111_p1 = scmp.ne.s32.totalorder %s18445_s17, %s18441_s16 }
   0x9   : > { %p112_p2 = scmp.eq.s32.totalorder %s18457_s20, 0  ;;  %p117_p3 = scmp.ne.s32.totalorder %s18441_s16, %s18437_s15 }
   0xa   : > { %s19967_s23 = smov (%p34_p0, %s32_s23), 0  ;;  %p118_p5 = scmp.eq.s32.totalorder %s16030_s21, 0 }
   0xb   : > { %p18540_p4 = por %p112_p2, %p111_p1  ;;  %s99_s26 = ssub.s32 %s18453_s19, %s19967_s23 }
   0xc   : > { %p143_p6 = scmp.eq.s32.totalorder %s16030_s21, 1  ;;  %p102_p7 = scmp.eq.s32.totalorder %s99_s26, 0 }
   0xd   : > { %p18546_p8 = por %p118_p5, %p117_p3  ;;  %p149_p10 = scmp.eq.s32.totalorder %s16031_s22, 1 }
   0xe   : > { %p18550_p9 = por %p143_p6, %p111_p1  ;;  %p18281_p13 = scmp.lt.s32.totalorder %s18457_s20, 2 }
   0xf   : > { %s18555_s29 = scalar_select %p102_p7, %s18445_s17, %s104_s24  }
  0x10   : > { %s19954_s28 = scalar_select %p18550_p9, 1, 0 }
  0x11   : > { %p18557_p11 = por %p149_p10, %p117_p3  ;;  %s178_s5 = sand.u32 1, %s18445_s17  }
  0x12   : > { %s16034_s6 = sshll.u32 %s178_s5, 6  ;;  %s16076_s7 = sshll.u32 %s18453_s19, 10 }
  0x13   : > { %s19955_s30 = scalar_select %p18557_p11, 1, 0 }
  0x14   : > { %s18568_s10 = scalar_lea.hbm %s19949_s3, %s16076_s7  ;;  %s182_s11 = scalar_lea.vmem [#allocation2], %s16034_s6 }
  0x15   : > { %s191_s12 = sshll.u32 %s182_s11, 4  ;;  %p18574_p0 = pnand %p18281_p13, %p18540_p4  ;;  %s18570_s12 = int_to_ptr.vmem [resolvable:$true] %s191_s12 }
  0x16   : > { %s18579_s14 = scalar_lea.sflag [#allocation3], %s178_s5  ;;  %s18345_s21 = scalar_lea.hbm %s18568_s10, 1024 }
  0x17   : > { %p18346_p2 = scmp.ne.s32.totalorder %s18568_s10, %s18345_s21  ;;  %p18347_p3 = pneg %p18574_p0 }
  0x18   : > { %s18350_s25 = scalar_lea.hbm %s19949_s3, 2048  ;;  %p18351_p4 = scmp.lt.u32.totalorder %s18568_s10, %s19949_s3 }
  0x19   : > { %p18348_p5 = pnand %p18347_p3, %p18346_p2  ;;  %p18352_p7 = scmp.lt.u32.totalorder %s18350_s25, %s18345_s21 }
  0x1a   : > { %p18354_p13 = scmp.lt.u32.totalorder %s18345_s21, %s18568_s10 }
  0x1b   : > { %p18349_p6 = pneg %p18348_p5  ;;  %p18353_p10 = por %p18352_p7, %p18351_p4 }
  0x1d   : > { %p18355_p12 = por %p18354_p13, %p18353_p10 }
  0x1f   : > { %p18356_p1 = pnand %p18355_p12, %p18349_p6 }
  0x21   : > { %18359 = shalt.err (!%p18356_p1)
}
  0x22   : > { %s18360_s5 = scalar_lea.vmem %s18570_s12, 1024  ;;  %s18459_s7 = smov [#allocation2]  }
  0x23   : > { %p18361_p2 = scmp.ne.s32.totalorder %s18570_s12, %s18360_s5  ;;  %s18365_s8 = sshll.u32 %s18459_s7, 4  ;;  %s18366_s8 = int_to_ptr.vmem [resolvable:$false] %s18365_s8 }
  0x24   : > { %s18367_s9 = scalar_lea.vmem %s18366_s8, 2048  ;;  %p18368_p9 = scmp.lt.s32.totalorder %s18570_s12, %s18366_s8 }
  0x25   : > { %p18363_p5 = pnand %p18361_p2, %p18347_p3  ;;  %p18369_p4 = scmp.lt.s32.totalorder %s18367_s9, %s18360_s5 }
  0x27   : > { %p18364_p11 = pneg %p18363_p5  ;;  %p18370_p7 = por %p18369_p4, %p18368_p9 }
  0x29   : > { %p18371_p10 = pnand %p18370_p7, %p18364_p11 }
  0x2b   : > { %18374 = shalt.err (!%p18371_p10)
}
  0x2c   : > { %s18460_s11 = smov 128   ;;  %s18461_s21 = smov 8  }
  0x2d   : > { %18276 = dma.hbm_to_vmem [thread:$0]  (!%p18574_p0), %s18568_s10, 1024, %s18570_s12, %s18579_s14, %s18460_s11, %s18460_s11, %s18461_s21  }
  0x2e   : > { %p199_p12 = scmp.lt.s32.totalorder %s18457_s20, 3  ;;  %p19957_p1 = scmp.ge.s32.totalorder %s18457_s20, 1 }
  0x30   : > { %p200_p3 = pnand %p19957_p1, %p199_p12 }
  0x31   : > { %s18611_s22 = sand.u32 (!%p200_p3), 1, %s18441_s16  }
  0x32   : > { %203 = sbr.rel (%p200_p3) target bundleno = 1418 (0x58a), region = 36  ;;  %s16038_s24 = sshll.u32 (!%p200_p3), %s18611_s22, 6 }
  0x33   : > { %s206_s25 = scalar_lea.sflag (!%p200_p3), [#allocation3], %s18611_s22  ;;  %s18615_s26 = scalar_lea.vmem (!%p200_p3), [#allocation2], %s16038_s24 }
  0x39   : > { %18428 = dma.done.wait (%p18546_p8), %s206_s25, 1024  }
  0x3a   : > { %18430 = vsyncadd (%p18546_p8), %s206_s25, 4294966272  ;;  %vm254_vm0 = vcmask 1041409   ;;  %vm257_vm1 = vcmask 1042434   ;;  %vm262_vm2 = vcmask 31744   ;;  %v242_v0 = vld [vmem:[%s18615_s26 + $0x1] sm:$0x1] }
  0x3b   : > { %v243_v1 = vld [vmem:[%s18615_s26 + $0x11] sm:$0x1]  ;;  %v244_v2 = vld [vmem:[%s18615_s26 + $0x21] sm:$0x1]  ;;  %v16041_v7 = vld [vmem:[%s19946_s0 + $0x18] sm:$0xff]  ;;  %vm260_vm3 = vcmask 1043459  }
  0x3c   : > { %v245_v3 = vld [vmem:[%s18615_s26 + $0x31] sm:$0x1]  ;;  %v253_v4 = vrot.slane %v243_v1, 7  ;;  %v256_v5 = vrot.slane %v244_v2, 6  ;;  %v267_v10 = vsel %vm262_vm2, %v16041_v7, 0  ;;  %vm269_vm4 = vcmask 1043456  }
  0x3d   : > { %v16040_v6 = vld [vmem:[%s19946_s0 + $0x10] sm:$0xff]  ;;  %v259_v8 = vrot.slane %v245_v3, 5  ;;  %v18636_v13 = vand.u32 4294901760, %v267_v10  ;;  %v238_v31 = vld [vmem:[%s18615_s26 + $0x20] sm:$0x1]  ;;  %v241_v45 = vld [vmem:[%s19946_s0 + $0x8] sm:$0xff] }
  0x3e   : > { %v264_v9 = vsel %vm262_vm2, %v16040_v6, 0  ;;  %v255_v11 = vsel %vm254_vm0, %v253_v4, %v242_v0  ;;  %v237_v30 = vld [vmem:[%s18615_s26 + $0x10] sm:$0x1]  ;;  %v236_v33 = vld [vmem:[%s18615_s26] sm:$0x1]  ;;  %v767_v35 = vrot.slane %v238_v31, 6 }
  0x3f   : > { %v18634_v12 = vand.u32 4294901760, %v264_v9  ;;  %v258_v14 = vsel %vm257_vm1, %v256_v5, %v255_v11  ;;  %v18644_v17 = vsub.f32 %v267_v10, %v18636_v13  ;;  %v765_v32 = vrot.slane %v237_v30, 7  ;;  %v239_v34 = vld [vmem:[%s18615_s26 + $0x30] sm:$0x1]  ;;  %v240_v39 = vld [vmem:[%s19946_s0] sm:$0xff]  ;;  %s16039_s13 = sshll.u32 %s18611_s22, 3 }
  0x40   : > { %v261_v15 = vsel %vm260_vm3, %v259_v8, %v258_v14  ;;  %v769_v37 = vrot.slane %v239_v34, 5  ;;  %v772_v41 = vsel %vm262_vm2, %v240_v39, 0  ;;  %v775_v47 = vsel %vm262_vm2, %v241_v45, 0  ;;  %v2213_v60 = vld [vmem:[%s18615_s26 + $0x13] sm:$0x1]  ;;  %s19364_s27 = scalar_lea.vmem [#allocation5], %s16039_s13 }
  0x41   : > { %v18641_v16 = vsub.f32 %v264_v9, %v18634_v12  ;;  %v270_v18 = vsel %vm269_vm4, %v261_v15, 0  ;;  %v18651_v21 = vand.u32 4294901760, %v18644_v17  ;;  %v766_v36 = vsel %vm254_vm0, %v765_v32, %v236_v33  ;;  %v2214_v61 = vld [vmem:[%s18615_s26 + $0x23] sm:$0x1]  ;;  %v2215_v0 = vld [vmem:[%s18615_s26 + $0x33] sm:$0x1] }
  0x42   : > { %v273_v19 = vand.u32 4294901760, %v270_v18  ;;  %v768_v38 = vsel %vm257_vm1, %v767_v35, %v766_v36  ;;  %v18680_v43 = vand.u32 4294901760, %v772_v41  ;;  %v18691_v49 = vand.u32 4294901760, %v775_v47  ;;  %v2212_v63 = vld [vmem:[%s18615_s26 + $0x3] sm:$0x1]  ;;  %s18467_s13 = smov 16  }
  0x43   : > { %v18648_v20 = vand.u32 4294901760, %v18641_v16  ;;  %v351_v23 = vsub.f32 %v18644_v17, %v18651_v21  ;;  %v770_v40 = vsel %vm260_vm3, %v769_v37, %v768_v38  ;;  %v2222_v62 = vrot.slane %v2213_v60, 7  ;;  %v2207_v14 = vld [vmem:[%s18615_s26 + $0x12] sm:$0x1]  ;;  %v2208_v15 = vld [vmem:[%s18615_s26 + $0x22] sm:$0x1] }
  0x44   : > { %16653 = vmatprep.subr.mxu0 %v273_v19  ;;  %v360_v24 = vsub.f32 %v270_v18, %v273_v19  ;;  %v777_v42 = vsel %vm269_vm4, %v770_v40, 0  ;;  %v18688_v46 = vsub.f32 %v772_v41, %v18680_v43  ;;  %v18698_v52 = vsub.f32 %v775_v47, %v18691_v49  ;;  %v4174_v36 = vld [vmem:[%s18615_s26 + $0x15] sm:$0x1]  ;;  %v4175_v37 = vld [vmem:[%s18615_s26 + $0x25] sm:$0x1]  ;;  %s18468_s8 = smov 24  }
  0x45   : > { %v341_v22 = vsub.f32 %v18641_v16, %v18648_v20  ;;  %16654 = vmatpush3.msra.mxu0 %v273_v19  ;;  %v18659_v26 = vand.u32 4294901760, %v351_v23  ;;  %v780_v44 = vand.u32 4294901760, %v777_v42  ;;  %v2224_v1 = vrot.slane %v2214_v61, 6  ;;  %v4173_v39 = vld [vmem:[%s18615_s26 + $0x5] sm:$0x1]  ;;  %s18469_s25 = smov 32  }
  0x46   : > { %v361_v27 = vand.u32 4294901760, %v360_v24  ;;  %v18694_v50 = vand.u32 4294901760, %v18688_v46  ;;  %v18704_v55 = vand.u32 4294901760, %v18698_v52  ;;  %v2223_v2 = vsel %vm254_vm0, %v2222_v62, %v2212_v63  ;;  %v4176_v40 = vld [vmem:[%s18615_s26 + $0x35] sm:$0x1]  ;;  %s18471_s10 = smov 48  }
  0x47   : > { %v18657_v25 = vand.u32 4294901760, %v341_v22  ;;  %v867_v48 = vsub.f32 %v777_v42, %v780_v44  ;;  %v2226_v3 = vrot.slane %v2215_v0, 5  ;;  %v2225_v4 = vsel %vm257_vm1, %v2224_v1, %v2223_v2  ;;  %v2209_v22 = vld [vmem:[%s18615_s26 + $0x32] sm:$0x1]  ;;  %s18472_s12 = smov 56   ;;  %s15948_s14 = sshll.u32 %s19364_s27, 4  ;;  %s19898_s14 = int_to_ptr.vmem [resolvable:$true] %s15948_s14 }
  0x48   : > { %v362_v28 = vsub.f32 %v360_v24, %v361_v27  ;;  %v848_v53 = vsub.f32 %v18688_v46, %v18694_v50  ;;  %v858_v58 = vsub.f32 %v18698_v52, %v18704_v55  ;;  %v2729_v18 = vrot.slane %v2207_v14, 7  ;;  %s18375_s9 = scalar_lea.vmem %s19898_s14, 128  ;;  %p19958_p9 = scmp.ne.s32.totalorder %s19954_s28, 0 }
  0x49   : > { %16655 = vmatprep.mubr.f32.mxu0 %v18657_v25  ;;  %v868_v51 = vand.u32 4294901760, %v867_v48  ;;  %v2227_v5 = vsel %vm260_vm3, %v2226_v3, %v2225_v4  ;;  %v2731_v23 = vrot.slane %v2208_v15, 6  ;;  %v4183_v38 = vrot.slane %v4174_v36, 7  ;;  %v4168_v15 = vld [vmem:[%s18615_s26 + $0x14] sm:$0x1]  ;;  %p18376_p8 = scmp.ne.s32.totalorder %s19898_s14, %s18375_s9 }
  0x4a   : > { %16656 = vmatmul.mubr.f32.vlgmr.msra.gmra.mrb[0].mxu0 %v18659_v26  ;;  %v363_v29 = vand.u32 4294901760, %v362_v28  ;;  %v18706_v56 = vand.u32 4294901760, %v848_v53  ;;  %v18712_v59 = vand.u32 4294901760, %v858_v58  ;;  %v2234_v6 = vsel %vm269_vm4, %v2227_v5, 0  ;;  %v16043_v58 = vld [vmem:[%s19947_s1 + $0x18] sm:$0xff] }
  0x4b   : > { %16660 = vmatprep.mubr.f32.mxu0 %v18634_v12  ;;  %v869_v54 = vsub.f32 %v867_v48, %v868_v51  ;;  %v2237_v7 = vand.u32 4294901760, %v2234_v6  ;;  %v4185_v41 = vrot.slane %v4175_v37, 6  ;;  %v4184_v42 = vsel %vm254_vm0, %v4183_v38, %v4173_v39  ;;  %v6135_v38 = vld [vmem:[%s18615_s26 + $0x17] sm:$0x1]  ;;  %v6136_v39 = vld [vmem:[%s18615_s26 + $0x27] sm:$0x1]  ;;  %p18377_p11 = pnand %p18376_p8, %p19958_p9 }
  0x4c   : > { %16658 = vmatprep.subr.mxu0 %v363_v29  ;;  %v1281_v61 = vand.u32 4294901760, %v16043_v58  ;;  %vm18463_vm5 = vmmov 0   ;;  %vm1273_vm6 = vcmask 130048   ;;  %vm2204_vm7 = vcmask 64512  }
  0x4d   : > { %16659 = vmatpush3.msra.mxu0 %v363_v29  ;;  %v870_v57 = vand.u32 4294901760, %v869_v54  ;;  %v2324_v8 = vsub.f32 %v2234_v6, %v2237_v7  ;;  %v4186_v45 = vsel %vm257_vm1, %v4185_v41, %v4184_v42  ;;  %v6134_v41 = vld [vmem:[%s18615_s26 + $0x7] sm:$0x1]  ;;  %v6137_v42 = vld [vmem:[%s18615_s26 + $0x37] sm:$0x1]  ;;  %vm4165_vm8 = vcmask 130112   ;;  %p18378_p0 = pneg %p18377_p11 }
  0x4e   : > { %16663 = vmatprep.subr.mxu0 %v360_v24  ;;  %v1363_v0 = vsub.f32 %v16043_v58, %v1281_v61  ;;  %vm6126_vm9 = vcmask 195712   ;;  %vm8087_vm10 = vcmask 261312   ;;  %vm10048_vm11 = vcmask 326912  }
  0x4f   : > { %v2325_v9 = vand.u32 4294901760, %v2324_v8  ;;  %vm12009_vm12 = vcmask 392512   ;;  %vm13970_vm13 = vcmask 458112   ;;  %vm15931_vm14 = vcmask 523712  }
  0x50   : > { %v1364_v2 = vand.u32 4294901760, %v1363_v0 }
  0x51   : > { %v2326_v10 = vsub.f32 %v2324_v8, %v2325_v9 }
  0x52   : > { %16661 = vmatmul.mubr.f32.vlgmr.msra.gmra.mrb[0].mxu0 %v18636_v13  ;;  %v1365_v6 = vsub.f32 %v1363_v0, %v1364_v2 }
  0x53   : > { %16664 = vmatpush3.msra.mxu0 %v360_v24  ;;  %16665 = vmatprep.mubr.f32.mxu0 %v18641_v16  ;;  %v2327_v11 = vand.u32 4294901760, %v2326_v10  ;;  %v18464_v10 = vmov 0.0  }
  0x54   : > { %16668 = vmatprep.subr.mxu0 %v273_v19  ;;  %16717 = vmatprep.mubr.msk.f32.mxu1 %vm18463_vm5, %v18464_v10 }
  0x5a   : > { %16666 = vmatmul.mubr.f32.vlgmr.msra.gmra.mrb[0].mxu0 %v18644_v17 }
  0x5b   : > { %16669 = vmatpush3.msra.mxu0 %v273_v19  ;;  %16670 = vmatprep.mubr.f32.mxu0 %v18648_v20 }
  0x5c   : > { %16673 = vmatprep.subr.mxu0 %v361_v27 }
  0x62   : > { %16671 = vmatmul.mubr.f32.vlgmr.msra.gmra.mrb[0].mxu0 %v18651_v21 }
  0x63   : > { %16674 = vmatpush3.msra.mxu0 %v361_v27  ;;  %16675 = vmatprep.mubr.f32.mxu0 %v18634_v12  ;;  %v2733_v27 = vrot.slane %v2209_v22, 5  ;;  %v4167_v22 = vld [vmem:[%s18615_s26 + $0x4] sm:$0x1] }
  0x64   : > { %16678 = vmatprep.subr.mxu0 %v273_v19 }
  0x6a   : > { %16676 = vmatmul.mubr.f32.vlgmr.msra.gmra.mrb[0].mxu0 %v18636_v13 }
  0x6b   : > { %16679 = vmatpush3.msra.mxu0 %v273_v19  ;;  %16680 = vmatprep.mubr.f32.mxu0 %v18634_v12  ;;  %v2206_v19 = vld [vmem:[%s18615_s26 + $0x2] sm:$0x1] }
  0x6c   : > { %16683 = vmatprep.subr.mxu0 %v780_v44  ;;  %v2730_v24 = vsel %vm254_vm0, %v2729_v18, %v2206_v19  ;;  %v4169_v18 = vld [vmem:[%s18615_s26 + $0x24] sm:$0x1]  ;;  %v4690_v19 = vrot.slane %v4168_v15, 7 }
  0x6d   : > { %v2732_v28 = vsel %vm257_vm1, %v2731_v23, %v2730_v24  ;;  %v4170_v23 = vld [vmem:[%s18615_s26 + $0x34] sm:$0x1]  ;;  %v4692_v24 = vrot.slane %v4169_v18, 6 }
  0x6e   : > { %v2734_v29 = vsel %vm260_vm3, %v2733_v27, %v2732_v28  ;;  %v4691_v27 = vsel %vm254_vm0, %v4690_v19, %v4167_v22 }
  0x6f   : > { %v2741_v30 = vsel %vm269_vm4, %v2734_v29, 0  ;;  %v4694_v29 = vrot.slane %v4170_v23, 5 }
  0x70   : > { %v2744_v31 = vand.u32 4294901760, %v2741_v30 }
  0x72   : > { %16681 = vmatmul.mubr.f32.vlgmr.msra.gmra.mrb[0].mxu0 %v18636_v13  ;;  %v2831_v32 = vsub.f32 %v2741_v30, %v2744_v31  ;;  %v4693_v30 = vsel %vm257_vm1, %v4692_v24, %v4691_v27 }
  0x73   : > { %16684 = vmatpush3.msra.mxu0 %v780_v44  ;;  %16685 = vmatprep.mubr.f32.mxu0 %v18706_v56 }
  0x74   : > { %16688 = vmatprep.subr.mxu0 %v870_v57  ;;  %v2832_v33 = vand.u32 4294901760, %v2831_v32 }
  0x76   : > { %v2833_v34 = vsub.f32 %v2831_v32, %v2832_v33 }
  0x78   : > { %v2834_v35 = vand.u32 4294901760, %v2833_v34 }
  0x7a   : > { %16686 = vmatmul.mubr.f32.vlgmr.msra.gmra.mrb[0].mxu0 %v18712_v59 }
  0x7b   : > { %16689 = vmatpush3.msra.mxu0 %v870_v57  ;;  %16690 = vmatprep.mubr.f32.mxu0 %v18680_v43  ;;  %v16042_v57 = vld [vmem:[%s19947_s1 + $0x10] sm:$0xff] }
  0x7c   : > { %16693 = vmatprep.subr.mxu0 %v867_v48  ;;  %v1278_v60 = vand.u32 4294901760, %v16042_v57 }
  0x7e   : > { %v1356_v63 = vsub.f32 %v16042_v57, %v1278_v60  ;;  %v18782_v4 = vpack.c.bf16 %v1281_v61, %v1278_v60 }
  0x80   : > { %v1357_v1 = vand.u32 4294901760, %v1356_v63  ;;  %v18796_v14 = vpack.c.bf16 %v1363_v0, %v1356_v63 }
  0x82   : > { %16691 = vmatmul.mubr.f32.vlgmr.msra.gmra.mrb[0].mxu0 %v18691_v49  ;;  %v1358_v5 = vsub.f32 %v1356_v63, %v1357_v1  ;;  %v18806_v28 = vpack.c.bf16 %v1364_v2, %v1357_v1  ;;  %v6130_v63 = vld [vmem:[%s18615_s26 + $0x26] sm:$0x1]  ;;  %v6131_v2 = vld [vmem:[%s18615_s26 + $0x36] sm:$0x1] }
  0x83   : > { %16694 = vmatpush3.msra.mxu0 %v867_v48  ;;  %16695 = vmatprep.mubr.f32.mxu0 %v18688_v46  ;;  %v6128_v1 = vld [vmem:[%s18615_s26 + $0x6] sm:$0x1] }
  0x84   : > { %16698 = vmatprep.subr.mxu0 %v780_v44 }
  0x8a   : > { %16696 = vmatmul.mubr.f32.vlgmr.msra.gmra.mrb[0].mxu0 %v18698_v52 }
  0x8b   : > { %16699 = vmatpush3.msra.mxu0 %v780_v44  ;;  %16700 = vmatprep.mubr.f32.mxu0 %v18694_v50 }
  0x8c   : > { %16703 = vmatprep.subr.mxu0 %v868_v51 }
  0x92   : > { %16701 = vmatmul.mubr.f32.vlgmr.msra.gmra.mrb[0].mxu0 %v18704_v55 }
  0x93   : > { %16704 = vmatpush3.msra.mxu0 %v868_v51  ;;  %16705 = vmatprep.mubr.f32.mxu0 %v18680_v43 }
  0x94   : > { %16708 = vmatprep.subr.mxu0 %v780_v44 }
  0x9a   : > { %16706 = vmatmul.mubr.f32.vlgmr.msra.gmra.mrb[0].mxu0 %v18691_v49 }
  0x9b   : > { %16709 = vmatpush3.msra.mxu0 %v780_v44  ;;  %16710 = vmatprep.mubr.f32.mxu0 %v18680_v43  ;;  %v4187_v44 = vrot.slane %v4176_v40, 5  ;;  %v6144_v40 = vrot.slane %v6135_v38, 7 }
  0x9c   : > { %16797 = vmatprep.subr.mxu0 %v2237_v7 }
  0x9d   : > { %v4188_v47 = vsel %vm260_vm3, %v4187_v44, %v4186_v45  ;;  %v6146_v44 = vrot.slane %v6136_v39, 6  ;;  %v6145_v45 = vsel %vm254_vm0, %v6144_v40, %v6134_v41 }
  0x9e   : > { %v4195_v48 = vsel %vm269_vm4, %v4188_v47, 0  ;;  %v6148_v47 = vrot.slane %v6137_v42, 5 }
  0x9f   : > { %v18768_v51 = vand.u32 4294901760, %v4195_v48 }
  0xa1   : > { %v4285_v53 = vsub.f32 %v4195_v48, %v18768_v51  ;;  %v6147_v48 = vsel %vm257_vm1, %v6146_v44, %v6145_v45 }
  0xa2   : > { %16711 = vmatmul.mubr.f32.vlgmr.msra.gmra.mrb[0].mxu0 %v18691_v49 }
  0xa3   : > { %16798 = vmatpush3.msra.mxu0 %v2237_v7  ;;  %16799 = vmatprep.mubr.f32.mxu0 %v18657_v25  ;;  %v4286_v54 = vand.u32 4294901760, %v4285_v53 }
  0xa4   : > { %16802 = vmatprep.subr.mxu0 %v2327_v11 }
  0xa5   : > { %v4287_v62 = vsub.f32 %v4285_v53, %v4286_v54 }
  0xa6   : > { %16800 = vmatmul.mubr.f32.vlgmr.msra.gmra.mrb[2].mxu0 %v18659_v26 }
  0xa7   : > { %16803 = vmatpush3.msra.mxu0 %v2327_v11  ;;  %16804 = vmatprep.mubr.f32.mxu0 %v18634_v12  ;;  %v4288_v3 = vand.u32 4294901760, %v4287_v62  ;;  %v6129_v62 = vld [vmem:[%s18615_s26 + $0x16] sm:$0x1] }
  0xa8   : > { %16807 = vmatprep.subr.mxu0 %v2324_v8  ;;  %v6651_v0 = vrot.slane %v6129_v62, 7 }
  0xae   : > { %16805 = vmatmul.mubr.f32.vlgmr.msra.gmra.mrb[2].mxu0 %v18636_v13 }
  0xaf   : > { %16808 = vmatpush3.msra.mxu0 %v2324_v8  ;;  %16809 = vmatprep.mubr.f32.mxu0 %v18641_v16  ;;  %v1359_v8 = vand.u32 4294901760, %v1358_v5  ;;  %v6655_v5 = vrot.slane %v6131_v2, 5 }
  0xb0   : > { %16812 = vmatprep.subr.mxu0 %v2237_v7 }
  0xb6   : > { %16810 = vmatmul.mubr.f32.vlgmr.msra.gmra.mrb[2].mxu0 %v18644_v17 }
  0xb7   : > { %16813 = vmatpush3.msra.mxu0 %v2237_v7  ;;  %16814 = vmatprep.mubr.f32.mxu0 %v18648_v20 }
  0xb8   : > { %16817 = vmatprep.subr.mxu0 %v2325_v9 }
  0xbe   : > { %16815 = vmatmul.mubr.f32.vlgmr.msra.gmra.mrb[2].mxu0 %v18651_v21 }
  0xbf   : > { %16818 = vmatpush3.msra.mxu0 %v2325_v9  ;;  %16819 = vmatprep.mubr.f32.mxu0 %v18634_v12  ;;  %v1366_v9 = vand.u32 4294901760, %v1365_v6 }
  0xc0   : > { %16822 = vmatprep.subr.mxu0 %v2237_v7 }
  0xc1   : > { %v18791_v11 = vpack.c.bf16 %v1366_v9, %v1359_v8 }
  0xc6   : > { %16820 = vmatmul.mubr.f32.vlgmr.msra.gmra.mrb[2].mxu0 %v18636_v13 }
  0xc7   : > { %16823 = vmatpush3.msra.mxu0 %v2237_v7  ;;  %16824 = vmatprep.mubr.f32.mxu0 %v18634_v12  ;;  %v18462_v7 = vmov 0.0|0.0  }
  0xc8   : > { %16827 = vmatprep.subr.mxu0 %v2744_v31  ;;  %17805 = vmatprep.subr.bf16.mxu1 %v18462_v7 }
  0xc9   : > { %17807 = vmatpush3.bf16.msra.mxu1 %v18782_v4 }
  0xca   : > { %17808 = vmatprep.subr.bf16.mxu1 %v18462_v7 }
  0xce   : > { %16825 = vmatmul.mubr.f32.vlgmr.msra.gmra.mrb[2].mxu0 %v18636_v13 }
  0xcf   : > { %16828 = vmatpush3.msra.mxu0 %v2744_v31  ;;  %16829 = vmatprep.mubr.f32.mxu0 %v18706_v56 }
  0xd0   : > { %16832 = vmatprep.subr.mxu0 %v2834_v35 }
  0xd6   : > { %16830 = vmatmul.mubr.f32.vlgmr.msra.gmra.mrb[2].mxu0 %v18712_v59 }
  0xd7   : > { %16833 = vmatpush3.msra.mxu0 %v2834_v35  ;;  %16834 = vmatprep.mubr.f32.mxu0 %v18680_v43 }
  0xd8   : > { %16837 = vmatprep.subr.mxu0 %v2831_v32 }
  0xde   : > { %16835 = vmatmul.mubr.f32.vlgmr.msra.gmra.mrb[2].mxu0 %v18691_v49 }
  0xdf   : > { %16838 = vmatpush3.msra.mxu0 %v2831_v32  ;;  %16839 = vmatprep.mubr.f32.mxu0 %v18688_v46 }
  0xe0   : > { %16842 = vmatprep.subr.mxu0 %v2744_v31 }
  0xe6   : > { %16840 = vmatmul.mubr.f32.vlgmr.msra.gmra.mrb[2].mxu0 %v18698_v52 }
  0xe7   : > { %16843 = vmatpush3.msra.mxu0 %v2744_v31  ;;  %16844 = vmatprep.mubr.f32.mxu0 %v18694_v50 }
  0xe8   : > { %16847 = vmatprep.subr.mxu0 %v2832_v33 }
  0xee   : > { %16845 = vmatmul.mubr.f32.vlgmr.msra.gmra.mrb[2].mxu0 %v18704_v55 }
  0xef   : > { %16848 = vmatpush3.msra.mxu0 %v2832_v33  ;;  %16849 = vmatprep.mubr.f32.mxu0 %v18680_v43 }
  0xf0   : > { %16852 = vmatprep.subr.mxu0 %v2744_v31 }
  0xf6   : > { %16850 = vmatmul.mubr.f32.vlgmr.msra.gmra.mrb[2].mxu0 %v18691_v49 }
  0xf7   : > { %16853 = vmatpush3.msra.mxu0 %v2744_v31  ;;  %16854 = vmatprep.mubr.f32.mxu0 %v18680_v43  ;;  %v4695_v31 = vsel %vm260_vm3, %v4694_v29, %v4693_v30  ;;  %v1269_v29 = vld [vmem:[%s19947_s1 + $0x8] sm:$0xff] }
  0xf8   : > { %16941 = vmatprep.subr.mxu0 %v18768_v51  ;;  %v4702_v32 = vsel %vm269_vm4, %v4695_v31, 0  ;;  %v1743_v31 = vand.u32 4294901760, %v1269_v29 }
  0xf9   : > { %v4705_v33 = vand.u32 4294901760, %v4702_v32 }
  0xfb   : > { %v4792_v34 = vsub.f32 %v4702_v32, %v4705_v33  ;;  %v235_v32 = vld [vmem:[%s19948_s2] sm:$0xff] }
  0xfd   : > { %v4793_v35 = vand.u32 4294901760, %v4792_v34 }
  0xfe   : > { %16855 = vmatmul.mubr.f32.vlgmr.msra.gmra.mrb[2].mxu0 %v18691_v49 }
  0xff   : > { %16942 = vmatpush3.msra.mxu0 %v18768_v51  ;;  %16943 = vmatprep.mubr.f32.mxu0 %v18657_v25  ;;  %v4794_v36 = vsub.f32 %v4792_v34, %v4793_v35 }
 0x100   : > { %16946 = vmatprep.subr.mxu0 %v4288_v3 }
 0x101   : > { %v4795_v37 = vand.u32 4294901760, %v4794_v36 }
 0x102   : > { %16944 = vmatmul.mubr.f32.vlgmr.msra.gmra.mrb[4].mxu0 %v18659_v26 }
 0x103   : > { %16947 = vmatpush3.msra.mxu0 %v4288_v3  ;;  %16948 = vmatprep.mubr.f32.mxu0 %v18634_v12  ;;  %v6653_v3 = vrot.slane %v6130_v63, 6 }
 0x104   : > { %16951 = vmatprep.subr.mxu0 %v4285_v53 }
 0x10a   : > { %16949 = vmatmul.mubr.f32.vlgmr.msra.gmra.mrb[4].mxu0 %v18636_v13 }
 0x10b   : > { %16952 = vmatpush3.msra.mxu0 %v4285_v53  ;;  %16953 = vmatprep.mubr.f32.mxu0 %v18641_v16 }
 0x10c   : > { %16956 = vmatprep.subr.mxu0 %v18768_v51 }
 0x112   : > { %16954 = vmatmul.mubr.f32.vlgmr.msra.gmra.mrb[4].mxu0 %v18644_v17 }
 0x113   : > { %16957 = vmatpush3.msra.mxu0 %v18768_v51  ;;  %16958 = vmatprep.mubr.f32.mxu0 %v18648_v20 }
 0x114   : > { %16961 = vmatprep.subr.mxu0 %v4286_v54 }
 0x11a   : > { %16959 = vmatmul.mubr.f32.vlgmr.msra.gmra.mrb[4].mxu0 %v18651_v21 }
 0x11b   : > { %16962 = vmatpush3.msra.mxu0 %v4286_v54  ;;  %16963 = vmatprep.mubr.f32.mxu0 %v18634_v12 }
 0x11c   : > { %16966 = vmatprep.subr.mxu0 %v18768_v51 }
 0x122   : > { %16964 = vmatmul.mubr.f32.vlgmr.msra.gmra.mrb[4].mxu0 %v18636_v13 }
 0x123   : > { %16967 = vmatpush3.msra.mxu0 %v18768_v51  ;;  %16968 = vmatprep.mubr.f32.mxu0 %v18634_v12  ;;  %v6149_v51 = vsel %vm260_vm3, %v6148_v47, %v6147_v48 }
 0x124   : > { %16971 = vmatprep.subr.mxu0 %v4705_v33  ;;  %v6156_v53 = vsel %vm269_vm4, %v6149_v51, 0  ;;  %v8097_v51 = vld [vmem:[%s18615_s26 + $0x29] sm:$0x1] }
 0x125   : > { %v6159_v54 = vand.u32 4294901760, %v6156_v53 }
 0x127   : > { %v6246_v57 = vsub.f32 %v6156_v53, %v6159_v54 }
 0x129   : > { %v6247_v58 = vand.u32 4294901760, %v6246_v57 }
 0x12a   : > { %16969 = vmatmul.mubr.f32.vlgmr.msra.gmra.mrb[4].mxu0 %v18636_v13 }
 0x12b   : > { %16972 = vmatpush3.msra.mxu0 %v4705_v33  ;;  %16973 = vmatprep.mubr.f32.mxu0 %v18706_v56  ;;  %v6248_v60 = vsub.f32 %v6246_v57, %v6247_v58 }
 0x12c   : > { %16976 = vmatprep.subr.mxu0 %v4795_v37 }
 0x12d   : > { %v6249_v61 = vand.u32 4294901760, %v6248_v60  ;;  %v8098_v60 = vld [vmem:[%s18615_s26 + $0x39] sm:$0x1] }
 0x132   : > { %16974 = vmatmul.mubr.f32.vlgmr.msra.gmra.mrb[4].mxu0 %v18712_v59 }
 0x133   : > { %16977 = vmatpush3.msra.mxu0 %v4795_v37  ;;  %16978 = vmatprep.mubr.f32.mxu0 %v18680_v43  ;;  %v18894_v37 = vsub.f32 %v1269_v29, %v1743_v31 }
 0x134   : > { %16981 = vmatprep.subr.mxu0 %v4792_v34 }
 0x135   : > { %v1826_v39 = vand.u32 4294901760, %v18894_v37 }
 0x137   : > { %v1827_v41 = vsub.f32 %v18894_v37, %v1826_v39 }
 0x139   : > { %v1828_v47 = vand.u32 4294901760, %v1827_v41 }
 0x13a   : > { %16979 = vmatmul.mubr.f32.vlgmr.msra.gmra.mrb[4].mxu0 %v18691_v49 }
 0x13b   : > { %16982 = vmatpush3.msra.mxu0 %v4792_v34  ;;  %16983 = vmatprep.mubr.f32.mxu0 %v18688_v46 }
 0x13c   : > { %16986 = vmatprep.subr.mxu0 %v4705_v33 }
 0x142   : > { %16984 = vmatmul.mubr.f32.vlgmr.msra.gmra.mrb[4].mxu0 %v18698_v52 }
 0x143   : > { %16987 = vmatpush3.msra.mxu0 %v4705_v33  ;;  %16988 = vmatprep.mubr.f32.mxu0 %v18694_v50 }
 0x144   : > { %16991 = vmatprep.subr.mxu0 %v4793_v35 }
 0x14a   : > { %16989 = vmatmul.mubr.f32.vlgmr.msra.gmra.mrb[4].mxu0 %v18704_v55 }
 0x14b   : > { %16992 = vmatpush3.msra.mxu0 %v4793_v35  ;;  %16993 = vmatprep.mubr.f32.mxu0 %v18680_v43 }
 0x14c   : > { %16996 = vmatprep.subr.mxu0 %v4705_v33 }
 0x152   : > { %16994 = vmatmul.mubr.f32.vlgmr.msra.gmra.mrb[4].mxu0 %v18691_v49 }
 0x153   : > { %16997 = vmatpush3.msra.mxu0 %v4705_v33  ;;  %16998 = vmatprep.mubr.f32.mxu0 %v18680_v43  ;;  %v18465_v33 = vmov 0  }
 0x154   : > { %17085 = vmatprep.subr.mxu0 %v6159_v54  ;;  %18344 = vset.pattern.permute.xlu0 %v18465_v33 }
 0x155   : > { %2200 = vperm.xlu0 %18344, %v235_v32  }
 0x15a   : > { %16999 = vmatmul.mubr.f32.vlgmr.msra.gmra.mrb[4].mxu0 %v18691_v49 }
 0x15b   : > { %17086 = vmatpush3.msra.mxu0 %v6159_v54  ;;  %17087 = vmatprep.mubr.f32.mxu0 %v18657_v25  ;;  %v6652_v25 = vsel %vm254_vm0, %v6651_v0, %v6128_v1  ;;  %v8109_v0 = vrot.slane %v8098_v60, 5 }
 0x15c   : > { %17090 = vmatprep.subr.mxu0 %v6249_v61 }
 0x15e   : > { %17088 = vmatmul.mubr.f32.vlgmr.msra.gmra.mrb[6].mxu0 %v18659_v26  ;;  %v6654_v26 = vsel %vm257_vm1, %v6653_v3, %v6652_v25  ;;  %v16057_v25 = vld [vmem:[%s19946_s0 + $0x18] sm:$0xff] }
 0x15f   : > { %17091 = vmatpush3.msra.mxu0 %v6249_v61  ;;  %17092 = vmatprep.mubr.f32.mxu0 %v18634_v12  ;;  %v6656_v6 = vsel %vm260_vm3, %v6655_v5, %v6654_v26  ;;  %v8107_v61 = vrot.slane %v8097_v51, 6  ;;  %v8115_v26 = vsel %vm262_vm2, %v16057_v25, 0 }
 0x160   : > { %17095 = vmatprep.subr.mxu0 %v6246_v57  ;;  %v6663_v8 = vsel %vm269_vm4, %v6656_v6, 0 }
 0x161   : > { %v18856_v9 = vand.u32 4294901760, %v6663_v8 }
 0x166   : > { %17093 = vmatmul.mubr.f32.vlgmr.msra.gmra.mrb[6].mxu0 %v18636_v13 }
 0x167   : > { %17096 = vmatpush3.msra.mxu0 %v6246_v57  ;;  %17097 = vmatprep.mubr.f32.mxu0 %v18641_v16 }
 0x168   : > { %17100 = vmatprep.subr.mxu0 %v6159_v54 }
 0x16e   : > { %17098 = vmatmul.mubr.f32.vlgmr.msra.gmra.mrb[6].mxu0 %v18644_v17 }
 0x16f   : > { %17101 = vmatpush3.msra.mxu0 %v6159_v54  ;;  %17102 = vmatprep.mubr.f32.mxu0 %v18648_v20  ;;  %v18865_v20 = vsub.f32 %v6663_v8, %v18856_v9  ;;  %v18991_v8 = vand.u32 4294901760, %v8115_v26 }
 0x170   : > { %17105 = vmatprep.subr.mxu0 %v6247_v58 }
 0x171   : > { %v18868_v24 = vand.u32 4294901760, %v18865_v20 }
 0x173   : > { %v6755_v30 = vsub.f32 %v18865_v20, %v18868_v24 }
 0x175   : > { %v16712_v16 = vpop.f32.mrb[0].mxu0  ;;  %v6756_v35 = vand.u32 4294901760, %v6755_v30  ;;  %v8092_v30 = vld [vmem:[%s18615_s26 + $0x38] sm:$0x1] }
 0x176   : > { %v1275_v15 = vsel %vm1273_vm6, %v16712_v16, 0  ;;  %v1258_v18 = vpop.f32.mrb[1].mxu0  ;;  %17103 = vmatmul.mubr.f32.vlgmr.msra.gmra.mrb[6].mxu0 %v18651_v21  ;;  %v1268_v21 = vld [vmem:[%s19947_s1] sm:$0xff]  ;;  %v8616_v32 = vrot.slane %v8092_v30, 5 }
 0x177   : > { %v18860_v19 = vand.u32 4294901760, %v1275_v15  ;;  %17106 = vmatpush3.msra.mxu0 %v6247_v58  ;;  %17107 = vmatprep.mubr.f32.mxu0 %v18634_v12  ;;  %v1737_v34 = vsel %vm1273_vm6, %v1258_v18, 0 }
 0x178   : > { %17110 = vmatprep.subr.mxu0 %v6159_v54  ;;  %v18896_v38 = vand.u32 4294901760, %v1737_v34 }
 0x179   : > { %v1345_v17 = vsub.f32 %v1275_v15, %v18860_v19 }
 0x17a   : > { %v18909_v40 = vsub.f32 %v1737_v34, %v18896_v38  ;;  %v8093_v34 = vld [vmem:[%s19946_s0] sm:$0xff] }
 0x17b   : > { %v1346_v22 = vand.u32 4294901760, %v1345_v17 }
 0x17c   : > { %v1808_v42 = vand.u32 4294901760, %v18909_v40 }
 0x17d   : > { %v1347_v23 = vsub.f32 %v1345_v17, %v1346_v22 }
 0x17e   : > { %17108 = vmatmul.mubr.f32.vlgmr.msra.gmra.mrb[6].mxu0 %v18636_v13  ;;  %v1809_v48 = vsub.f32 %v18909_v40, %v1808_v42 }
 0x17f   : > { %v1348_v27 = vand.u32 4294901760, %v1347_v23  ;;  %17111 = vmatpush3.msra.mxu0 %v6159_v54  ;;  %17112 = vmatprep.mubr.f32.mxu0 %v18634_v12  ;;  %v1740_v12 = vand.u32 4294901760, %v1268_v21  ;;  %v8095_v54 = vld [vmem:[%s18615_s26 + $0x9] sm:$0x1] }
 0x180   : > { %17115 = vmatprep.subr.mxu0 %v18856_v9  ;;  %v1810_v58 = vand.u32 4294901760, %v1809_v48 }
 0x181   : > { %16718 = vmatmul.mubr.f32.vlgmr.msra.gmra.mrb[0].mxu1 %v1348_v27  ;;  %v18892_v36 = vsub.f32 %v1268_v21, %v1740_v12  ;;  %v18929_v44 = vpack.c.bf16 %v1743_v31, %v1740_v12  ;;  %v8090_v27 = vld [vmem:[%s18615_s26 + $0x18] sm:$0x1]  ;;  %v8091_v21 = vld [vmem:[%s18615_s26 + $0x28] sm:$0x1] }
 0x182   : > { %17810 = vmatpush3.bf16.msra.mxu1 %v18791_v11  ;;  %16724 = vmatprep.mubr.msk.f32.mxu1 %vm18463_vm5, %v18464_v10  ;;  %v8612_v29 = vrot.slane %v8090_v27, 7  ;;  %v8614_v12 = vrot.slane %v8091_v21, 6  ;;  %v10056_v27 = vld [vmem:[%s18615_s26 + $0xb] sm:$0x1] }
 0x183   : > { %17811 = vmatprep.subr.bf16.mxu1 %v18462_v7  ;;  %v18953_v63 = vpack.c.bf16 %v18894_v37, %v18892_v36 }
 0x185   : > { %16725 = vmatmul.mubr.f32.vlgmr.msra.gmra.mrb[2].mxu1 %v18860_v19 }
 0x186   : > { %17813 = vmatpush3.bf16.msra.mxu1 %v18796_v14  ;;  %17113 = vmatmul.mubr.f32.vlgmr.msra.gmra.mrb[6].mxu0 %v18636_v13  ;;  %v1819_v13 = vand.u32 4294901760, %v18892_v36 }
 0x187   : > { %16731 = vmatprep.mubr.msk.f32.mxu1 %vm18463_vm5, %v18464_v10  ;;  %17814 = vmatprep.subr.bf16.mxu1 %v18462_v7 }
 0x188   : > { %17116 = vmatpush3.msra.mxu0 %v18856_v9  ;;  %17117 = vmatprep.mubr.f32.mxu0 %v18706_v56  ;;  %v1820_v56 = vsub.f32 %v18892_v36, %v1819_v13  ;;  %v8619_v36 = vsel %vm262_vm2, %v8093_v34, 0 }
 0x189   : > { %16732 = vmatmul.mubr.f32.vlgmr.msra.gmra.mrb[4].mxu1 %v1345_v17  ;;  %17120 = vmatprep.subr.mxu0 %v6756_v35 }
 0x18a   : > { %17816 = vmatpush3.bf16.msra.mxu1 %v18782_v4  ;;  %16738 = vmatprep.mubr.msk.f32.mxu1 %vm18463_vm5, %v18464_v10  ;;  %v1821_v45 = vand.u32 4294901760, %v1820_v56 }
 0x18b   : > { %17817 = vmatprep.subr.bf16.mxu1 %v18462_v7 }
 0x18c   : > { %v18938_v57 = vpack.c.bf16 %v1828_v47, %v1821_v45 }
 0x18d   : > { %16739 = vmatmul.mubr.f32.vlgmr.msra.gmra.mrb[6].mxu1 %v1346_v22 }
 0x18e   : > { %17819 = vmatpush3.bf16.msra.mxu1 %v18806_v28  ;;  %17118 = vmatmul.mubr.f32.vlgmr.msra.gmra.mrb[6].mxu0 %v18712_v59  ;;  %v8096_v59 = vld [vmem:[%s18615_s26 + $0x19] sm:$0x1] }
 0x18f   : > { %16745 = vmatprep.mubr.msk.f32.mxu1 %vm18463_vm5, %v18464_v10  ;;  %17820 = vmatprep.subr.bf16.mxu1 %v18462_v7  ;;  %v8105_v53 = vrot.slane %v8096_v59, 7 }
 0x190   : > { %17121 = vmatpush3.msra.mxu0 %v6756_v35  ;;  %17122 = vmatprep.mubr.f32.mxu0 %v18680_v43 }
 0x191   : > { %16746 = vmatmul.mubr.f32.vlgmr.msra.gmra.mrb[8].mxu1 %v18860_v19  ;;  %17125 = vmatprep.subr.mxu0 %v18865_v20  ;;  %v8106_v62 = vsel %vm254_vm0, %v8105_v53, %v8095_v54 }
 0x192   : > { %17822 = vmatpush3.bf16.msra.mxu1 %v18782_v4  ;;  %16752 = vmatprep.mubr.msk.f32.mxu1 %vm18463_vm5, %v18464_v10  ;;  %v8108_v1 = vsel %vm257_vm1, %v8107_v61, %v8106_v62 }
 0x193   : > { %17823 = vmatprep.subr.bf16.mxu1 %v18462_v7  ;;  %v8110_v2 = vsel %vm260_vm3, %v8109_v0, %v8108_v1 }
 0x195   : > { %16753 = vmatmul.mubr.f32.vlgmr.msra.gmra.mrb[10].mxu1 %v18860_v19 }
 0x196   : > { %17825 = vmatpush3.bf16.msra.mxu1 %v18929_v44  ;;  %17123 = vmatmul.mubr.f32.vlgmr.msra.gmra.mrb[6].mxu0 %v18691_v49 }
 0x197   : > { %16759 = vmatprep.mubr.msk.f32.mxu1 %vm18463_vm5, %v18464_v10  ;;  %17826 = vmatprep.subr.bf16.mxu1 %v18462_v7 }
 0x198   : > { %17126 = vmatpush3.msra.mxu0 %v18865_v20  ;;  %17127 = vmatprep.mubr.f32.mxu0 %v18688_v46  ;;  %v16056_v46 = vld [vmem:[%s19946_s0 + $0x10] sm:$0xff] }
 0x199   : > { %16760 = vmatmul.mubr.f32.vlgmr.msra.gmra.mrb[12].mxu1 %v1810_v58  ;;  %17130 = vmatprep.subr.mxu0 %v18856_v9  ;;  %v8112_v3 = vsel %vm262_vm2, %v16056_v46, 0 }
 0x19a   : > { %17828 = vmatpush3.bf16.msra.mxu1 %v18938_v57  ;;  %16766 = vmatprep.mubr.msk.f32.mxu1 %vm18463_vm5, %v18464_v10  ;;  %v18984_v5 = vand.u32 4294901760, %v8112_v3 }
 0x19b   : > { %17829 = vmatprep.subr.bf16.mxu1 %v18462_v7 }
 0x19c   : > { %v18997_v16 = vsub.f32 %v8112_v3, %v18984_v5 }
 0x19d   : > { %16767 = vmatmul.mubr.f32.vlgmr.msra.gmra.mrb[14].mxu1 %v18896_v38 }
 0x19e   : > { %17831 = vmatpush3.bf16.msra.mxu1 %v18953_v63  ;;  %17128 = vmatmul.mubr.f32.vlgmr.msra.gmra.mrb[6].mxu0 %v18698_v52  ;;  %v8117_v52 = vsel %vm269_vm4, %v8110_v2, 0  ;;  %v19011_v18 = vand.u32 4294901760, %v18997_v16 }
 0x19f   : > { %16773 = vmatprep.mubr.msk.f32.mxu1 %vm18463_vm5, %v18464_v10  ;;  %17832 = vmatprep.subr.bf16.mxu1 %v18462_v7  ;;  %v18987_v6 = vand.u32 4294901760, %v8117_v52 }
 0x1a0   : > { %17131 = vmatpush3.msra.mxu0 %v18856_v9  ;;  %17132 = vmatprep.mubr.f32.mxu0 %v18694_v50  ;;  %v18981_v50 = vpack.c.bf16 %v1826_v39, %v1819_v13  ;;  %v8188_v20 = vsub.f32 %v18997_v16, %v19011_v18  ;;  %v8094_v13 = vld [vmem:[%s19946_s0 + $0x8] sm:$0xff] }
 0x1a1   : > { %16774 = vmatmul.mubr.f32.vlgmr.msra.gmra.mrb[16].mxu1 %v18909_v40  ;;  %17135 = vmatprep.subr.mxu0 %v18868_v24  ;;  %v8207_v15 = vsub.f32 %v8117_v52, %v18987_v6  ;;  %v8622_v59 = vsel %vm262_vm2, %v8094_v13, 0 }
 0x1a2   : > { %17834 = vmatpush3.bf16.msra.mxu1 %v18929_v44  ;;  %16780 = vmatprep.mubr.msk.f32.mxu1 %vm18463_vm5, %v18464_v10  ;;  %v19075_v51 = vand.u32 4294901760, %v8622_v59 }
 0x1a3   : > { %17835 = vmatprep.subr.bf16.mxu1 %v18462_v7  ;;  %v8208_v19 = vand.u32 4294901760, %v8207_v15 }
 0x1a4   : > { %v19085_v61 = vsub.f32 %v8622_v59, %v19075_v51 }
 0x1a5   : > { %16781 = vmatmul.mubr.f32.vlgmr.msra.gmra.mrb[18].mxu1 %v1808_v42  ;;  %v8209_v22 = vsub.f32 %v8207_v15, %v8208_v19 }
 0x1a6   : > { %17837 = vmatpush3.bf16.msra.mxu1 %v18981_v50  ;;  %17133 = vmatmul.mubr.f32.vlgmr.msra.gmra.mrb[6].mxu0 %v18704_v55  ;;  %v19008_v55 = vsub.f32 %v8115_v26, %v18991_v8  ;;  %v19098_v46 = vand.u32 4294901760, %v19085_v61 }
 0x1a7   : > { %16787 = vmatprep.mubr.msk.f32.mxu1 %vm18463_vm5, %v18464_v10  ;;  %17838 = vmatprep.subr.bf16.mxu1 %v18462_v7 }
 0x1a8   : > { %17136 = vmatpush3.msra.mxu0 %v18868_v24  ;;  %17137 = vmatprep.mubr.f32.mxu0 %v18680_v43  ;;  %v19017_v17 = vand.u32 4294901760, %v19008_v55  ;;  %v8705_v52 = vsub.f32 %v19085_v61, %v19098_v46 }
 0x1a9   : > { %16788 = vmatmul.mubr.f32.vlgmr.msra.gmra.mrb[20].mxu1 %v18896_v38  ;;  %17140 = vmatprep.subr.mxu0 %v18856_v9 }
 0x1aa   : > { %17840 = vmatpush3.bf16.msra.mxu1 %v18929_v44  ;;  %16794 = vmatprep.mubr.msk.f32.mxu1 %vm18463_vm5, %v18464_v10  ;;  %v8198_v23 = vsub.f32 %v19008_v55, %v19017_v17 }
 0x1ab   : > { %17841 = vmatprep.subr.bf16.mxu1 %v18462_v7 }
 0x1ac   : > { %v19033_v24 = vand.u32 4294901760, %v8198_v23  ;;  %v10058_v23 = vld [vmem:[%s18615_s26 + $0x2b] sm:$0x1] }
 0x1ad   : > { %16795 = vmatmul.mubr.f32.vlgmr.msra.gmra.mrb[22].mxu1 %v18896_v38  ;;  %v19057_v38 = vand.u32 4294901760, %v8619_v36 }
 0x1ae   : > { %17138 = vmatmul.mubr.f32.vlgmr.msra.gmra.mrb[6].mxu0 %v18691_v49  ;;  %17843 = vmatpush3.bf16.msra.mxu1 %v18782_v4 }
 0x1af   : > { %17141 = vmatpush3.msra.mxu0 %v18856_v9  ;;  %17142 = vmatprep.mubr.f32.mxu0 %v18680_v43  ;;  %v19030_v9 = vand.u32 4294901760, %v8188_v20  ;;  %v8210_v43 = vand.u32 4294901760, %v8209_v22  ;;  %v19070_v45 = vsub.f32 %v8619_v36, %v19057_v38  ;;  %v10057_v20 = vld [vmem:[%s18615_s26 + $0x1b] sm:$0x1] }
 0x1b0   : > { %17229 = vmatprep.subr.mxu0 %v18987_v6  ;;  %16861 = vmatprep.mubr.msk.f32.mxu1 %vm18463_vm5, %v18464_v10 }
 0x1b1   : > { %17844 = vmatprep.subr.bf16.mxu1 %v18462_v7  ;;  %v19078_v54 = vand.u32 4294901760, %v19070_v45 }
 0x1b3   : > { %v8695_v0 = vsub.f32 %v19070_v45, %v19078_v54 }
 0x1b5   : > { %v19102_v3 = vand.u32 4294901760, %v8695_v0 }
 0x1b6   : > { %17143 = vmatmul.mubr.f32.vlgmr.msra.gmra.mrb[6].mxu0 %v18691_v49  ;;  %v8089_v49 = vld [vmem:[%s18615_s26 + $0x8] sm:$0x1] }
 0x1b7   : > { %17230 = vmatpush3.msra.mxu0 %v18987_v6  ;;  %17231 = vmatprep.mubr.f32.mxu0 %v19030_v9  ;;  %v8613_v31 = vsel %vm254_vm0, %v8612_v29, %v8089_v49  ;;  %v10059_v29 = vld [vmem:[%s18615_s26 + $0x3b] sm:$0x1]  ;;  %v10068_v49 = vrot.slane %v10058_v23, 6 }
 0x1b8   : > { %17234 = vmatprep.subr.mxu0 %v8210_v43  ;;  %v8615_v33 = vsel %vm257_vm1, %v8614_v12, %v8613_v31  ;;  %v10070_v12 = vrot.slane %v10059_v29, 5  ;;  %v12018_v29 = vld [vmem:[%s18615_s26 + $0x1d] sm:$0x1] }
 0x1b9   : > { %v8617_v35 = vsel %vm260_vm3, %v8616_v32, %v8615_v33 }
 0x1ba   : > { %17232 = vmatmul.mubr.f32.vlgmr.msra.gmra.mrb[8].mxu0 %v19033_v24  ;;  %v8624_v37 = vsel %vm269_vm4, %v8617_v35, 0 }
 0x1bb   : > { %17235 = vmatpush3.msra.mxu0 %v8210_v43  ;;  %17236 = vmatprep.mubr.f32.mxu0 %v18984_v5  ;;  %v19062_v40 = vand.u32 4294901760, %v8624_v37  ;;  %v10066_v43 = vrot.slane %v10057_v20, 7 }
 0x1bc   : > { %17239 = vmatprep.subr.mxu0 %v8207_v15 }
 0x1bd   : > { %v19073_v48 = vsub.f32 %v8624_v37, %v19062_v40  ;;  %v10067_v30 = vsel %vm254_vm0, %v10066_v43, %v10056_v27 }
 0x1be   : > { %v10069_v31 = vsel %vm257_vm1, %v10068_v49, %v10067_v30  ;;  %v12019_v49 = vld [vmem:[%s18615_s26 + $0x2d] sm:$0x1]  ;;  %v12027_v30 = vrot.slane %v12018_v29, 7 }
 0x1bf   : > { %v19081_v60 = vand.u32 4294901760, %v19073_v48  ;;  %v10071_v32 = vsel %vm260_vm3, %v10070_v12, %v10069_v31  ;;  %v12017_v12 = vld [vmem:[%s18615_s26 + $0xd] sm:$0x1] }
 0x1c0   : > { %v10078_v33 = vsel %vm269_vm4, %v10071_v32, 0  ;;  %v12029_v32 = vrot.slane %v12019_v49, 6 }
 0x1c1   : > { %v8716_v1 = vsub.f32 %v19073_v48, %v19081_v60  ;;  %v19166_v34 = vand.u32 4294901760, %v10078_v33 }
 0x1c2   : > { %17237 = vmatmul.mubr.f32.vlgmr.msra.gmra.mrb[8].mxu0 %v18991_v8 }
 0x1c3   : > { %17240 = vmatpush3.msra.mxu0 %v8207_v15  ;;  %17241 = vmatprep.mubr.f32.mxu0 %v18997_v16  ;;  %v8717_v25 = vand.u32 4294901760, %v8716_v1  ;;  %v10168_v35 = vsub.f32 %v10078_v33, %v19166_v34  ;;  %v12028_v33 = vsel %vm254_vm0, %v12027_v30, %v12017_v12  ;;  %v12012_v30 = vld [vmem:[%s18615_s26 + $0x1c] sm:$0x1] }
 0x1c4   : > { %17244 = vmatprep.subr.mxu0 %v18987_v6 }
 0x1c5   : > { %v10169_v36 = vand.u32 4294901760, %v10168_v35 }
 0x1c7   : > { %v10170_v37 = vsub.f32 %v10168_v35, %v10169_v36 }
 0x1c9   : > { %v10171_v13 = vand.u32 4294901760, %v10170_v37 }
 0x1ca   : > { %17242 = vmatmul.mubr.f32.vlgmr.msra.gmra.mrb[8].mxu0 %v19008_v55 }
 0x1cb   : > { %17245 = vmatpush3.msra.mxu0 %v18987_v6  ;;  %17246 = vmatprep.mubr.f32.mxu0 %v19011_v18 }
 0x1cc   : > { %17249 = vmatprep.subr.mxu0 %v8208_v19 }
 0x1d1   : > { %v16856_v39 = vpop.f32.mrb[2].mxu0 }
 0x1d2   : > { %v3237_v56 = vsel %vm1273_vm6, %v16856_v39, 0  ;;  %v3222_v41 = vpop.f32.mrb[3].mxu0  ;;  %17247 = vmatmul.mubr.f32.vlgmr.msra.gmra.mrb[8].mxu0 %v19017_v17  ;;  %v10051_v39 = vld [vmem:[%s18615_s26 + $0x1a] sm:$0x1] }
 0x1d3   : > { %v3306_v42 = vand.u32 4294901760, %v3237_v56  ;;  %17250 = vmatpush3.msra.mxu0 %v8208_v19  ;;  %17251 = vmatprep.mubr.f32.mxu0 %v18984_v5  ;;  %v3699_v2 = vsel %vm1273_vm6, %v3222_v41, 0  ;;  %v10050_v41 = vld [vmem:[%s18615_s26 + $0xa] sm:$0x1] }
 0x1d4   : > { %17254 = vmatprep.subr.mxu0 %v18987_v6  ;;  %v19108_v26 = vand.u32 4294901760, %v3699_v2 }
 0x1d5   : > { %v3307_v47 = vsub.f32 %v3237_v56, %v3306_v42  ;;  %v10573_v56 = vrot.slane %v10051_v39, 7 }
 0x1d6   : > { %v3769_v15 = vsub.f32 %v3699_v2, %v19108_v26 }
 0x1d7   : > { %v3308_v53 = vand.u32 4294901760, %v3307_v47 }
 0x1d8   : > { %v3770_v19 = vand.u32 4294901760, %v3769_v15 }
 0x1d9   : > { %v3309_v58 = vsub.f32 %v3307_v47, %v3308_v53 }
 0x1da   : > { %17252 = vmatmul.mubr.f32.vlgmr.msra.gmra.mrb[8].mxu0 %v18991_v8  ;;  %v3771_v22 = vsub.f32 %v3769_v15, %v3770_v19 }
 0x1db   : > { %v3310_v62 = vand.u32 4294901760, %v3309_v58  ;;  %17255 = vmatpush3.msra.mxu0 %v18987_v6  ;;  %17256 = vmatprep.mubr.f32.mxu0 %v18984_v5  ;;  %v19118_v6 = vand.u32 4294901760, %v8705_v52 }
 0x1dc   : > { %17259 = vmatprep.subr.mxu0 %v19062_v40  ;;  %v3772_v21 = vand.u32 4294901760, %v3771_v22 }
 0x1dd   : > { %16862 = vmatmul.mubr.f32.vlgmr.msra.gmra.mrb[24].mxu1 %v3310_v62 }
 0x1de   : > { %17846 = vmatpush3.bf16.msra.mxu1 %v18791_v11  ;;  %16868 = vmatprep.mubr.msk.f32.mxu1 %vm18463_vm5, %v18464_v10 }
 0x1df   : > { %17847 = vmatprep.subr.bf16.mxu1 %v18462_v7 }
 0x1e1   : > { %16869 = vmatmul.mubr.f32.vlgmr.msra.gmra.mrb[26].mxu1 %v3306_v42 }
 0x1e2   : > { %17849 = vmatpush3.bf16.msra.mxu1 %v18796_v14  ;;  %17257 = vmatmul.mubr.f32.vlgmr.msra.gmra.mrb[8].mxu0 %v18991_v8 }
 0x1e3   : > { %16875 = vmatprep.mubr.msk.f32.mxu1 %vm18463_vm5, %v18464_v10  ;;  %17850 = vmatprep.subr.bf16.mxu1 %v18462_v7 }
 0x1e4   : > { %17260 = vmatpush3.msra.mxu0 %v19062_v40  ;;  %17261 = vmatprep.mubr.f32.mxu0 %v19102_v3 }
 0x1e5   : > { %16876 = vmatmul.mubr.f32.vlgmr.msra.gmra.mrb[28].mxu1 %v3307_v47  ;;  %17264 = vmatprep.subr.mxu0 %v8717_v25  ;;  %v10574_v47 = vsel %vm254_vm0, %v10573_v56, %v10050_v41 }
 0x1e6   : > { %17852 = vmatpush3.bf16.msra.mxu1 %v18782_v4  ;;  %16882 = vmatprep.mubr.msk.f32.mxu1 %vm18463_vm5, %v18464_v10 }
 0x1e7   : > { %17853 = vmatprep.subr.bf16.mxu1 %v18462_v7 }
 0x1e9   : > { %16883 = vmatmul.mubr.f32.vlgmr.msra.gmra.mrb[30].mxu1 %v3308_v53 }
 0x1ea   : > { %17855 = vmatpush3.bf16.msra.mxu1 %v18806_v28  ;;  %17262 = vmatmul.mubr.f32.vlgmr.msra.gmra.mrb[8].mxu0 %v19118_v6 }
 0x1eb   : > { %16889 = vmatprep.mubr.msk.f32.mxu1 %vm18463_vm5, %v18464_v10  ;;  %17856 = vmatprep.subr.bf16.mxu1 %v18462_v7 }
 0x1ec   : > { %17265 = vmatpush3.msra.mxu0 %v8717_v25  ;;  %17266 = vmatprep.mubr.f32.mxu0 %v19057_v38 }
 0x1ed   : > { %16890 = vmatmul.mubr.f32.vlgmr.msra.gmra.mrb[32].mxu1 %v3306_v42  ;;  %17269 = vmatprep.subr.mxu0 %v19073_v48 }
 0x1ee   : > { %17858 = vmatpush3.bf16.msra.mxu1 %v18782_v4  ;;  %16896 = vmatprep.mubr.msk.f32.mxu1 %vm18463_vm5, %v18464_v10 }
 0x1ef   : > { %17859 = vmatprep.subr.bf16.mxu1 %v18462_v7 }
 0x1f1   : > { %16897 = vmatmul.mubr.f32.vlgmr.msra.gmra.mrb[34].mxu1 %v3306_v42  ;;  %v10053_v42 = vld [vmem:[%s18615_s26 + $0x3a] sm:$0x1] }
 0x1f2   : > { %17861 = vmatpush3.bf16.msra.mxu1 %v18929_v44  ;;  %17267 = vmatmul.mubr.f32.vlgmr.msra.gmra.mrb[8].mxu0 %v19075_v51 }
 0x1f3   : > { %16903 = vmatprep.mubr.msk.f32.mxu1 %vm18463_vm5, %v18464_v10  ;;  %17862 = vmatprep.subr.bf16.mxu1 %v18462_v7 }
 0x1f4   : > { %17270 = vmatpush3.msra.mxu0 %v19073_v48  ;;  %17271 = vmatprep.mubr.f32.mxu0 %v19070_v45  ;;  %v10577_v48 = vrot.slane %v10053_v42, 5 }
 0x1f5   : > { %16904 = vmatmul.mubr.f32.vlgmr.msra.gmra.mrb[36].mxu1 %v3772_v21  ;;  %17274 = vmatprep.subr.mxu0 %v19062_v40 }
 0x1f6   : > { %17864 = vmatpush3.bf16.msra.mxu1 %v18938_v57  ;;  %16910 = vmatprep.mubr.msk.f32.mxu1 %vm18463_vm5, %v18464_v10 }
 0x1f7   : > { %17865 = vmatprep.subr.bf16.mxu1 %v18462_v7 }
 0x1f9   : > { %16911 = vmatmul.mubr.f32.vlgmr.msra.gmra.mrb[38].mxu1 %v19108_v26 }
 0x1fa   : > { %17867 = vmatpush3.bf16.msra.mxu1 %v18953_v63  ;;  %17272 = vmatmul.mubr.f32.vlgmr.msra.gmra.mrb[8].mxu0 %v19085_v61 }
 0x1fb   : > { %16917 = vmatprep.mubr.msk.f32.mxu1 %vm18463_vm5, %v18464_v10  ;;  %17868 = vmatprep.subr.bf16.mxu1 %v18462_v7 }
 0x1fc   : > { %17275 = vmatpush3.msra.mxu0 %v19062_v40  ;;  %17276 = vmatprep.mubr.f32.mxu0 %v19078_v54 }
 0x1fd   : > { %16918 = vmatmul.mubr.f32.vlgmr.msra.gmra.mrb[40].mxu1 %v3769_v15  ;;  %17279 = vmatprep.subr.mxu0 %v19081_v60 }
 0x1fe   : > { %17870 = vmatpush3.bf16.msra.mxu1 %v18929_v44  ;;  %16924 = vmatprep.mubr.msk.f32.mxu1 %vm18463_vm5, %v18464_v10 }
 0x1ff   : > { %17871 = vmatprep.subr.bf16.mxu1 %v18462_v7 }
 0x201   : > { %16925 = vmatmul.mubr.f32.vlgmr.msra.gmra.mrb[42].mxu1 %v3770_v19 }
 0x202   : > { %17873 = vmatpush3.bf16.msra.mxu1 %v18981_v50  ;;  %17277 = vmatmul.mubr.f32.vlgmr.msra.gmra.mrb[8].mxu0 %v19098_v46 }
 0x203   : > { %16931 = vmatprep.mubr.msk.f32.mxu1 %vm18463_vm5, %v18464_v10  ;;  %17874 = vmatprep.subr.bf16.mxu1 %v18462_v7 }
 0x204   : > { %17280 = vmatpush3.msra.mxu0 %v19081_v60  ;;  %17281 = vmatprep.mubr.f32.mxu0 %v19057_v38 }
 0x205   : > { %16932 = vmatmul.mubr.f32.vlgmr.msra.gmra.mrb[44].mxu1 %v19108_v26  ;;  %17284 = vmatprep.subr.mxu0 %v19062_v40 }
 0x206   : > { %17876 = vmatpush3.bf16.msra.mxu1 %v18929_v44  ;;  %16938 = vmatprep.mubr.msk.f32.mxu1 %vm18463_vm5, %v18464_v10 }
 0x207   : > { %17877 = vmatprep.subr.bf16.mxu1 %v18462_v7 }
 0x209   : > { %16939 = vmatmul.mubr.f32.vlgmr.msra.gmra.mrb[46].mxu1 %v19108_v26 }
 0x20a   : > { %17282 = vmatmul.mubr.f32.vlgmr.msra.gmra.mrb[8].mxu0 %v19075_v51  ;;  %17879 = vmatpush3.bf16.msra.mxu1 %v18782_v4 }
 0x20b   : > { %17285 = vmatpush3.msra.mxu0 %v19062_v40  ;;  %17286 = vmatprep.mubr.f32.mxu0 %v19057_v38  ;;  %v10052_v40 = vld [vmem:[%s18615_s26 + $0x2a] sm:$0x1] }
 0x20c   : > { %17373 = vmatprep.subr.mxu0 %v19166_v34  ;;  %17005 = vmatprep.mubr.msk.f32.mxu1 %vm18463_vm5, %v18464_v10  ;;  %v10575_v59 = vrot.slane %v10052_v40, 6 }
 0x20d   : > { %17880 = vmatprep.subr.bf16.mxu1 %v18462_v7 }
 0x20e   : > { %v10576_v53 = vsel %vm257_vm1, %v10575_v59, %v10574_v47  ;;  %v19290_v47 = vld [vmem:[%s19947_s1 + $0x10] sm:$0xff] }
 0x20f   : > { %v10578_v58 = vsel %vm260_vm3, %v10577_v48, %v10576_v53  ;;  %v19295_v48 = vld [vmem:[%s19947_s1 + $0x18] sm:$0xff] }
 0x210   : > { %v10585_v60 = vsel %vm269_vm4, %v10578_v58, 0 }
 0x211   : > { %v19210_v0 = vand.u32 4294901760, %v10585_v60 }
 0x212   : > { %17287 = vmatmul.mubr.f32.vlgmr.msra.gmra.mrb[8].mxu0 %v19075_v51 }
 0x213   : > { %17374 = vmatpush3.msra.mxu0 %v19166_v34  ;;  %17375 = vmatprep.mubr.f32.mxu0 %v19030_v9  ;;  %v10675_v26 = vsub.f32 %v10585_v60, %v19210_v0  ;;  %v7162_v60 = vand.u32 4294901760, %v19290_v47 }
 0x214   : > { %17378 = vmatprep.subr.mxu0 %v10171_v13 }
 0x215   : > { %v19217_v20 = vand.u32 4294901760, %v10675_v26 }
 0x216   : > { %17376 = vmatmul.mubr.f32.vlgmr.msra.gmra.mrb[10].mxu0 %v19033_v24 }
 0x217   : > { %17379 = vmatpush3.msra.mxu0 %v10171_v13  ;;  %17380 = vmatprep.mubr.f32.mxu0 %v18984_v5  ;;  %v10677_v23 = vsub.f32 %v10675_v26, %v19217_v20 }
 0x218   : > { %17383 = vmatprep.subr.mxu0 %v10168_v35 }
 0x219   : > { %v10678_v27 = vand.u32 4294901760, %v10677_v23 }
 0x21e   : > { %17381 = vmatmul.mubr.f32.vlgmr.msra.gmra.mrb[10].mxu0 %v18991_v8 }
 0x21f   : > { %17384 = vmatpush3.msra.mxu0 %v10168_v35  ;;  %17385 = vmatprep.mubr.f32.mxu0 %v18997_v16  ;;  %v12030_v35 = vsel %vm257_vm1, %v12029_v32, %v12028_v33  ;;  %v12534_v32 = vrot.slane %v12012_v30, 7  ;;  %v12011_v33 = vld [vmem:[%s18615_s26 + $0xc] sm:$0x1] }
 0x220   : > { %17388 = vmatprep.subr.mxu0 %v19166_v34 }
 0x226   : > { %17386 = vmatmul.mubr.f32.vlgmr.msra.gmra.mrb[10].mxu0 %v19008_v55 }
 0x227   : > { %17389 = vmatpush3.msra.mxu0 %v19166_v34  ;;  %17390 = vmatprep.mubr.f32.mxu0 %v19011_v18 }
 0x228   : > { %17393 = vmatprep.subr.mxu0 %v10169_v36 }
 0x22d   : > { %v17000_v62 = vpop.f32.mrb[4].mxu0 }
 0x22e   : > { %v5198_v1 = vsel %vm1273_vm6, %v17000_v62, 0  ;;  %v5183_v2 = vpop.f32.mrb[5].mxu0  ;;  %17391 = vmatmul.mubr.f32.vlgmr.msra.gmra.mrb[10].mxu0 %v19017_v17  ;;  %v7165_v62 = vand.u32 4294901760, %v19295_v48 }
 0x22f   : > { %v5267_v25 = vand.u32 4294901760, %v5198_v1  ;;  %17394 = vmatpush3.msra.mxu0 %v10169_v36  ;;  %17395 = vmatprep.mubr.f32.mxu0 %v18984_v5  ;;  %v5660_v43 = vsel %vm1273_vm6, %v5183_v2, 0 }
 0x230   : > { %17398 = vmatprep.subr.mxu0 %v19166_v34  ;;  %v19231_v21 = vand.u32 4294901760, %v5660_v43  ;;  %v19316_v2 = vpack.c.bf16 %v7165_v62, %v7162_v60 }
 0x231   : > { %v5268_v52 = vsub.f32 %v5198_v1, %v5267_v25 }
 0x233   : > { %v5269_v15 = vand.u32 4294901760, %v5268_v52 }
 0x235   : > { %v5270_v19 = vsub.f32 %v5268_v52, %v5269_v15 }
 0x236   : > { %17396 = vmatmul.mubr.f32.vlgmr.msra.gmra.mrb[10].mxu0 %v18991_v8 }
 0x237   : > { %v5271_v22 = vand.u32 4294901760, %v5270_v19  ;;  %17399 = vmatpush3.msra.mxu0 %v19166_v34  ;;  %17400 = vmatprep.mubr.f32.mxu0 %v18984_v5 }
 0x238   : > { %17403 = vmatprep.subr.mxu0 %v19210_v0 }
 0x239   : > { %17006 = vmatmul.mubr.f32.vlgmr.msra.gmra.mrb[48].mxu1 %v5271_v22 }
 0x23a   : > { %17882 = vmatpush3.bf16.msra.mxu1 %v18791_v11  ;;  %17012 = vmatprep.mubr.msk.f32.mxu1 %vm18463_vm5, %v18464_v10  ;;  %v5730_v11 = vsub.f32 %v5660_v43, %v19231_v21 }
 0x23b   : > { %17883 = vmatprep.subr.bf16.mxu1 %v18462_v7 }
 0x23d   : > { %17013 = vmatmul.mubr.f32.vlgmr.msra.gmra.mrb[50].mxu1 %v5267_v25 }
 0x23e   : > { %17885 = vmatpush3.bf16.msra.mxu1 %v18796_v14  ;;  %17401 = vmatmul.mubr.f32.vlgmr.msra.gmra.mrb[10].mxu0 %v18991_v8  ;;  %v5731_v14 = vand.u32 4294901760, %v5730_v11 }
 0x23f   : > { %17019 = vmatprep.mubr.msk.f32.mxu1 %vm18463_vm5, %v18464_v10  ;;  %17886 = vmatprep.subr.bf16.mxu1 %v18462_v7 }
 0x240   : > { %17404 = vmatpush3.msra.mxu0 %v19210_v0  ;;  %17405 = vmatprep.mubr.f32.mxu0 %v19102_v3 }
 0x241   : > { %17020 = vmatmul.mubr.f32.vlgmr.msra.gmra.mrb[52].mxu1 %v5268_v52  ;;  %17408 = vmatprep.subr.mxu0 %v10678_v27 }
 0x242   : > { %17888 = vmatpush3.bf16.msra.mxu1 %v18782_v4  ;;  %17026 = vmatprep.mubr.msk.f32.mxu1 %vm18463_vm5, %v18464_v10 }
 0x243   : > { %17889 = vmatprep.subr.bf16.mxu1 %v18462_v7 }
 0x245   : > { %17027 = vmatmul.mubr.f32.vlgmr.msra.gmra.mrb[54].mxu1 %v5269_v15 }
 0x246   : > { %17891 = vmatpush3.bf16.msra.mxu1 %v18806_v28  ;;  %17406 = vmatmul.mubr.f32.vlgmr.msra.gmra.mrb[10].mxu0 %v19118_v6  ;;  %v5732_v28 = vsub.f32 %v5730_v11, %v5731_v14 }
 0x247   : > { %17033 = vmatprep.mubr.msk.f32.mxu1 %vm18463_vm5, %v18464_v10  ;;  %17892 = vmatprep.subr.bf16.mxu1 %v18462_v7 }
 0x248   : > { %17409 = vmatpush3.msra.mxu0 %v10678_v27  ;;  %17410 = vmatprep.mubr.f32.mxu0 %v19057_v38  ;;  %v5733_v31 = vand.u32 4294901760, %v5732_v28 }
 0x249   : > { %17034 = vmatmul.mubr.f32.vlgmr.msra.gmra.mrb[56].mxu1 %v5267_v25  ;;  %17413 = vmatprep.subr.mxu0 %v10675_v26 }
 0x24a   : > { %17894 = vmatpush3.bf16.msra.mxu1 %v18782_v4  ;;  %17040 = vmatprep.mubr.msk.f32.mxu1 %vm18463_vm5, %v18464_v10  ;;  %v12020_v4 = vld [vmem:[%s18615_s26 + $0x3d] sm:$0x1] }
 0x24b   : > { %17895 = vmatprep.subr.bf16.mxu1 %v18462_v7  ;;  %v12031_v34 = vrot.slane %v12020_v4, 5  ;;  %v12013_v4 = vld [vmem:[%s18615_s26 + $0x2c] sm:$0x1] }
 0x24d   : > { %17041 = vmatmul.mubr.f32.vlgmr.msra.gmra.mrb[58].mxu1 %v5267_v25  ;;  %v12032_v13 = vsel %vm260_vm3, %v12031_v34, %v12030_v35  ;;  %v12014_v34 = vld [vmem:[%s18615_s26 + $0x3c] sm:$0x1]  ;;  %v12536_v35 = vrot.slane %v12013_v4, 6 }
 0x24e   : > { %17897 = vmatpush3.bf16.msra.mxu1 %v18929_v44  ;;  %17411 = vmatmul.mubr.f32.vlgmr.msra.gmra.mrb[10].mxu0 %v19075_v51 }
 0x24f   : > { %17047 = vmatprep.mubr.msk.f32.mxu1 %vm18463_vm5, %v18464_v10  ;;  %17898 = vmatprep.subr.bf16.mxu1 %v18462_v7 }
 0x250   : > { %17414 = vmatpush3.msra.mxu0 %v10675_v26  ;;  %17415 = vmatprep.mubr.f32.mxu0 %v19070_v45 }
 0x251   : > { %17048 = vmatmul.mubr.f32.vlgmr.msra.gmra.mrb[60].mxu1 %v5733_v31  ;;  %17418 = vmatprep.subr.mxu0 %v19210_v0 }
 0x252   : > { %17900 = vmatpush3.bf16.msra.mxu1 %v18938_v57  ;;  %17054 = vmatprep.mubr.msk.f32.mxu1 %vm18463_vm5, %v18464_v10 }
 0x253   : > { %17901 = vmatprep.subr.bf16.mxu1 %v18462_v7 }
 0x254   : > { %v1350_v36 = vpop.f32.mrb[0].mxu1 }
 0x255   : > { %v16719_v37 = vpop.f32.mrb[1].mxu1  ;;  %17055 = vmatmul.mubr.f32.vlgmr.msra.gmra.mrb[62].mxu1 %v19231_v21 }
 0x256   : > { %17903 = vmatpush3.bf16.msra.mxu1 %v18953_v63  ;;  %17416 = vmatmul.mubr.f32.vlgmr.msra.gmra.mrb[10].mxu0 %v19085_v61  ;;  %v12039_v63 = vsel %vm269_vm4, %v12032_v13, 0  ;;  %v12535_v13 = vsel %vm254_vm0, %v12534_v32, %v12011_v33 }
 0x257   : > { %17061 = vmatprep.mubr.msk.f32.mxu1 %vm18463_vm5, %v18464_v10  ;;  %17904 = vmatprep.subr.bf16.mxu1 %v18462_v7  ;;  %v19285_v41 = vand.u32 4294901760, %v12039_v63 }
 0x258   : > { %v1431_v57 = vpop.f32.mrb[2].mxu1  ;;  %17419 = vmatpush3.msra.mxu0 %v19210_v0  ;;  %17420 = vmatprep.mubr.f32.mxu0 %v19078_v54 }
 0x259   : > { %v1432_v39 = vadd.f32 %v1431_v57, %v1350_v36  ;;  %v16726_v40 = vpop.f32.mrb[3].mxu1  ;;  %17062 = vmatmul.mubr.f32.vlgmr.msra.gmra.mrb[64].mxu1 %v5730_v11  ;;  %17423 = vmatprep.subr.mxu0 %v19217_v20  ;;  %v12129_v58 = vsub.f32 %v12039_v63, %v19285_v41  ;;  %v12538_v57 = vrot.slane %v12014_v34, 5  ;;  %v12537_v63 = vsel %vm257_vm1, %v12536_v35, %v12535_v13  ;;  %v13978_v13 = vld [vmem:[%s18615_s26 + $0xf] sm:$0x1] }
 0x25a   : > { %17906 = vmatpush3.bf16.msra.mxu1 %v18929_v44  ;;  %17068 = vmatprep.mubr.msk.f32.mxu1 %vm18463_vm5, %v18464_v10  ;;  %v19345_v40 = vpop.permute.xlu0 %2200 }
 0x25b   : > { %17907 = vmatprep.subr.bf16.mxu1 %v18462_v7  ;;  %v19319_v52 = vand.u32 4294901760, %v12129_v58 }
 0x25c   : > { %v1507_v56 = vpop.f32.mrb[4].mxu1 }
 0x25d   : > { %v1508_v42 = vadd.f32 %v1507_v56, %v1432_v39  ;;  %v16733_v59 = vpop.f32.mrb[5].mxu1  ;;  %17069 = vmatmul.mubr.f32.vlgmr.msra.gmra.mrb[66].mxu1 %v5731_v14  ;;  %v12131_v19 = vsub.f32 %v12129_v58, %v19319_v52 }
 0x25e   : > { %17909 = vmatpush3.bf16.msra.mxu1 %v18981_v50  ;;  %17421 = vmatmul.mubr.f32.vlgmr.msra.gmra.mrb[10].mxu0 %v19098_v46  ;;  %v19357_v59 = vsub.f32 %v19295_v48, %v7165_v62 }
 0x25f   : > { %17075 = vmatprep.mubr.msk.f32.mxu1 %vm18463_vm5, %v18464_v10  ;;  %17910 = vmatprep.subr.bf16.mxu1 %v18462_v7  ;;  %v12132_v43 = vand.u32 4294901760, %v12131_v19 }
 0x260   : > { %v1582_v53 = vpop.f32.mrb[6].mxu1  ;;  %17424 = vmatpush3.msra.mxu0 %v19217_v20  ;;  %17425 = vmatprep.mubr.f32.mxu0 %v19057_v38 }
 0x261   : > { %v1583_v1 = vadd.f32 %v1582_v53, %v1508_v42  ;;  %v16740_v50 = vpop.f32.mrb[7].mxu1  ;;  %17076 = vmatmul.mubr.f32.vlgmr.msra.gmra.mrb[68].mxu1 %v19231_v21  ;;  %17428 = vmatprep.subr.mxu0 %v19210_v0 }
 0x262   : > { %17912 = vmatpush3.bf16.msra.mxu1 %v18929_v44  ;;  %17082 = vmatprep.mubr.msk.f32.mxu1 %vm18463_vm5, %v18464_v10 }
 0x263   : > { %17913 = vmatprep.subr.bf16.mxu1 %v18462_v7 }
 0x264   : > { %v1659_v25 = vpop.f32.mrb[8].mxu1 }
 0x265   : > { %v1660_v26 = vadd.f32 %v1659_v25, %v1583_v1  ;;  %v16747_v15 = vpop.f32.mrb[9].mxu1  ;;  %17083 = vmatmul.mubr.f32.vlgmr.msra.gmra.mrb[70].mxu1 %v19231_v21 }
 0x266   : > { %17426 = vmatmul.mubr.f32.vlgmr.msra.gmra.mrb[10].mxu0 %v19075_v51  ;;  %17915 = vmatpush3.bf16.msra.mxu1 %v19316_v2 }
 0x267   : > { %17429 = vmatpush3.msra.mxu0 %v19210_v0  ;;  %17430 = vmatprep.mubr.f32.mxu0 %v19057_v38 }
 0x268   : > { %v1732_v44 = vpop.f32.mrb[10].mxu1  ;;  %17517 = vmatprep.subr.mxu0 %v19285_v41  ;;  %17149 = vmatprep.mubr.msk.f32.mxu1 %vm18463_vm5, %v18464_v10 }
 0x269   : > { %v1733_v20 = vadd.f32 %v1732_v44, %v1660_v26  ;;  %v16754_v22 = vpop.f32.mrb[11].mxu1  ;;  %17916 = vmatprep.subr.bf16.mxu1 %v18462_v7 }
 0x26c   : > { %v1812_v23 = vpop.f32.mrb[12].mxu1 }
 0x26d   : > { %v1813_v27 = vadd.f32 %v1812_v23, %v1733_v20  ;;  %v16761_v21 = vpop.f32.mrb[13].mxu1 }
 0x26e   : > { %17431 = vmatmul.mubr.f32.vlgmr.msra.gmra.mrb[10].mxu0 %v19075_v51  ;;  %v7155_v21 = vld [vmem:[%s19947_s1 + $0x8] sm:$0xff] }
 0x26f   : > { %17518 = vmatpush3.msra.mxu0 %v19285_v41  ;;  %17519 = vmatprep.mubr.f32.mxu0 %v19030_v9 }
 0x270   : > { %v1893_v0 = vpop.f32.mrb[14].mxu1  ;;  %17522 = vmatprep.subr.mxu0 %v12132_v43 }
 0x271   : > { %v1894_v11 = vadd.f32 %v1893_v0, %v1813_v27  ;;  %v16768_v14 = vpop.f32.mrb[15].mxu1  ;;  %v7154_v27 = vld [vmem:[%s19947_s1] sm:$0xff] }
 0x272   : > { %17520 = vmatmul.mubr.f32.vlgmr.msra.gmra.mrb[12].mxu0 %v19033_v24 }
 0x273   : > { %17523 = vmatpush3.msra.mxu0 %v12132_v43  ;;  %17524 = vmatprep.mubr.f32.mxu0 %v18984_v5 }
 0x274   : > { %v1969_v29 = vpop.f32.mrb[16].mxu1  ;;  %17527 = vmatprep.subr.mxu0 %v12129_v58 }
 0x275   : > { %v1970_v28 = vadd.f32 %v1969_v29, %v1894_v11  ;;  %v16775_v49 = vpop.f32.mrb[17].mxu1  ;;  %v7627_v11 = vand.u32 4294901760, %v7155_v21 }
 0x277   : > { %v19416_v49 = vsub.f32 %v7155_v21, %v7627_v11 }
 0x278   : > { %v2044_v12 = vpop.f32.mrb[18].mxu1 }
 0x279   : > { %v2045_v31 = vadd.f32 %v2044_v12, %v1970_v28  ;;  %v16782_v9 = vpop.f32.mrb[19].mxu1 }
 0x27a   : > { %17525 = vmatmul.mubr.f32.vlgmr.msra.gmra.mrb[12].mxu0 %v18991_v8 }
 0x27b   : > { %17528 = vmatpush3.msra.mxu0 %v12129_v58  ;;  %17529 = vmatprep.mubr.f32.mxu0 %v18997_v16  ;;  %v19352_v16 = vsub.f32 %v19290_v47, %v7162_v60  ;;  %v12539_v58 = vsel %vm260_vm3, %v12538_v57, %v12537_v63  ;;  %v7248_v47 = vand.u32 4294901760, %v19357_v59  ;;  %v13981_v63 = vld [vmem:[%s18615_s26 + $0x3f] sm:$0x1] }
 0x27c   : > { %v2121_v24 = vpop.f32.mrb[20].mxu1  ;;  %17532 = vmatprep.subr.mxu0 %v19285_v41  ;;  %v12546_v48 = vsel %vm269_vm4, %v12539_v58, 0 }
 0x27d   : > { %v2122_v36 = vadd.f32 %v2121_v24, %v2045_v31  ;;  %v16789_v37 = vpop.f32.mrb[21].mxu1  ;;  %v19370_v62 = vand.u32 4294901760, %v12546_v48  ;;  %v7249_v25 = vsub.f32 %v19357_v59, %v7248_v47  ;;  %v7710_v31 = vand.u32 4294901760, %v19416_v49 }
 0x27f   : > { %v19383_v44 = vsub.f32 %v12546_v48, %v19370_v62  ;;  %v7250_v20 = vand.u32 4294901760, %v7249_v25  ;;  %v7711_v4 = vsub.f32 %v19416_v49, %v7710_v31 }
 0x280   : > { %v2194_v39 = vpop.f32.mrb[22].mxu1 }
 0x281   : > { %v2195_v56 = vadd.f32 %v2194_v39, %v2122_v36  ;;  %v16796_v42 = vpop.f32.mrb[23].mxu1  ;;  %v19386_v23 = vand.u32 4294901760, %v19383_v44  ;;  %v7712_v34 = vand.u32 4294901760, %v7711_v4  ;;  %v13980_v36 = vld [vmem:[%s18615_s26 + $0x2f] sm:$0x1] }
 0x282   : > { %17530 = vmatmul.mubr.f32.vlgmr.msra.gmra.mrb[12].mxu0 %v19008_v55  ;;  %v7241_v55 = vand.u32 4294901760, %v19352_v16 }
 0x283   : > { %v2203_v53 = vadd.f32 %v19345_v40, %v2195_v56  ;;  %17533 = vmatpush3.msra.mxu0 %v19285_v41  ;;  %17534 = vmatprep.mubr.f32.mxu0 %v19011_v18  ;;  %v12638_v0 = vsub.f32 %v19383_v44, %v19386_v23  ;;  %v13990_v56 = vrot.slane %v13980_v36, 6 }
 0x284   : > { %17537 = vmatprep.subr.mxu0 %v19319_v52  ;;  %v7242_v50 = vsub.f32 %v19352_v16, %v7241_v55 }
 0x285   : > { %2205 = vst.msk [vmem:[%s19364_s27] sm:$0xff] %vm2204_vm7, %v2203_v53  ;;  %v12639_v29 = vand.u32 4294901760, %v12638_v0 }
 0x286   : > { %v7243_v19 = vand.u32 4294901760, %v7242_v50 }
 0x288   : > { %v19389_v43 = vpack.c.bf16 %v7250_v20, %v7243_v19 }
 0x289   : > { %v17144_v60 = vpop.f32.mrb[6].mxu0 }
 0x28a   : > { %v7159_v1 = vsel %vm1273_vm6, %v17144_v60, 0  ;;  %v7144_v18 = vpop.f32.mrb[7].mxu0  ;;  %17535 = vmatmul.mubr.f32.vlgmr.msra.gmra.mrb[12].mxu0 %v19017_v17 }
 0x28b   : > { %v19376_v26 = vand.u32 4294901760, %v7159_v1  ;;  %17538 = vmatpush3.msra.mxu0 %v19319_v52  ;;  %17539 = vmatprep.mubr.f32.mxu0 %v18984_v5  ;;  %v7621_v14 = vsel %vm1273_vm6, %v7144_v18, 0 }
 0x28c   : > { %17542 = vmatprep.subr.mxu0 %v19285_v41  ;;  %v19418_v30 = vand.u32 4294901760, %v7621_v14 }
 0x28d   : > { %v7229_v15 = vsub.f32 %v7159_v1, %v19376_v26  ;;  %v16069_v1 = vld [vmem:[%s19946_s0 + $0x18] sm:$0xff] }
 0x28e   : > { %v19433_v9 = vsub.f32 %v7621_v14, %v19418_v30 }
 0x28f   : > { %v7230_v17 = vand.u32 4294901760, %v7229_v15 }
 0x290   : > { %v7692_v32 = vand.u32 4294901760, %v19433_v9 }
 0x291   : > { %v7231_v22 = vsub.f32 %v7229_v15, %v7230_v17 }
 0x292   : > { %17540 = vmatmul.mubr.f32.vlgmr.msra.gmra.mrb[12].mxu0 %v18991_v8  ;;  %v7693_v35 = vsub.f32 %v19433_v9, %v7692_v32 }
 0x293   : > { %v7232_v52 = vand.u32 4294901760, %v7231_v22  ;;  %17543 = vmatpush3.msra.mxu0 %v19285_v41  ;;  %17544 = vmatprep.mubr.f32.mxu0 %v18984_v5  ;;  %v19407_v5 = vpack.c.bf16 %v19357_v59, %v19352_v16  ;;  %v7624_v41 = vand.u32 4294901760, %v7154_v27  ;;  %v13992_v59 = vrot.slane %v13981_v63, 5 }
 0x294   : > { %17547 = vmatprep.subr.mxu0 %v19370_v62  ;;  %v7694_v39 = vand.u32 4294901760, %v7693_v35 }
 0x295   : > { %17150 = vmatmul.mubr.f32.vlgmr.msra.gmra.mrb[72].mxu1 %v7232_v52  ;;  %v19414_v28 = vsub.f32 %v7154_v27, %v7624_v41  ;;  %v19455_v33 = vpack.c.bf16 %v7627_v11, %v7624_v41 }
 0x296   : > { %17918 = vmatpush3.bf16.msra.mxu1 %v19389_v43  ;;  %17156 = vmatprep.mubr.msk.f32.mxu1 %vm18463_vm5, %v18464_v10 }
 0x297   : > { %17919 = vmatprep.subr.bf16.mxu1 %v18462_v7  ;;  %v7703_v12 = vand.u32 4294901760, %v19414_v28  ;;  %v19481_v16 = vpack.c.bf16 %v19416_v49, %v19414_v28 }
 0x299   : > { %17157 = vmatmul.mubr.f32.vlgmr.msra.gmra.mrb[74].mxu1 %v19376_v26 }
 0x29a   : > { %17921 = vmatpush3.bf16.msra.mxu1 %v19407_v5  ;;  %17545 = vmatmul.mubr.f32.vlgmr.msra.gmra.mrb[12].mxu0 %v18991_v8  ;;  %v19428_v8 = vpack.c.bf16 %v7248_v47, %v7241_v55  ;;  %v16068_v55 = vld [vmem:[%s19946_s0 + $0x10] sm:$0xff] }
 0x29b   : > { %17163 = vmatprep.mubr.msk.f32.mxu1 %vm18463_vm5, %v18464_v10  ;;  %17922 = vmatprep.subr.bf16.mxu1 %v18462_v7  ;;  %v13995_v60 = vsel %vm262_vm2, %v16068_v55, 0  ;;  %v13975_v55 = vld [vmem:[%s18615_s26 + $0x3e] sm:$0x1] }
 0x29c   : > { %17548 = vmatpush3.msra.mxu0 %v19370_v62  ;;  %17549 = vmatprep.mubr.f32.mxu0 %v19102_v3  ;;  %v7704_v3 = vsub.f32 %v19414_v28, %v7703_v12  ;;  %v19514_v25 = vand.u32 4294901760, %v13995_v60 }
 0x29d   : > { %17164 = vmatmul.mubr.f32.vlgmr.msra.gmra.mrb[76].mxu1 %v7229_v15  ;;  %17552 = vmatprep.subr.mxu0 %v12639_v29 }
 0x29e   : > { %17924 = vmatpush3.bf16.msra.mxu1 %v19316_v2  ;;  %17170 = vmatprep.mubr.msk.f32.mxu1 %vm18463_vm5, %v18464_v10  ;;  %v7705_v24 = vand.u32 4294901760, %v7704_v3  ;;  %v19529_v22 = vsub.f32 %v13995_v60, %v19514_v25 }
 0x29f   : > { %17925 = vmatprep.subr.bf16.mxu1 %v18462_v7 }
 0x2a0   : > { %v19466_v57 = vpack.c.bf16 %v7712_v34, %v7705_v24 }
 0x2a1   : > { %17171 = vmatmul.mubr.f32.vlgmr.msra.gmra.mrb[78].mxu1 %v7230_v17 }
 0x2a2   : > { %17927 = vmatpush3.bf16.msra.mxu1 %v19428_v8  ;;  %17550 = vmatmul.mubr.f32.vlgmr.msra.gmra.mrb[12].mxu0 %v19118_v6  ;;  %v13979_v6 = vld [vmem:[%s18615_s26 + $0x1f] sm:$0x1] }
 0x2a3   : > { %17177 = vmatprep.mubr.msk.f32.mxu1 %vm18463_vm5, %v18464_v10  ;;  %17928 = vmatprep.subr.bf16.mxu1 %v18462_v7  ;;  %v13988_v37 = vrot.slane %v13979_v6, 7 }
 0x2a4   : > { %17553 = vmatpush3.msra.mxu0 %v12639_v29  ;;  %17554 = vmatprep.mubr.f32.mxu0 %v19057_v38 }
 0x2a5   : > { %17178 = vmatmul.mubr.f32.vlgmr.msra.gmra.mrb[80].mxu1 %v19376_v26  ;;  %17557 = vmatprep.subr.mxu0 %v19383_v44  ;;  %v13989_v42 = vsel %vm254_vm0, %v13988_v37, %v13978_v13 }
 0x2a6   : > { %17930 = vmatpush3.bf16.msra.mxu1 %v19316_v2  ;;  %17184 = vmatprep.mubr.msk.f32.mxu1 %vm18463_vm5, %v18464_v10  ;;  %v13991_v53 = vsel %vm257_vm1, %v13990_v56, %v13989_v42 }
 0x2a7   : > { %17931 = vmatprep.subr.bf16.mxu1 %v18462_v7  ;;  %v13993_v47 = vsel %vm260_vm3, %v13992_v59, %v13991_v53  ;;  %v13974_v59 = vld [vmem:[%s18615_s26 + $0x2e] sm:$0x1] }
 0x2a8   : > { %v14000_v50 = vsel %vm269_vm4, %v13993_v47, 0  ;;  %v14497_v47 = vrot.slane %v13974_v59, 6 }
 0x2a9   : > { %17185 = vmatmul.mubr.f32.vlgmr.msra.gmra.mrb[82].mxu1 %v19376_v26  ;;  %v13998_v26 = vsel %vm262_vm2, %v16069_v1, 0 }
 0x2aa   : > { %17933 = vmatpush3.bf16.msra.mxu1 %v19455_v33  ;;  %17555 = vmatmul.mubr.f32.vlgmr.msra.gmra.mrb[12].mxu0 %v19075_v51  ;;  %v19523_v17 = vand.u32 4294901760, %v13998_v26 }
 0x2ab   : > { %17191 = vmatprep.mubr.msk.f32.mxu1 %vm18463_vm5, %v18464_v10  ;;  %17934 = vmatprep.subr.bf16.mxu1 %v18462_v7 }
 0x2ac   : > { %17558 = vmatpush3.msra.mxu0 %v19383_v44  ;;  %17559 = vmatprep.mubr.f32.mxu0 %v19070_v45  ;;  %v19517_v44 = vand.u32 4294901760, %v14000_v50 }
 0x2ad   : > { %17192 = vmatmul.mubr.f32.vlgmr.msra.gmra.mrb[84].mxu1 %v7694_v39  ;;  %17562 = vmatprep.subr.mxu0 %v19370_v62 }
 0x2ae   : > { %17936 = vmatpush3.bf16.msra.mxu1 %v19466_v57  ;;  %17198 = vmatprep.mubr.msk.f32.mxu1 %vm18463_vm5, %v18464_v10  ;;  %v14090_v27 = vsub.f32 %v14000_v50, %v19517_v44 }
 0x2af   : > { %17937 = vmatprep.subr.bf16.mxu1 %v18462_v7 }
 0x2b0   : > { %v3312_v45 = vpop.f32.mrb[24].mxu1  ;;  %v19544_v11 = vand.u32 4294901760, %v14090_v27 }
 0x2b1   : > { %v16863_v58 = vpop.f32.mrb[25].mxu1  ;;  %17199 = vmatmul.mubr.f32.vlgmr.msra.gmra.mrb[86].mxu1 %v19418_v30 }
 0x2b2   : > { %17939 = vmatpush3.bf16.msra.mxu1 %v19481_v16  ;;  %17560 = vmatmul.mubr.f32.vlgmr.msra.gmra.mrb[12].mxu0 %v19085_v61 }
 0x2b3   : > { %17205 = vmatprep.mubr.msk.f32.mxu1 %vm18463_vm5, %v18464_v10  ;;  %17940 = vmatprep.subr.bf16.mxu1 %v18462_v7 }
 0x2b4   : > { %v3393_v48 = vpop.f32.mrb[26].mxu1  ;;  %17563 = vmatpush3.msra.mxu0 %v19370_v62  ;;  %17564 = vmatprep.mubr.f32.mxu0 %v19078_v54  ;;  %v19511_v54 = vpack.c.bf16 %v7710_v31, %v7703_v12  ;;  %v14092_v31 = vsub.f32 %v14090_v27, %v19544_v11 }
 0x2b5   : > { %v3394_v18 = vadd.f32 %v3393_v48, %v3312_v45  ;;  %v16870_v61 = vpop.f32.mrb[27].mxu1  ;;  %17206 = vmatmul.mubr.f32.vlgmr.msra.gmra.mrb[88].mxu1 %v19433_v9  ;;  %17567 = vmatprep.subr.mxu0 %v19386_v23  ;;  %v13972_v45 = vld [vmem:[%s18615_s26 + $0xe] sm:$0x1] }
 0x2b6   : > { %17942 = vmatpush3.bf16.msra.mxu1 %v19455_v33  ;;  %17212 = vmatprep.mubr.msk.f32.mxu1 %vm18463_vm5, %v18464_v10  ;;  %v14093_v4 = vand.u32 4294901760, %v14092_v31 }
 0x2b7   : > { %17943 = vmatprep.subr.bf16.mxu1 %v18462_v7 }
 0x2b8   : > { %v3469_v15 = vpop.f32.mrb[28].mxu1 }
 0x2b9   : > { %v3470_v19 = vadd.f32 %v3469_v15, %v3394_v18  ;;  %v16877_v20 = vpop.f32.mrb[29].mxu1  ;;  %17213 = vmatmul.mubr.f32.vlgmr.msra.gmra.mrb[90].mxu1 %v7692_v32  ;;  %v14499_v18 = vrot.slane %v13975_v55, 5 }
 0x2ba   : > { %17945 = vmatpush3.bf16.msra.mxu1 %v19511_v54  ;;  %17565 = vmatmul.mubr.f32.vlgmr.msra.gmra.mrb[12].mxu0 %v19098_v46  ;;  %v19540_v46 = vsub.f32 %v13998_v26, %v19523_v17 }
 0x2bb   : > { %17219 = vmatprep.mubr.msk.f32.mxu1 %vm18463_vm5, %v18464_v10  ;;  %17946 = vmatprep.subr.bf16.mxu1 %v18462_v7 }
 0x2bc   : > { %v3544_v52 = vpop.f32.mrb[30].mxu1  ;;  %17568 = vmatpush3.msra.mxu0 %v19386_v23  ;;  %17569 = vmatprep.mubr.f32.mxu0 %v19057_v38  ;;  %v14070_v23 = vand.u32 4294901760, %v19529_v22  ;;  %v14080_v28 = vand.u32 4294901760, %v19540_v46 }
 0x2bd   : > { %v3545_v21 = vadd.f32 %v3544_v52, %v3470_v19  ;;  %v16884_v0 = vpop.f32.mrb[31].mxu1  ;;  %17220 = vmatmul.mubr.f32.vlgmr.msra.gmra.mrb[92].mxu1 %v19418_v30  ;;  %17572 = vmatprep.subr.mxu0 %v19370_v62  ;;  %v13976_v19 = vld [vmem:[%s19946_s0] sm:$0xff] }
 0x2be   : > { %17948 = vmatpush3.bf16.msra.mxu1 %v19455_v33  ;;  %17226 = vmatprep.mubr.msk.f32.mxu1 %vm18463_vm5, %v18464_v10  ;;  %v14071_v49 = vsub.f32 %v19529_v22, %v14070_v23 }
 0x2bf   : > { %17949 = vmatprep.subr.bf16.mxu1 %v18462_v7 }
 0x2c0   : > { %v3621_v41 = vpop.f32.mrb[32].mxu1 }
 0x2c1   : > { %v3622_v14 = vadd.f32 %v3621_v41, %v3545_v21  ;;  %v16891_v29 = vpop.f32.mrb[33].mxu1  ;;  %17227 = vmatmul.mubr.f32.vlgmr.msra.gmra.mrb[94].mxu1 %v19418_v30  ;;  %v13977_v41 = vld [vmem:[%s19946_s0 + $0x8] sm:$0xff] }
 0x2c2   : > { %17570 = vmatmul.mubr.f32.vlgmr.msra.gmra.mrb[12].mxu0 %v19075_v51  ;;  %17951 = vmatpush3.bf16.msra.mxu1 %v19316_v2 }
 0x2c3   : > { %17573 = vmatpush3.msra.mxu0 %v19370_v62  ;;  %17574 = vmatprep.mubr.f32.mxu0 %v19057_v38  ;;  %v14081_v38 = vsub.f32 %v19540_v46, %v14080_v28  ;;  %v14072_v62 = vand.u32 4294901760, %v14071_v49 }
 0x2c4   : > { %v3694_v12 = vpop.f32.mrb[34].mxu1  ;;  %17661 = vmatprep.subr.mxu0 %v19517_v44  ;;  %17293 = vmatprep.mubr.msk.f32.mxu1 %vm18463_vm5, %v18464_v10 }
 0x2c5   : > { %v3695_v30 = vadd.f32 %v3694_v12, %v3622_v14  ;;  %v16898_v9 = vpop.f32.mrb[35].mxu1  ;;  %17952 = vmatprep.subr.bf16.mxu1 %v18462_v7  ;;  %v14082_v24 = vand.u32 4294901760, %v14081_v38  ;;  %v14505_v12 = vsel %vm262_vm2, %v13977_v41, 0 }
 0x2c6   : > { %v19605_v38 = vand.u32 4294901760, %v14505_v12 }
 0x2c8   : > { %v3774_v3 = vpop.f32.mrb[36].mxu1 }
 0x2c9   : > { %v3775_v32 = vadd.f32 %v3774_v3, %v3695_v30  ;;  %v16905_v6 = vpop.f32.mrb[37].mxu1 }
 0x2ca   : > { %17575 = vmatmul.mubr.f32.vlgmr.msra.gmra.mrb[12].mxu0 %v19075_v51  ;;  %v13973_v51 = vld [vmem:[%s18615_s26 + $0x1e] sm:$0x1]  ;;  %s18466_s26 = smov 8  }
 0x2cb   : > { %17662 = vmatpush3.msra.mxu0 %v19517_v44  ;;  %17663 = vmatprep.mubr.f32.mxu0 %v14072_v62  ;;  %v14495_v53 = vrot.slane %v13973_v51, 7 }
 0x2cc   : > { %v3855_v34 = vpop.f32.mrb[38].mxu1  ;;  %17666 = vmatprep.subr.mxu0 %v14093_v4 }
 0x2cd   : > { %v3856_v35 = vadd.f32 %v3855_v34, %v3775_v32  ;;  %v16912_v36 = vpop.f32.mrb[39].mxu1  ;;  %v14496_v1 = vsel %vm254_vm0, %v14495_v53, %v13972_v45 }
 0x2ce   : > { %17664 = vmatmul.mubr.f32.vlgmr.msra.gmra.mrb[14].mxu0 %v14082_v24  ;;  %v14498_v50 = vsel %vm257_vm1, %v14497_v47, %v14496_v1 }
 0x2cf   : > { %17667 = vmatpush3.msra.mxu0 %v14093_v4  ;;  %17668 = vmatprep.mubr.f32.mxu0 %v19514_v25  ;;  %v14500_v52 = vsel %vm260_vm3, %v14499_v18, %v14498_v50 }
 0x2d0   : > { %v3931_v37 = vpop.f32.mrb[40].mxu1  ;;  %17671 = vmatprep.subr.mxu0 %v14090_v27  ;;  %v14507_v21 = vsel %vm269_vm4, %v14500_v52, 0 }
 0x2d1   : > { %v3932_v13 = vadd.f32 %v3931_v37, %v3856_v35  ;;  %v16919_v39 = vpop.f32.mrb[41].mxu1  ;;  %v19592_v29 = vand.u32 4294901760, %v14507_v21 }
 0x2d3   : > { %v14597_v9 = vsub.f32 %v14507_v21, %v19592_v29 }
 0x2d4   : > { %v4006_v63 = vpop.f32.mrb[42].mxu1 }
 0x2d5   : > { %v4007_v56 = vadd.f32 %v4006_v63, %v3932_v13  ;;  %v16926_v42 = vpop.f32.mrb[43].mxu1  ;;  %v19608_v3 = vand.u32 4294901760, %v14597_v9 }
 0x2d6   : > { %17669 = vmatmul.mubr.f32.vlgmr.msra.gmra.mrb[14].mxu0 %v19523_v17 }
 0x2d7   : > { %17672 = vmatpush3.msra.mxu0 %v14090_v27  ;;  %17673 = vmatprep.mubr.f32.mxu0 %v19529_v22  ;;  %v14502_v27 = vsel %vm262_vm2, %v13976_v19, 0  ;;  %v14599_v6 = vsub.f32 %v14597_v9, %v19608_v3 }
 0x2d8   : > { %v4083_v58 = vpop.f32.mrb[44].mxu1  ;;  %17676 = vmatprep.subr.mxu0 %v19517_v44  ;;  %v19587_v0 = vand.u32 4294901760, %v14502_v27 }
 0x2d9   : > { %v4084_v48 = vadd.f32 %v4083_v58, %v4007_v56  ;;  %v16933_v60 = vpop.f32.mrb[45].mxu1  ;;  %v14600_v34 = vand.u32 4294901760, %v14599_v6 }
 0x2da   : > { %v19602_v31 = vsub.f32 %v14502_v27, %v19587_v0 }
 0x2dc   : > { %v4156_v61 = vpop.f32.mrb[46].mxu1 }
 0x2dd   : > { %v4157_v26 = vadd.f32 %v4156_v61, %v4084_v48  ;;  %v16940_v15 = vpop.f32.mrb[47].mxu1 }
 0x2de   : > { %17674 = vmatmul.mubr.f32.vlgmr.msra.gmra.mrb[14].mxu0 %v19540_v46  ;;  %v14577_v46 = vand.u32 4294901760, %v19602_v31 }
 0x2df   : > { %v4160_v20 = vadd.f32 %v4157_v26, %v19345_v40  ;;  %17677 = vmatpush3.msra.mxu0 %v19517_v44  ;;  %17678 = vmatprep.mubr.f32.mxu0 %v14070_v23 }
 0x2e0   : > { %17681 = vmatprep.subr.mxu0 %v19544_v11  ;;  %v14578_v32 = vsub.f32 %v19602_v31, %v14577_v46 }
 0x2e1   : > { %4162 = vrot.lane.b32.xlu0 %v4160_v20, %s18466_s26  ;;  %s18470_s26 = smov 40  }
 0x2e5   : > { %v17288_v14 = vpop.f32.mrb[8].mxu0 }
 0x2e6   : > { %v9120_v22 = vsel %vm1273_vm6, %v17288_v14, 0  ;;  %v9105_v23 = vpop.f32.mrb[9].mxu0  ;;  %17679 = vmatmul.mubr.f32.vlgmr.msra.gmra.mrb[14].mxu0 %v14080_v28 }
 0x2e7   : > { %v9189_v49 = vand.u32 4294901760, %v9120_v22  ;;  %17682 = vmatpush3.msra.mxu0 %v19544_v11  ;;  %17683 = vmatprep.mubr.f32.mxu0 %v19514_v25  ;;  %v19612_v11 = vsub.f32 %v14505_v12, %v19605_v38 }
 0x2e8   : > { %17686 = vmatprep.subr.mxu0 %v19517_v44 }
 0x2e9   : > { %v9190_v30 = vsub.f32 %v9120_v22, %v9189_v49  ;;  %v14587_v24 = vand.u32 4294901760, %v19612_v11 }
 0x2eb   : > { %v9191_v62 = vand.u32 4294901760, %v9190_v30  ;;  %v14588_v35 = vsub.f32 %v19612_v11, %v14587_v24 }
 0x2ed   : > { %v9192_v28 = vsub.f32 %v9190_v30, %v9191_v62 }
 0x2ee   : > { %17684 = vmatmul.mubr.f32.vlgmr.msra.gmra.mrb[14].mxu0 %v19523_v17 }
 0x2ef   : > { %v9193_v4 = vand.u32 4294901760, %v9192_v28  ;;  %17687 = vmatpush3.msra.mxu0 %v19517_v44  ;;  %17688 = vmatprep.mubr.f32.mxu0 %v19514_v25  ;;  %v9582_v25 = vsel %vm1273_vm6, %v9105_v23, 0  ;;  %v14579_v44 = vand.u32 4294901760, %v14578_v32 }
 0x2f0   : > { %17691 = vmatprep.subr.mxu0 %v19592_v29  ;;  %v19632_v36 = vand.u32 4294901760, %v9582_v25 }
 0x2f1   : > { %17294 = vmatmul.mubr.f32.vlgmr.msra.gmra.mrb[96].mxu1 %v9193_v4 }
 0x2f2   : > { %17954 = vmatpush3.bf16.msra.mxu1 %v19389_v43  ;;  %17300 = vmatprep.mubr.msk.f32.mxu1 %vm18463_vm5, %v18464_v10  ;;  %v9652_v37 = vsub.f32 %v9582_v25, %v19632_v36 }
 0x2f3   : > { %17955 = vmatprep.subr.bf16.mxu1 %v18462_v7 }
 0x2f4   : > { %v9653_v13 = vand.u32 4294901760, %v9652_v37 }
 0x2f5   : > { %17301 = vmatmul.mubr.f32.vlgmr.msra.gmra.mrb[98].mxu1 %v9189_v49 }
 0x2f6   : > { %17957 = vmatpush3.bf16.msra.mxu1 %v19407_v5  ;;  %17689 = vmatmul.mubr.f32.vlgmr.msra.gmra.mrb[14].mxu0 %v19523_v17  ;;  %v14589_v17 = vand.u32 4294901760, %v14588_v35  ;;  %v9654_v39 = vsub.f32 %v9652_v37, %v9653_v13 }
 0x2f7   : > { %17307 = vmatprep.mubr.msk.f32.mxu1 %vm18463_vm5, %v18464_v10  ;;  %17958 = vmatprep.subr.bf16.mxu1 %v18462_v7 }
 0x2f8   : > { %17692 = vmatpush3.msra.mxu0 %v19592_v29  ;;  %17693 = vmatprep.mubr.f32.mxu0 %v14579_v44  ;;  %v9655_v51 = vand.u32 4294901760, %v9654_v39 }
 0x2f9   : > { %17308 = vmatmul.mubr.f32.vlgmr.msra.gmra.mrb[100].mxu1 %v9190_v30  ;;  %17696 = vmatprep.subr.mxu0 %v14600_v34 }
 0x2fa   : > { %17960 = vmatpush3.bf16.msra.mxu1 %v19316_v2  ;;  %17314 = vmatprep.mubr.msk.f32.mxu1 %vm18463_vm5, %v18464_v10 }
 0x2fb   : > { %17961 = vmatprep.subr.bf16.mxu1 %v18462_v7 }
 0x2fd   : > { %17315 = vmatmul.mubr.f32.vlgmr.msra.gmra.mrb[102].mxu1 %v9191_v62 }
 0x2fe   : > { %17963 = vmatpush3.bf16.msra.mxu1 %v19428_v8  ;;  %17694 = vmatmul.mubr.f32.vlgmr.msra.gmra.mrb[14].mxu0 %v14589_v17 }
 0x2ff   : > { %17321 = vmatprep.mubr.msk.f32.mxu1 %vm18463_vm5, %v18464_v10  ;;  %17964 = vmatprep.subr.bf16.mxu1 %v18462_v7 }
 0x300   : > { %17697 = vmatpush3.msra.mxu0 %v14600_v34  ;;  %17698 = vmatprep.mubr.f32.mxu0 %v19587_v0 }
 0x301   : > { %17322 = vmatmul.mubr.f32.vlgmr.msra.gmra.mrb[104].mxu1 %v9189_v49  ;;  %17701 = vmatprep.subr.mxu0 %v14597_v9 }
 0x302   : > { %17966 = vmatpush3.bf16.msra.mxu1 %v19316_v2  ;;  %17328 = vmatprep.mubr.msk.f32.mxu1 %vm18463_vm5, %v18464_v10 }
 0x303   : > { %17967 = vmatprep.subr.bf16.mxu1 %v18462_v7 }
 0x305   : > { %17329 = vmatmul.mubr.f32.vlgmr.msra.gmra.mrb[106].mxu1 %v9189_v49 }
 0x306   : > { %17969 = vmatpush3.bf16.msra.mxu1 %v19455_v33  ;;  %17699 = vmatmul.mubr.f32.vlgmr.msra.gmra.mrb[14].mxu0 %v19605_v38 }
 0x307   : > { %17335 = vmatprep.mubr.msk.f32.mxu1 %vm18463_vm5, %v18464_v10  ;;  %17970 = vmatprep.subr.bf16.mxu1 %v18462_v7 }
 0x308   : > { %17702 = vmatpush3.msra.mxu0 %v14597_v9  ;;  %17703 = vmatprep.mubr.f32.mxu0 %v19602_v31 }
 0x309   : > { %17336 = vmatmul.mubr.f32.vlgmr.msra.gmra.mrb[108].mxu1 %v9655_v51  ;;  %17706 = vmatprep.subr.mxu0 %v19592_v29 }
 0x30a   : > { %17972 = vmatpush3.bf16.msra.mxu1 %v19466_v57  ;;  %17342 = vmatprep.mubr.msk.f32.mxu1 %vm18463_vm5, %v18464_v10 }
 0x30b   : > { %17973 = vmatprep.subr.bf16.mxu1 %v18462_v7 }
 0x30c   : > { %v5273_v63 = vpop.f32.mrb[48].mxu1 }
 0x30d   : > { %v17007_v56 = vpop.f32.mrb[49].mxu1  ;;  %17343 = vmatmul.mubr.f32.vlgmr.msra.gmra.mrb[110].mxu1 %v19632_v36 }
 0x30e   : > { %17975 = vmatpush3.bf16.msra.mxu1 %v19481_v16  ;;  %17704 = vmatmul.mubr.f32.vlgmr.msra.gmra.mrb[14].mxu0 %v19612_v11  ;;  %v16067_v56 = vld [vmem:[%s19947_s1 + $0x18] sm:$0xff] }
 0x30f   : > { %17349 = vmatprep.mubr.msk.f32.mxu1 %vm18463_vm5, %v18464_v10  ;;  %17976 = vmatprep.subr.bf16.mxu1 %v18462_v7 }
 0x310   : > { %v5354_v42 = vpop.f32.mrb[50].mxu1  ;;  %17707 = vmatpush3.msra.mxu0 %v19592_v29  ;;  %17708 = vmatprep.mubr.f32.mxu0 %v14577_v46 }
 0x311   : > { %v5355_v59 = vadd.f32 %v5354_v42, %v5273_v63  ;;  %v17014_v53 = vpop.f32.mrb[51].mxu1  ;;  %17350 = vmatmul.mubr.f32.vlgmr.msra.gmra.mrb[112].mxu1 %v9652_v37  ;;  %17711 = vmatprep.subr.mxu0 %v19608_v3 }
 0x312   : > { %17978 = vmatpush3.bf16.msra.mxu1 %v19455_v33  ;;  %17356 = vmatprep.mubr.msk.f32.mxu1 %vm18463_vm5, %v18464_v10  ;;  %v13048_v53 = vand.u32 4294901760, %v16067_v56 }
 0x313   : > { %17979 = vmatprep.subr.bf16.mxu1 %v18462_v7 }
 0x314   : > { %v5430_v45 = vpop.f32.mrb[52].mxu1 }
 0x315   : > { %v5431_v58 = vadd.f32 %v5430_v45, %v5355_v59  ;;  %v17021_v55 = vpop.f32.mrb[53].mxu1  ;;  %17357 = vmatmul.mubr.f32.vlgmr.msra.gmra.mrb[114].mxu1 %v9653_v13 }
 0x316   : > { %17981 = vmatpush3.bf16.msra.mxu1 %v19511_v54  ;;  %17709 = vmatmul.mubr.f32.vlgmr.msra.gmra.mrb[14].mxu0 %v14587_v24 }
 0x317   : > { %17363 = vmatprep.mubr.msk.f32.mxu1 %vm18463_vm5, %v18464_v10  ;;  %17982 = vmatprep.subr.bf16.mxu1 %v18462_v7 }
 0x318   : > { %v5505_v47 = vpop.f32.mrb[54].mxu1  ;;  %17712 = vmatpush3.msra.mxu0 %v19608_v3  ;;  %17713 = vmatprep.mubr.f32.mxu0 %v19587_v0 }
 0x319   : > { %v5506_v48 = vadd.f32 %v5505_v47, %v5431_v58  ;;  %v17028_v60 = vpop.f32.mrb[55].mxu1  ;;  %17364 = vmatmul.mubr.f32.vlgmr.msra.gmra.mrb[116].mxu1 %v19632_v36  ;;  %17716 = vmatprep.subr.mxu0 %v19592_v29 }
 0x31a   : > { %17984 = vmatpush3.bf16.msra.mxu1 %v19455_v33  ;;  %17370 = vmatprep.mubr.msk.f32.mxu1 %vm18463_vm5, %v18464_v10 }
 0x31b   : > { %17985 = vmatprep.subr.bf16.mxu1 %v18462_v7 }
 0x31c   : > { %v5582_v1 = vpop.f32.mrb[56].mxu1 }
 0x31d   : > { %v5583_v18 = vadd.f32 %v5582_v1, %v5506_v48  ;;  %v17035_v61 = vpop.f32.mrb[57].mxu1  ;;  %17371 = vmatmul.mubr.f32.vlgmr.msra.gmra.mrb[118].mxu1 %v19632_v36 }
 0x31e   : > { %17714 = vmatmul.mubr.f32.vlgmr.msra.gmra.mrb[14].mxu0 %v19605_v38  ;;  %17987 = vmatpush3.bf16.msra.mxu1 %v19316_v2 }
 0x31f   : > { %17717 = vmatpush3.msra.mxu0 %v19592_v29  ;;  %17718 = vmatprep.mubr.f32.mxu0 %v19587_v0 }
 0x320   : > { %v5655_v50 = vpop.f32.mrb[58].mxu1  ;;  %17437 = vmatprep.mubr.msk.f32.mxu1 %vm18463_vm5, %v18464_v10  ;;  %17988 = vmatprep.subr.bf16.mxu1 %v18462_v7 }
 0x321   : > { %v5656_v26 = vadd.f32 %v5655_v50, %v5583_v18  ;;  %v17042_v15 = vpop.f32.mrb[59].mxu1 }
 0x324   : > { %v5735_v19 = vpop.f32.mrb[60].mxu1 }
 0x325   : > { %v5736_v20 = vadd.f32 %v5735_v19, %v5656_v26  ;;  %v17049_v52 = vpop.f32.mrb[61].mxu1 }
 0x326   : > { %17719 = vmatmul.mubr.f32.vlgmr.msra.gmra.mrb[14].mxu0 %v19605_v38 }
 0x328   : > { %v5816_v27 = vpop.f32.mrb[62].mxu1 }
 0x329   : > { %v5817_v21 = vadd.f32 %v5816_v27, %v5736_v20  ;;  %v17056_v41 = vpop.f32.mrb[63].mxu1 }
 0x32c   : > { %v5892_v14 = vpop.f32.mrb[64].mxu1 }
 0x32d   : > { %v5893_v29 = vadd.f32 %v5892_v14, %v5817_v21  ;;  %v17063_v22 = vpop.f32.mrb[65].mxu1 }
 0x330   : > { %v5967_v0 = vpop.f32.mrb[66].mxu1 }
 0x331   : > { %v5968_v23 = vadd.f32 %v5967_v0, %v5893_v29  ;;  %v17070_v49 = vpop.f32.mrb[67].mxu1 }
 0x334   : > { %v6044_v12 = vpop.f32.mrb[68].mxu1 }
 0x335   : > { %v6045_v31 = vadd.f32 %v6044_v12, %v5968_v23  ;;  %v17077_v30 = vpop.f32.mrb[69].mxu1 }
 0x336   : > { %v13130_v30 = vsub.f32 %v16067_v56, %v13048_v53 }
 0x338   : > { %v6117_v9 = vpop.f32.mrb[70].mxu1 }
 0x339   : > { %v6118_v62 = vadd.f32 %v6117_v9, %v6045_v31  ;;  %v17084_v46 = vpop.f32.mrb[71].mxu1 }
 0x33a   : > { %v13131_v46 = vand.u32 4294901760, %v13130_v30 }
 0x33b   : > { %v6121_v28 = vadd.f32 %v6118_v62, %v19345_v40 }
 0x33d   : > { %6123 = vrot.lane.b32.xlu1 %v6121_v28, %s18467_s13  ;;  %s16073_s13 = sshll.u32 %s18449_s18, 7  ;;  %s18473_s18 = smov [#allocation5]  }
 0x33e   : > { %s19896_s7 = scalar_lea.hbm %s19950_s4, %s16073_s13  ;;  %s18379_s11 = sshll.u32 %s18473_s18, 4  ;;  %s18380_s11 = int_to_ptr.vmem [resolvable:$false] %s18379_s11 }
 0x33f   : > { %s18381_s21 = scalar_lea.vmem %s18380_s11, 256  ;;  %p18382_p6 = scmp.lt.s32.totalorder %s19898_s14, %s18380_s11 }
 0x340   : > { %p18383_p13 = scmp.lt.s32.totalorder %s18381_s21, %s18375_s9 }
 0x341   : > { %v17432_v38 = vpop.f32.mrb[10].mxu0 }
 0x342   : > { %v11081_v3 = vsel %vm1273_vm6, %v17432_v38, 0  ;;  %v11066_v11 = vpop.f32.mrb[11].mxu0  ;;  %p18384_p2 = por %p18383_p13, %p18382_p6 }
 0x343   : > { %v11150_v4 = vand.u32 4294901760, %v11081_v3  ;;  %v11543_v44 = vsel %vm1273_vm6, %v11066_v11, 0 }
 0x344   : > { %v11612_v34 = vand.u32 4294901760, %v11543_v44  ;;  %p18385_p5 = pnand %p18384_p2, %p18378_p0 }
 0x345   : > { %v11151_v32 = vsub.f32 %v11081_v3, %v11150_v4 }
 0x347   : > { %v11152_v6 = vand.u32 4294901760, %v11151_v32 }
 0x349   : > { %v11153_v24 = vsub.f32 %v11151_v32, %v11152_v6 }
 0x34b   : > { %v11154_v25 = vand.u32 4294901760, %v11153_v24 }
 0x34d   : > { %17438 = vmatmul.mubr.f32.vlgmr.msra.gmra.mrb[120].mxu1 %v11154_v25 }
 0x34e   : > { %17990 = vmatpush3.bf16.msra.mxu1 %v19389_v43  ;;  %17444 = vmatprep.mubr.msk.f32.mxu1 %vm18463_vm5, %v18464_v10  ;;  %v11613_v43 = vsub.f32 %v11543_v44, %v11612_v34 }
 0x34f   : > { %17991 = vmatprep.subr.bf16.mxu1 %v18462_v7 }
 0x351   : > { %17445 = vmatmul.mubr.f32.vlgmr.msra.gmra.mrb[122].mxu1 %v11150_v4 }
 0x352   : > { %17993 = vmatpush3.bf16.msra.mxu1 %v19407_v5  ;;  %17451 = vmatprep.mubr.msk.f32.mxu1 %vm18463_vm5, %v18464_v10  ;;  %v11614_v5 = vand.u32 4294901760, %v11613_v43 }
 0x353   : > { %v4163_v35 = vpop.permute.xlu0 %4162  ;;  %17994 = vmatprep.subr.bf16.mxu1 %v18462_v7 }
 0x354   : > { %4166 = vst.msk [vmem:[%s19364_s27] sm:$0xff] %vm4165_vm8, %v4163_v35  ;;  %v11615_v36 = vsub.f32 %v11613_v43, %v11614_v5 }
 0x355   : > { %17452 = vmatmul.mubr.f32.vlgmr.msra.gmra.mrb[124].mxu1 %v11151_v32 }
 0x356   : > { %17996 = vmatpush3.bf16.msra.mxu1 %v19316_v2  ;;  %17458 = vmatprep.mubr.msk.f32.mxu1 %vm18463_vm5, %v18464_v10 }
 0x357   : > { %17997 = vmatprep.subr.bf16.mxu1 %v18462_v7 }
 0x359   : > { %17459 = vmatmul.mubr.f32.vlgmr.msra.gmra.mrb[126].mxu1 %v11152_v6 }
 0x35a   : > { %17999 = vmatpush3.bf16.msra.mxu1 %v19428_v8  ;;  %17465 = vmatprep.mubr.msk.f32.mxu1 %vm18463_vm5, %v18464_v10  ;;  %v11616_v8 = vand.u32 4294901760, %v11615_v36  ;;  %v13038_v36 = vld [vmem:[%s19947_s1 + $0x8] sm:$0xff] }
 0x35b   : > { %18000 = vmatprep.subr.bf16.mxu1 %v18462_v7 }
 0x35d   : > { %17466 = vmatmul.mubr.f32.vlgmr.msra.gmra.mrb[128].mxu1 %v11150_v4 }
 0x35e   : > { %18002 = vmatpush3.bf16.msra.mxu1 %v19316_v2  ;;  %17472 = vmatprep.mubr.msk.f32.mxu1 %vm18463_vm5, %v18464_v10 }
 0x35f   : > { %18003 = vmatprep.subr.bf16.mxu1 %v18462_v7 }
 0x361   : > { %17473 = vmatmul.mubr.f32.vlgmr.msra.gmra.mrb[130].mxu1 %v11150_v4  ;;  %v13132_v4 = vsub.f32 %v13130_v30, %v13131_v46 }
 0x362   : > { %18005 = vmatpush3.bf16.msra.mxu1 %v19455_v33  ;;  %17479 = vmatprep.mubr.msk.f32.mxu1 %vm18463_vm5, %v18464_v10 }
 0x363   : > { %18006 = vmatprep.subr.bf16.mxu1 %v18462_v7  ;;  %v13133_v25 = vand.u32 4294901760, %v13132_v4 }
 0x365   : > { %17480 = vmatmul.mubr.f32.vlgmr.msra.gmra.mrb[132].mxu1 %v11616_v8 }
 0x366   : > { %18008 = vmatpush3.bf16.msra.mxu1 %v19466_v57  ;;  %17486 = vmatprep.mubr.msk.f32.mxu1 %vm18463_vm5, %v18464_v10 }
 0x367   : > { %18009 = vmatprep.subr.bf16.mxu1 %v18462_v7 }
 0x368   : > { %v7234_v2 = vpop.f32.mrb[72].mxu1 }
 0x369   : > { %v17151_v17 = vpop.f32.mrb[73].mxu1  ;;  %17487 = vmatmul.mubr.f32.vlgmr.msra.gmra.mrb[134].mxu1 %v11612_v34 }
 0x36a   : > { %18011 = vmatpush3.bf16.msra.mxu1 %v19481_v16  ;;  %17493 = vmatprep.mubr.msk.f32.mxu1 %vm18463_vm5, %v18464_v10  ;;  %v16066_v16 = vld [vmem:[%s19947_s1 + $0x10] sm:$0xff]  ;;  %v13510_v17 = vand.u32 4294901760, %v13038_v36 }
 0x36b   : > { %18012 = vmatprep.subr.bf16.mxu1 %v18462_v7  ;;  %v13045_v59 = vand.u32 4294901760, %v16066_v16 }
 0x36c   : > { %v7315_v37 = vpop.f32.mrb[74].mxu1 }
 0x36d   : > { %v7316_v13 = vadd.f32 %v7315_v37, %v7234_v2  ;;  %v17158_v39 = vpop.f32.mrb[75].mxu1  ;;  %17494 = vmatmul.mubr.f32.vlgmr.msra.gmra.mrb[136].mxu1 %v11613_v43  ;;  %v19753_v55 = vpack.c.bf16 %v13048_v53, %v13045_v59  ;;  %v13123_v31 = vsub.f32 %v16066_v16, %v13045_v59 }
 0x36e   : > { %18014 = vmatpush3.bf16.msra.mxu1 %v19455_v33  ;;  %17500 = vmatprep.mubr.msk.f32.mxu1 %vm18463_vm5, %v18464_v10  ;;  %v13592_v39 = vsub.f32 %v13038_v36, %v13510_v17 }
 0x36f   : > { %18015 = vmatprep.subr.bf16.mxu1 %v18462_v7  ;;  %v13124_v62 = vand.u32 4294901760, %v13123_v31  ;;  %v19773_v8 = vpack.c.bf16 %v13130_v30, %v13123_v31 }
 0x370   : > { %v7391_v57 = vpop.f32.mrb[76].mxu1  ;;  %v13593_v56 = vand.u32 4294901760, %v13592_v39 }
 0x371   : > { %v7392_v51 = vadd.f32 %v7391_v57, %v7316_v13  ;;  %v17165_v63 = vpop.f32.mrb[77].mxu1  ;;  %17501 = vmatmul.mubr.f32.vlgmr.msra.gmra.mrb[138].mxu1 %v11614_v5  ;;  %v13125_v11 = vsub.f32 %v13123_v31, %v13124_v62  ;;  %v13037_v5 = vld [vmem:[%s19947_s1] sm:$0xff] }
 0x372   : > { %18017 = vmatpush3.bf16.msra.mxu1 %v19511_v54  ;;  %17507 = vmatprep.mubr.msk.f32.mxu1 %vm18463_vm5, %v18464_v10  ;;  %v13507_v2 = vand.u32 4294901760, %v13037_v5  ;;  %v19787_v63 = vpack.c.bf16 %v13131_v46, %v13124_v62  ;;  %v13594_v53 = vsub.f32 %v13592_v39, %v13593_v56 }
 0x373   : > { %18018 = vmatprep.subr.bf16.mxu1 %v18462_v7  ;;  %v13126_v24 = vand.u32 4294901760, %v13125_v11 }
 0x374   : > { %v7466_v42 = vpop.f32.mrb[78].mxu1  ;;  %v13585_v13 = vsub.f32 %v13037_v5, %v13507_v2 }
 0x375   : > { %v7467_v45 = vadd.f32 %v7466_v42, %v7392_v51  ;;  %v17172_v58 = vpop.f32.mrb[79].mxu1  ;;  %17508 = vmatmul.mubr.f32.vlgmr.msra.gmra.mrb[140].mxu1 %v11612_v34  ;;  %v19762_v35 = vpack.c.bf16 %v13133_v25, %v13126_v24 }
 0x376   : > { %18020 = vmatpush3.bf16.msra.mxu1 %v19455_v33  ;;  %17514 = vmatprep.mubr.msk.f32.mxu1 %vm18463_vm5, %v18464_v10  ;;  %v13586_v16 = vand.u32 4294901760, %v13585_v13  ;;  %v19798_v58 = vpack.c.bf16 %v13510_v17, %v13507_v2 }
 0x377   : > { %18021 = vmatprep.subr.bf16.mxu1 %v18462_v7 }
 0x378   : > { %v7543_v54 = vpop.f32.mrb[80].mxu1  ;;  %v13587_v59 = vsub.f32 %v13585_v13, %v13586_v16 }
 0x379   : > { %v7544_v47 = vadd.f32 %v7543_v54, %v7467_v45  ;;  %v17179_v48 = vpop.f32.mrb[81].mxu1  ;;  %17515 = vmatmul.mubr.f32.vlgmr.msra.gmra.mrb[142].mxu1 %v11612_v34 }
 0x37a   : > { %18023 = vmatpush3.bf16.msra.mxu1 %v19753_v55  ;;  %17581 = vmatprep.mubr.msk.f32.mxu1 %vm18463_vm5, %v18464_v10  ;;  %v13588_v54 = vand.u32 4294901760, %v13587_v59 }
 0x37b   : > { %18024 = vmatprep.subr.bf16.mxu1 %v18462_v7 }
 0x37c   : > { %v7616_v60 = vpop.f32.mrb[82].mxu1 }
 0x37d   : > { %v7617_v33 = vadd.f32 %v7616_v60, %v7544_v47  ;;  %v17186_v1 = vpop.f32.mrb[83].mxu1  ;;  %v13595_v47 = vand.u32 4294901760, %v13594_v53 }
 0x37e   : > { %v19810_v1 = vpack.c.bf16 %v13592_v39, %v13585_v13 }
 0x37f   : > { %v19804_v60 = vpack.c.bf16 %v13595_v47, %v13588_v54 }
 0x380   : > { %v7696_v18 = vpop.f32.mrb[84].mxu1 }
 0x381   : > { %v7697_v61 = vadd.f32 %v7696_v18, %v7617_v33  ;;  %v17193_v50 = vpop.f32.mrb[85].mxu1 }
 0x384   : > { %v7777_v26 = vpop.f32.mrb[86].mxu1 }
 0x385   : > { %v7778_v15 = vadd.f32 %v7777_v26, %v7697_v61  ;;  %v17200_v19 = vpop.f32.mrb[87].mxu1 }
 0x386   : > { %v19821_v19 = vpack.c.bf16 %v13593_v56, %v13586_v16 }
 0x388   : > { %v7853_v20 = vpop.f32.mrb[88].mxu1 }
 0x389   : > { %v7854_v52 = vadd.f32 %v7853_v20, %v7778_v15  ;;  %v17207_v27 = vpop.f32.mrb[89].mxu1 }
 0x38c   : > { %v7928_v21 = vpop.f32.mrb[90].mxu1 }
 0x38d   : > { %v7929_v41 = vadd.f32 %v7928_v21, %v7854_v52  ;;  %v17214_v14 = vpop.f32.mrb[91].mxu1 }
 0x390   : > { %v8005_v29 = vpop.f32.mrb[92].mxu1 }
 0x391   : > { %v8006_v22 = vadd.f32 %v8005_v29, %v7929_v41  ;;  %v17221_v0 = vpop.f32.mrb[93].mxu1 }
 0x394   : > { %v8078_v23 = vpop.f32.mrb[94].mxu1 }
 0x395   : > { %v8079_v49 = vadd.f32 %v8078_v23, %v8006_v22  ;;  %v17228_v12 = vpop.f32.mrb[95].mxu1 }
 0x397   : > { %v8082_v9 = vadd.f32 %v8079_v49, %v19345_v40 }
 0x399   : > { %8084 = vrot.lane.b32.xlu1 %v8082_v9, %s18468_s8  ;;  %s15934_s8 = scalar_lea.sflag [#allocation4], %s18611_s22 }
 0x39d   : > { %v17576_v28 = vpop.f32.mrb[12].mxu0 }
 0x39e   : > { %v13042_v38 = vsel %vm1273_vm6, %v17576_v28, 0  ;;  %v13027_v3 = vpop.f32.mrb[13].mxu0 }
 0x39f   : > { %v13111_v32 = vand.u32 4294901760, %v13042_v38  ;;  %v13504_v37 = vsel %vm1273_vm6, %v13027_v3, 0 }
 0x3a0   : > { %v19780_v57 = vand.u32 4294901760, %v13504_v37 }
 0x3a1   : > { %v13112_v6 = vsub.f32 %v13042_v38, %v13111_v32 }
 0x3a2   : > { %v13574_v42 = vsub.f32 %v13504_v37, %v19780_v57 }
 0x3a3   : > { %v13113_v44 = vand.u32 4294901760, %v13112_v6 }
 0x3a4   : > { %v13575_v45 = vand.u32 4294901760, %v13574_v42 }
 0x3a5   : > { %v13114_v34 = vsub.f32 %v13112_v6, %v13113_v44 }
 0x3a6   : > { %v13576_v48 = vsub.f32 %v13574_v42, %v13575_v45 }
 0x3a7   : > { %v13115_v43 = vand.u32 4294901760, %v13114_v34 }
 0x3a8   : > { %v13577_v33 = vand.u32 4294901760, %v13576_v48 }
 0x3a9   : > { %17582 = vmatmul.mubr.f32.vlgmr.msra.gmra.mrb[144].mxu1 %v13115_v43 }
 0x3aa   : > { %18026 = vmatpush3.bf16.msra.mxu1 %v19762_v35  ;;  %17588 = vmatprep.mubr.msk.f32.mxu1 %vm18463_vm5, %v18464_v10 }
 0x3ab   : > { %18027 = vmatprep.subr.bf16.mxu1 %v18462_v7 }
 0x3ad   : > { %17589 = vmatmul.mubr.f32.vlgmr.msra.gmra.mrb[146].mxu1 %v13111_v32 }
 0x3ae   : > { %18029 = vmatpush3.bf16.msra.mxu1 %v19773_v8  ;;  %17595 = vmatprep.mubr.msk.f32.mxu1 %vm18463_vm5, %v18464_v10 }
 0x3af   : > { %v6124_v51 = vpop.permute.xlu1 %6123  ;;  %18030 = vmatprep.subr.bf16.mxu1 %v18462_v7 }
 0x3b0   : > { %6127 = vst.msk [vmem:[%s19364_s27] sm:$0xff] %vm6126_vm9, %v6124_v51 }
 0x3b1   : > { %17596 = vmatmul.mubr.f32.vlgmr.msra.gmra.mrb[148].mxu1 %v13112_v6 }
 0x3b2   : > { %18032 = vmatpush3.bf16.msra.mxu1 %v19753_v55  ;;  %17602 = vmatprep.mubr.msk.f32.mxu1 %vm18463_vm5, %v18464_v10 }
 0x3b3   : > { %18033 = vmatprep.subr.bf16.mxu1 %v18462_v7 }
 0x3b5   : > { %17603 = vmatmul.mubr.f32.vlgmr.msra.gmra.mrb[150].mxu1 %v13113_v44 }
 0x3b6   : > { %18035 = vmatpush3.bf16.msra.mxu1 %v19787_v63  ;;  %17609 = vmatprep.mubr.msk.f32.mxu1 %vm18463_vm5, %v18464_v10 }
 0x3b7   : > { %18036 = vmatprep.subr.bf16.mxu1 %v18462_v7 }
 0x3b9   : > { %17610 = vmatmul.mubr.f32.vlgmr.msra.gmra.mrb[152].mxu1 %v13111_v32 }
 0x3ba   : > { %18038 = vmatpush3.bf16.msra.mxu1 %v19753_v55  ;;  %17616 = vmatprep.mubr.msk.f32.mxu1 %vm18463_vm5, %v18464_v10 }
 0x3bb   : > { %18039 = vmatprep.subr.bf16.mxu1 %v18462_v7 }
 0x3bd   : > { %17617 = vmatmul.mubr.f32.vlgmr.msra.gmra.mrb[154].mxu1 %v13111_v32 }
 0x3be   : > { %18041 = vmatpush3.bf16.msra.mxu1 %v19798_v58  ;;  %17623 = vmatprep.mubr.msk.f32.mxu1 %vm18463_vm5, %v18464_v10 }
 0x3bf   : > { %18042 = vmatprep.subr.bf16.mxu1 %v18462_v7 }
 0x3c1   : > { %17624 = vmatmul.mubr.f32.vlgmr.msra.gmra.mrb[156].mxu1 %v13577_v33 }
 0x3c2   : > { %18044 = vmatpush3.bf16.msra.mxu1 %v19804_v60  ;;  %17630 = vmatprep.mubr.msk.f32.mxu1 %vm18463_vm5, %v18464_v10 }
 0x3c3   : > { %18045 = vmatprep.subr.bf16.mxu1 %v18462_v7 }
 0x3c4   : > { %v9195_v18 = vpop.f32.mrb[96].mxu1 }
 0x3c5   : > { %v17295_v61 = vpop.f32.mrb[97].mxu1  ;;  %17631 = vmatmul.mubr.f32.vlgmr.msra.gmra.mrb[158].mxu1 %v19780_v57 }
 0x3c6   : > { %18047 = vmatpush3.bf16.msra.mxu1 %v19810_v1  ;;  %17637 = vmatprep.mubr.msk.f32.mxu1 %vm18463_vm5, %v18464_v10 }
 0x3c7   : > { %18048 = vmatprep.subr.bf16.mxu1 %v18462_v7 }
 0x3c8   : > { %v9276_v50 = vpop.f32.mrb[98].mxu1 }
 0x3c9   : > { %v9277_v26 = vadd.f32 %v9276_v50, %v9195_v18  ;;  %v17302_v15 = vpop.f32.mrb[99].mxu1  ;;  %17638 = vmatmul.mubr.f32.vlgmr.msra.gmra.mrb[160].mxu1 %v13574_v42 }
 0x3ca   : > { %18050 = vmatpush3.bf16.msra.mxu1 %v19798_v58  ;;  %17644 = vmatprep.mubr.msk.f32.mxu1 %vm18463_vm5, %v18464_v10 }
 0x3cb   : > { %18051 = vmatprep.subr.bf16.mxu1 %v18462_v7 }
 0x3cc   : > { %v9352_v20 = vpop.f32.mrb[100].mxu1 }
 0x3cd   : > { %v9353_v52 = vadd.f32 %v9352_v20, %v9277_v26  ;;  %v17309_v27 = vpop.f32.mrb[101].mxu1  ;;  %17645 = vmatmul.mubr.f32.vlgmr.msra.gmra.mrb[162].mxu1 %v13575_v45 }
 0x3ce   : > { %18053 = vmatpush3.bf16.msra.mxu1 %v19821_v19  ;;  %17651 = vmatprep.mubr.msk.f32.mxu1 %vm18463_vm5, %v18464_v10 }
 0x3cf   : > { %18054 = vmatprep.subr.bf16.mxu1 %v18462_v7 }
 0x3d0   : > { %v9427_v21 = vpop.f32.mrb[102].mxu1 }
 0x3d1   : > { %v9428_v41 = vadd.f32 %v9427_v21, %v9353_v52  ;;  %v17316_v14 = vpop.f32.mrb[103].mxu1  ;;  %17652 = vmatmul.mubr.f32.vlgmr.msra.gmra.mrb[164].mxu1 %v19780_v57 }
 0x3d2   : > { %18056 = vmatpush3.bf16.msra.mxu1 %v19798_v58  ;;  %17658 = vmatprep.mubr.msk.f32.mxu1 %vm18463_vm5, %v18464_v10 }
 0x3d3   : > { %18057 = vmatprep.subr.bf16.mxu1 %v18462_v7 }
 0x3d4   : > { %v9504_v29 = vpop.f32.mrb[104].mxu1 }
 0x3d5   : > { %v9505_v22 = vadd.f32 %v9504_v29, %v9428_v41  ;;  %v17323_v0 = vpop.f32.mrb[105].mxu1  ;;  %17659 = vmatmul.mubr.f32.vlgmr.msra.gmra.mrb[166].mxu1 %v19780_v57 }
 0x3d6   : > { %18059 = vmatpush3.bf16.msra.mxu1 %v19753_v55  ;;  %17725 = vmatprep.mubr.msk.f32.mxu1 %vm18463_vm5, %v18464_v10 }
 0x3d7   : > { %18060 = vmatprep.subr.bf16.mxu1 %v18462_v7 }
 0x3d8   : > { %v9577_v23 = vpop.f32.mrb[106].mxu1 }
 0x3d9   : > { %v9578_v49 = vadd.f32 %v9577_v23, %v9505_v22  ;;  %v17330_v12 = vpop.f32.mrb[107].mxu1 }
 0x3dc   : > { %v9657_v31 = vpop.f32.mrb[108].mxu1 }
 0x3dd   : > { %v9658_v30 = vadd.f32 %v9657_v31, %v9578_v49  ;;  %v17337_v9 = vpop.f32.mrb[109].mxu1 }
 0x3e0   : > { %v9738_v62 = vpop.f32.mrb[110].mxu1 }
 0x3e1   : > { %v9739_v46 = vadd.f32 %v9738_v62, %v9658_v30  ;;  %v17344_v28 = vpop.f32.mrb[111].mxu1 }
 0x3e4   : > { %v9814_v38 = vpop.f32.mrb[112].mxu1 }
 0x3e5   : > { %v9815_v3 = vadd.f32 %v9814_v38, %v9739_v46  ;;  %v17351_v11 = vpop.f32.mrb[113].mxu1 }
 0x3e8   : > { %v9889_v4 = vpop.f32.mrb[114].mxu1 }
 0x3e9   : > { %v9890_v32 = vadd.f32 %v9889_v4, %v9815_v3  ;;  %v17358_v6 = vpop.f32.mrb[115].mxu1 }
 0x3ec   : > { %v9966_v24 = vpop.f32.mrb[116].mxu1 }
 0x3ed   : > { %v9967_v25 = vadd.f32 %v9966_v24, %v9890_v32  ;;  %v17365_v44 = vpop.f32.mrb[117].mxu1 }
 0x3f0   : > { %v10039_v34 = vpop.f32.mrb[118].mxu1 }
 0x3f1   : > { %v10040_v43 = vadd.f32 %v10039_v34, %v9967_v25  ;;  %v17372_v5 = vpop.f32.mrb[119].mxu1 }
 0x3f3   : > { %v10043_v36 = vadd.f32 %v10040_v43, %v19345_v40 }
 0x3f5   : > { %10045 = vrot.lane.b32.xlu0 %v10043_v36, %s18469_s25 }
 0x3f9   : > { %v17720_v2 = vpop.f32.mrb[14].mxu0 }
 0x3fa   : > { %v15003_v17 = vsel %vm1273_vm6, %v17720_v2, 0  ;;  %v14988_v37 = vpop.f32.mrb[15].mxu0 }
 0x3fb   : > { %v15072_v13 = vand.u32 4294901760, %v15003_v17  ;;  %v15465_v56 = vsel %vm1273_vm6, %v14988_v37, 0 }
 0x3fc   : > { %v15534_v42 = vand.u32 4294901760, %v15465_v56 }
 0x3fd   : > { %v15073_v39 = vsub.f32 %v15003_v17, %v15072_v13 }
 0x3ff   : > { %v15074_v57 = vand.u32 4294901760, %v15073_v39 }
 0x401   : > { %v15075_v51 = vsub.f32 %v15073_v39, %v15074_v57 }
 0x403   : > { %v15076_v16 = vand.u32 4294901760, %v15075_v51 }
 0x405   : > { %17726 = vmatmul.mubr.f32.vlgmr.msra.gmra.mrb[168].mxu1 %v15076_v16 }
 0x406   : > { %18062 = vmatpush3.bf16.msra.mxu1 %v19762_v35  ;;  %17732 = vmatprep.mubr.msk.f32.mxu1 %vm18463_vm5, %v18464_v10  ;;  %v15535_v35 = vsub.f32 %v15465_v56, %v15534_v42 }
 0x407   : > { %18063 = vmatprep.subr.bf16.mxu1 %v18462_v7 }
 0x409   : > { %17733 = vmatmul.mubr.f32.vlgmr.msra.gmra.mrb[170].mxu1 %v15072_v13 }
 0x40a   : > { %18065 = vmatpush3.bf16.msra.mxu1 %v19773_v8  ;;  %17739 = vmatprep.mubr.msk.f32.mxu1 %vm18463_vm5, %v18464_v10  ;;  %v15536_v8 = vand.u32 4294901760, %v15535_v35 }
 0x40b   : > { %v8085_v59 = vpop.permute.xlu1 %8084  ;;  %18066 = vmatprep.subr.bf16.mxu1 %v18462_v7 }
 0x40c   : > { %8088 = vst.msk [vmem:[%s19364_s27] sm:$0xff] %vm8087_vm10, %v8085_v59  ;;  %v15537_v53 = vsub.f32 %v15535_v35, %v15536_v8 }
 0x40d   : > { %17740 = vmatmul.mubr.f32.vlgmr.msra.gmra.mrb[172].mxu1 %v15073_v39 }
 0x40e   : > { %18068 = vmatpush3.bf16.msra.mxu1 %v19753_v55  ;;  %17746 = vmatprep.mubr.msk.f32.mxu1 %vm18463_vm5, %v18464_v10 }
 0x40f   : > { %18069 = vmatprep.subr.bf16.mxu1 %v18462_v7 }
 0x411   : > { %17747 = vmatmul.mubr.f32.vlgmr.msra.gmra.mrb[174].mxu1 %v15074_v57 }
 0x412   : > { %18071 = vmatpush3.bf16.msra.mxu1 %v19787_v63  ;;  %17753 = vmatprep.mubr.msk.f32.mxu1 %vm18463_vm5, %v18464_v10  ;;  %v15538_v63 = vand.u32 4294901760, %v15537_v53 }
 0x413   : > { %18072 = vmatprep.subr.bf16.mxu1 %v18462_v7 }
 0x415   : > { %17754 = vmatmul.mubr.f32.vlgmr.msra.gmra.mrb[176].mxu1 %v15072_v13 }
 0x416   : > { %18074 = vmatpush3.bf16.msra.mxu1 %v19753_v55  ;;  %17760 = vmatprep.mubr.msk.f32.mxu1 %vm18463_vm5, %v18464_v10 }
 0x417   : > { %18075 = vmatprep.subr.bf16.mxu1 %v18462_v7 }
 0x419   : > { %17761 = vmatmul.mubr.f32.vlgmr.msra.gmra.mrb[178].mxu1 %v15072_v13 }
 0x41a   : > { %18077 = vmatpush3.bf16.msra.mxu1 %v19798_v58  ;;  %17767 = vmatprep.mubr.msk.f32.mxu1 %vm18463_vm5, %v18464_v10 }
 0x41b   : > { %18078 = vmatprep.subr.bf16.mxu1 %v18462_v7 }
 0x41d   : > { %17768 = vmatmul.mubr.f32.vlgmr.msra.gmra.mrb[180].mxu1 %v15538_v63 }
 0x41e   : > { %18080 = vmatpush3.bf16.msra.mxu1 %v19804_v60  ;;  %17774 = vmatprep.mubr.msk.f32.mxu1 %vm18463_vm5, %v18464_v10 }
 0x41f   : > { %18081 = vmatprep.subr.bf16.mxu1 %v18462_v7 }
 0x420   : > { %v11156_v55 = vpop.f32.mrb[120].mxu1 }
 0x421   : > { %v17439_v45 = vpop.f32.mrb[121].mxu1  ;;  %17775 = vmatmul.mubr.f32.vlgmr.msra.gmra.mrb[182].mxu1 %v15534_v42 }
 0x422   : > { %18083 = vmatpush3.bf16.msra.mxu1 %v19810_v1  ;;  %17781 = vmatprep.mubr.msk.f32.mxu1 %vm18463_vm5, %v18464_v10 }
 0x423   : > { %18084 = vmatprep.subr.bf16.mxu1 %v18462_v7 }
 0x424   : > { %v11237_v54 = vpop.f32.mrb[122].mxu1 }
 0x425   : > { %v11238_v47 = vadd.f32 %v11237_v54, %v11156_v55  ;;  %v17446_v48 = vpop.f32.mrb[123].mxu1  ;;  %17782 = vmatmul.mubr.f32.vlgmr.msra.gmra.mrb[184].mxu1 %v15535_v35 }
 0x426   : > { %18086 = vmatpush3.bf16.msra.mxu1 %v19798_v58  ;;  %17788 = vmatprep.mubr.msk.f32.mxu1 %vm18463_vm5, %v18464_v10 }
 0x427   : > { %18087 = vmatprep.subr.bf16.mxu1 %v18462_v7 }
 0x428   : > { %v11313_v60 = vpop.f32.mrb[124].mxu1 }
 0x429   : > { %v11314_v33 = vadd.f32 %v11313_v60, %v11238_v47  ;;  %v17453_v18 = vpop.f32.mrb[125].mxu1  ;;  %17789 = vmatmul.mubr.f32.vlgmr.msra.gmra.mrb[186].mxu1 %v15536_v8 }
 0x42a   : > { %18089 = vmatpush3.bf16.msra.mxu1 %v19821_v19  ;;  %17795 = vmatprep.mubr.msk.f32.mxu1 %vm18463_vm5, %v18464_v10 }
 0x42b   : > { %18090 = vmatprep.subr.bf16.mxu1 %v18462_v7 }
 0x42c   : > { %v11388_v1 = vpop.f32.mrb[126].mxu1 }
 0x42d   : > { %v11389_v61 = vadd.f32 %v11388_v1, %v11314_v33  ;;  %v17460_v50 = vpop.f32.mrb[127].mxu1  ;;  %17796 = vmatmul.mubr.f32.vlgmr.msra.gmra.mrb[188].mxu1 %v15534_v42 }
 0x42e   : > { %18092 = vmatpush3.bf16.msra.mxu1 %v19798_v58  ;;  %17802 = vmatprep.mubr.msk.f32.mxu1 %vm18463_vm5, %v18464_v10 }
 0x430   : > { %v11465_v26 = vpop.f32.mrb[128].mxu1 }
 0x431   : > { %v11466_v15 = vadd.f32 %v11465_v26, %v11389_v61  ;;  %v17467_v20 = vpop.f32.mrb[129].mxu1  ;;  %17803 = vmatmul.mubr.f32.vlgmr.msra.gmra.mrb[190].mxu1 %v15534_v42 }
 0x434   : > { %v11538_v52 = vpop.f32.mrb[130].mxu1 }
 0x435   : > { %v11539_v19 = vadd.f32 %v11538_v52, %v11466_v15  ;;  %v17474_v27 = vpop.f32.mrb[131].mxu1 }
 0x438   : > { %v11618_v21 = vpop.f32.mrb[132].mxu1 }
 0x439   : > { %v11619_v41 = vadd.f32 %v11618_v21, %v11539_v19  ;;  %v17481_v14 = vpop.f32.mrb[133].mxu1 }
 0x43c   : > { %v11699_v7 = vpop.f32.mrb[134].mxu1 }
 0x43d   : > { %v11700_v29 = vadd.f32 %v11699_v7, %v11619_v41  ;;  %v17488_v22 = vpop.f32.mrb[135].mxu1 }
 0x440   : > { %v11775_v0 = vpop.f32.mrb[136].mxu1 }
 0x441   : > { %v11776_v23 = vadd.f32 %v11775_v0, %v11700_v29  ;;  %v17495_v58 = vpop.f32.mrb[137].mxu1 }
 0x444   : > { %v11850_v49 = vpop.f32.mrb[138].mxu1 }
 0x445   : > { %v11851_v12 = vadd.f32 %v11850_v49, %v11776_v23  ;;  %v17502_v10 = vpop.f32.mrb[139].mxu1 }
 0x448   : > { %v11927_v31 = vpop.f32.mrb[140].mxu1 }
 0x449   : > { %v11928_v30 = vadd.f32 %v11927_v31, %v11851_v12  ;;  %v17509_v9 = vpop.f32.mrb[141].mxu1 }
 0x44c   : > { %v12000_v62 = vpop.f32.mrb[142].mxu1 }
 0x44d   : > { %v12001_v46 = vadd.f32 %v12000_v62, %v11928_v30  ;;  %v17516_v28 = vpop.f32.mrb[143].mxu1 }
 0x44f   : > { %v12004_v38 = vadd.f32 %v12001_v46, %v19345_v40 }
 0x451   : > { %12006 = vrot.lane.b32.xlu1 %v12004_v38, %s18470_s26 }
 0x467   : > { %v10046_v3 = vpop.permute.xlu0 %10045 }
 0x468   : > { %10049 = vst.msk [vmem:[%s19364_s27] sm:$0xff] %vm10048_vm11, %v10046_v3 }
 0x47c   : > { %v13117_v11 = vpop.f32.mrb[144].mxu1 }
 0x47d   : > { %v17583_v4 = vpop.f32.mrb[145].mxu1 }
 0x480   : > { %v13198_v32 = vpop.f32.mrb[146].mxu1 }
 0x481   : > { %v13199_v6 = vadd.f32 %v13198_v32, %v13117_v11  ;;  %v17590_v24 = vpop.f32.mrb[147].mxu1 }
 0x484   : > { %v13274_v25 = vpop.f32.mrb[148].mxu1 }
 0x485   : > { %v13275_v44 = vadd.f32 %v13274_v25, %v13199_v6  ;;  %v17597_v34 = vpop.f32.mrb[149].mxu1 }
 0x488   : > { %v13349_v43 = vpop.f32.mrb[150].mxu1 }
 0x489   : > { %v13350_v5 = vadd.f32 %v13349_v43, %v13275_v44  ;;  %v17604_v36 = vpop.f32.mrb[151].mxu1 }
 0x48c   : > { %v13426_v2 = vpop.f32.mrb[152].mxu1 }
 0x48d   : > { %v13427_v17 = vadd.f32 %v13426_v2, %v13350_v5  ;;  %v17611_v37 = vpop.f32.mrb[153].mxu1 }
 0x490   : > { %v13499_v13 = vpop.f32.mrb[154].mxu1 }
 0x491   : > { %v13500_v39 = vadd.f32 %v13499_v13, %v13427_v17  ;;  %v17618_v57 = vpop.f32.mrb[155].mxu1 }
 0x494   : > { %v13579_v51 = vpop.f32.mrb[156].mxu1 }
 0x495   : > { %v13580_v16 = vadd.f32 %v13579_v51, %v13500_v39  ;;  %v17625_v56 = vpop.f32.mrb[157].mxu1 }
 0x498   : > { %v13660_v42 = vpop.f32.mrb[158].mxu1 }
 0x499   : > { %v13661_v59 = vadd.f32 %v13660_v42, %v13580_v16  ;;  %v17632_v35 = vpop.f32.mrb[159].mxu1 }
 0x49c   : > { %v13736_v8 = vpop.f32.mrb[160].mxu1 }
 0x49d   : > { %v13737_v53 = vadd.f32 %v13736_v8, %v13661_v59  ;;  %v17639_v63 = vpop.f32.mrb[161].mxu1 }
 0x4a0   : > { %v13811_v55 = vpop.f32.mrb[162].mxu1 }
 0x4a1   : > { %v13812_v45 = vadd.f32 %v13811_v55, %v13737_v53  ;;  %v17646_v54 = vpop.f32.mrb[163].mxu1 }
 0x4a4   : > { %v13888_v47 = vpop.f32.mrb[164].mxu1 }
 0x4a5   : > { %v13889_v48 = vadd.f32 %v13888_v47, %v13812_v45  ;;  %v17653_v60 = vpop.f32.mrb[165].mxu1 }
 0x4a8   : > { %v13961_v33 = vpop.f32.mrb[166].mxu1 }
 0x4a9   : > { %v13962_v18 = vadd.f32 %v13961_v33, %v13889_v48  ;;  %v17660_v1 = vpop.f32.mrb[167].mxu1 }
 0x4ab   : > { %v13965_v61 = vadd.f32 %v13962_v18, %v19345_v40 }
 0x4ad   : > { %13967 = vrot.lane.b32.xlu0 %v13965_v61, %s18471_s10 }
 0x4c3   : > { %v12007_v50 = vpop.permute.xlu1 %12006 }
 0x4c4   : > { %12010 = vst.msk [vmem:[%s19364_s27] sm:$0xff] %vm12009_vm12, %v12007_v50 }
 0x4d8   : > { %v15078_v26 = vpop.f32.mrb[168].mxu1 }
 0x4d9   : > { %v17727_v15 = vpop.f32.mrb[169].mxu1 }
 0x4dc   : > { %v15159_v20 = vpop.f32.mrb[170].mxu1 }
 0x4dd   : > { %v15160_v52 = vadd.f32 %v15159_v20, %v15078_v26  ;;  %v17734_v19 = vpop.f32.mrb[171].mxu1 }
 0x4e0   : > { %v15235_v27 = vpop.f32.mrb[172].mxu1 }
 0x4e1   : > { %v15236_v21 = vadd.f32 %v15235_v27, %v15160_v52  ;;  %v17741_v41 = vpop.f32.mrb[173].mxu1 }
 0x4e4   : > { %v15310_v14 = vpop.f32.mrb[174].mxu1 }
 0x4e5   : > { %v15311_v7 = vadd.f32 %v15310_v14, %v15236_v21  ;;  %v17748_v29 = vpop.f32.mrb[175].mxu1 }
 0x4e8   : > { %v15387_v22 = vpop.f32.mrb[176].mxu1 }
 0x4e9   : > { %v15388_v0 = vadd.f32 %v15387_v22, %v15311_v7  ;;  %v17755_v23 = vpop.f32.mrb[177].mxu1 }
 0x4ec   : > { %v15460_v58 = vpop.f32.mrb[178].mxu1 }
 0x4ed   : > { %v15461_v49 = vadd.f32 %v15460_v58, %v15388_v0  ;;  %v17762_v12 = vpop.f32.mrb[179].mxu1 }
 0x4f0   : > { %v15540_v10 = vpop.f32.mrb[180].mxu1 }
 0x4f1   : > { %v15541_v31 = vadd.f32 %v15540_v10, %v15461_v49  ;;  %v17769_v30 = vpop.f32.mrb[181].mxu1 }
 0x4f4   : > { %v15621_v9 = vpop.f32.mrb[182].mxu1 }
 0x4f5   : > { %v15622_v62 = vadd.f32 %v15621_v9, %v15541_v31  ;;  %v17776_v46 = vpop.f32.mrb[183].mxu1 }
 0x4f8   : > { %v15697_v28 = vpop.f32.mrb[184].mxu1 }
 0x4f9   : > { %v15698_v38 = vadd.f32 %v15697_v28, %v15622_v62  ;;  %v17783_v3 = vpop.f32.mrb[185].mxu1 }
 0x4fc   : > { %v15772_v11 = vpop.f32.mrb[186].mxu1 }
 0x4fd   : > { %v15773_v4 = vadd.f32 %v15772_v11, %v15698_v38  ;;  %v17790_v32 = vpop.f32.mrb[187].mxu1 }
 0x500   : > { %v15849_v6 = vpop.f32.mrb[188].mxu1 }
 0x501   : > { %v15850_v24 = vadd.f32 %v15849_v6, %v15773_v4  ;;  %v17797_v25 = vpop.f32.mrb[189].mxu1 }
 0x504   : > { %v15922_v44 = vpop.f32.mrb[190].mxu1 }
 0x505   : > { %v15923_v34 = vadd.f32 %v15922_v44, %v15850_v24  ;;  %v17804_v43 = vpop.f32.mrb[191].mxu1 }
 0x507   : > { %v15926_v5 = vadd.f32 %v15923_v34, %v19345_v40 }
 0x509   : > { %15928 = vrot.lane.b32.xlu1 %v15926_v5, %s18472_s12 }
 0x51f   : > { %v13968_v36 = vpop.permute.xlu0 %13967 }
 0x520   : > { %13971 = vst.msk [vmem:[%s19364_s27] sm:$0xff] %vm13970_vm13, %v13968_v36 }
 0x57b   : > { %v15929_v40 = vpop.permute.xlu1 %15928 }
 0x57c   : > { %15932 = vst.msk [vmem:[%s19364_s27] sm:$0xff] %vm15931_vm14, %v15929_v40 }
 0x57d   : > { %18388 = shalt.err (!%p18385_p5)
}
 0x57e   : > { %s18389_s22 = scalar_lea.hbm %s19896_s7, 128  ;;  %s18393_s25 = scalar_lea.hbm %s19950_s4, 256 }
 0x57f   : > { %p18390_p4 = scmp.ne.s32.totalorder %s19896_s7, %s18389_s22  ;;  %p18394_p12 = scmp.lt.u32.totalorder %s19896_s7, %s19950_s4 }
 0x580   : > { %p18395_p1 = scmp.lt.u32.totalorder %s18393_s25, %s18389_s22  ;;  %p18397_p8 = scmp.lt.u32.totalorder %s18389_s22, %s19896_s7 }
 0x581   : > { %p18391_p7 = pnand %p18390_p4, %p19958_p9 }
 0x582   : > { %p18396_p3 = por %p18395_p1, %p18394_p12 }
 0x583   : > { %p18392_p10 = pneg %p18391_p7 }
 0x584   : > { %p18398_p11 = por %p18397_p8, %p18396_p3 }
 0x586   : > { %p18399_p0 = pnand %p18398_p11, %p18392_p10 }
 0x588   : > { %18402 = shalt.err (!%p18399_p0)
}
 0x589   : > { %18271 = dma.vmem_to_hbm [thread:$0]  (%p19958_p9), %s19898_s14, 128, %s19896_s7, %s15934_s8  }
 0x58a PF: > { %s15960_s12 = sand.u32 1, %s18437_s15   ;;  %p19959_p6 = scmp.ne.s32.totalorder %s19955_s30, 0 }
 0x58b   : > { %p19960_p13 = scmp.ge.s32.totalorder %s18457_s20, 2  ;;  %s15961_s13 = scalar_lea.sflag [#allocation4], %s15960_s12 }
 0x58d   : > { %p18278_p2 = pnand %p19960_p13, %p19959_p6 }
 0x58f   : > { %18432 = dma.done.wait (!%p18278_p2), %s15961_s13, 128  }
 0x590   : > { %18434 = vsyncadd (!%p18278_p2), %s15961_s13, 4294967168  ;;  %s20_s20 = sadd.s32 1, %s18457_s20   ;;  %s19961_s15 = smov %s18441_s16 }
 0x591   : > { %p17_p5 = scmp.ge.s32.totalorder %s20_s20, 4   ;;  %s19962_s16 = smov %s18445_s17 }
 0x592   : > { %s19963_s17 = smov %s18555_s29  ;;  %s19964_s18 = smov %s18453_s19 }
 0x593   : > { %s19965_s19 = smov %s19967_s23  ;;  %19 = sbr.rel (!%p17_p5) target bundleno = 6 (0x6), region = 83 }
 0x59a   :  { %15966 = vsyncpa [#allocation3], 1 }
 0x59b   :  { %15968 = vsyncpa [#allocation3 + $0x1], 1 }
 0x59c   :  { %15969 = vsyncpa [#allocation4], 1 }
 0x59d   :  { %15971 = vsyncpa [#allocation4 + $0x1], 1 }

</bundles_post_ra>
